<compile_context>
chip_gen: v7x
topology: tpu7x:2x2x1
jax: 0.10.0
libtpu: 0.0.40
codegen_flags: <defaults>
</compile_context>

<pallas_src>
import functools
import math

import jax
import jax.numpy as jnp
import numpy as np
from jax.experimental import pallas as pl
from jax.experimental.pallas import tpu as pltpu


def _round_up(x, m):
    return ((x + m - 1) // m) * m


# ----------------------------- Pallas kernel ------------------------------ #

def _adder_kernel(w_ref, x_ref, o_ref, acc_ref, *, tile_k):
    # w_ref  : (tile_f, tile_k)   weight tile
    # x_ref  : (tile_k, tile_p)   unfolded-input tile
    # o_ref  : (tile_f, tile_p)   output tile (resident across the K grid axis)
    # acc_ref: (tile_f, tile_p)   f32 accumulator scratch
    k = pl.program_id(2)

    @pl.when(k == 0)
    def _():
        acc_ref[...] = jnp.zeros_like(acc_ref)

    w = w_ref[...]            # (tile_f, tile_k)
    x = x_ref[...]            # (tile_k, tile_p)
    acc = acc_ref[...]        # f32, lives in vregs for the duration of the loop

    # Stream the K reduction: each step is a pure 2-D VPU op
    #   acc += | w[:, r]  (lane-broadcast)  -  x[r, :]  (sublane-broadcast) |
    # r is a Python int -> static slices only (no dynamic lane indexing).
    for r in range(tile_k):
        acc = acc + jnp.abs(w[:, r:r + 1] - x[r:r + 1, :]).astype(jnp.float32)

    acc_ref[...] = acc

    @pl.when(k == pl.num_programs(2) - 1)
    def _():
        o_ref[...] = (-acc_ref[...]).astype(o_ref.dtype)


def _adder_matrix(w_col, x_col, *, tile_f=32, tile_p=512, tile_k=128,
                  compute_dtype=jnp.float32):
    """out[f, p] = -sum_k |w_col[f, k] - x_col[k, p]|   (f32 output)."""
    F, K = w_col.shape
    K2, P = x_col.shape
    assert K == K2

    # ---- tile sizes & padded extents (respect the (8, 128) layout rules) ----
    # F: sublane dim of the W / output blocks -> multiple of 8.
    tile_f = min(_round_up(tile_f, 8), _round_up(F, 8))
    F_pad = _round_up(F, tile_f)
    # P: lane dim of the X / output blocks -> multiple of 128 (lane-dense output).
    tile_p = min(_round_up(tile_p, 128), _round_up(P, 128))
    P_pad = _round_up(P, tile_p)
    # K: lane dim of the W block -> must be a multiple of 128 unless the block
    #    spans the whole (padded) K extent.
    K8 = _round_up(K, 8)
    if K8 <= tile_k:
        tile_k = K8
        K_pad = K8
    else:
        tile_k = _round_up(tile_k, 128)
        K_pad = _round_up(K, tile_k)

    # Zero-padding of K contributes |0 - 0| = 0 to the sum; the padded F rows
    # and P columns are sliced off below.
    w_p = jnp.pad(w_col, ((0, F_pad - F), (0, K_pad - K))).astype(compute_dtype)
    x_p = jnp.pad(x_col, ((0, K_pad - K), (0, P_pad - P))).astype(compute_dtype)

    grid = (F_pad // tile_f, P_pad // tile_p, K_pad // tile_k)
    kernel = functools.partial(_adder_kernel, tile_k=tile_k)

    out = pl.pallas_call(
        kernel,
        out_shape=jax.ShapeDtypeStruct((F_pad, P_pad), jnp.float32),
        grid_spec=pltpu.PrefetchScalarGridSpec(
            num_scalar_prefetch=0,
            grid=grid,
            in_specs=[
                pl.BlockSpec((tile_f, tile_k), lambda f, p, k: (f, k)),   # W tile
                pl.BlockSpec((tile_k, tile_p), lambda f, p, k: (k, p)),   # X tile
            ],
            out_specs=pl.BlockSpec((tile_f, tile_p), lambda f, p, k: (f, p)),
            scratch_shapes=[pltpu.VMEM((tile_f, tile_p), jnp.float32)],
        ),
        compiler_params=pltpu.CompilerParams(
            dimension_semantics=("parallel", "parallel", "arbitrary"),
        ),
    )(w_p, x_p)
    return out[:F, :P]


# ------------------------------ Glue (JAX) -------------------------------- #

def _im2col(x, kh, kw, stride, padding):
    """Unfold NCHW -> X_col (C*kh*kw, N*h_out*w_out).

    K ordering is (c, kh, kw) to match W.reshape(F, -1); P ordering is
    (n, i, j) with n slow.  Only the small original x is transposed (to
    channel-major); the kh*kw-expanded tensor is built directly in its final
    layout so no transpose of the expanded data is needed.
    """
    N, C, H, W = x.shape
    h_out = (H - kh + 2 * padding) // stride + 1
    w_out = (W - kw + 2 * padding) // stride + 1
    xt = jnp.transpose(x, (1, 0, 2, 3))                       # (C, N, H, W) - small
    xp = jnp.pad(xt, ((0, 0), (0, 0), (padding, padding), (padding, padding)))
    patches = []
    for i in range(kh):
        for j in range(kw):
            patches.append(
                xp[:, :, i:i + stride * h_out:stride, j:j + stride * w_out:stride]
            )
    patches = jnp.stack(patches, axis=1)                      # (C, kh*kw, N, h_out, w_out)
    x_col = patches.reshape(C * kh * kw, N * h_out * w_out)   # pure reshape
    return x_col, h_out, w_out


def adder2d_forward(x, w, b=None, stride=1, padding=0,
                    tile_f=32, tile_p=512, tile_k=128,
                    compute_dtype=jnp.float32):
    """x: (N, C, H, W), w: (F, C, kh, kw). Returns (N, F, h_out, w_out) in f32."""
    N, C, H, W = x.shape
    F, Cw, kh, kw = w.shape
    assert C == Cw
    x_col, h_out, w_out = _im2col(x, kh, kw, stride, padding)   # (K, N*L)
    w_col = w.reshape(F, C * kh * kw)                           # (F, K)
    out = _adder_matrix(w_col, x_col, tile_f=tile_f, tile_p=tile_p,
                        tile_k=tile_k, compute_dtype=compute_dtype)  # (F, N*L)
    out = out.reshape(F, N, h_out, w_out)
    out = jnp.transpose(out, (1, 0, 2, 3))                      # (N, F, h_out, w_out)
    if b is not None:
        out = out + b[None, :, None, None]
    return out


# Pure-JAX reference (direct formula, no Pallas) for the correctness check.
def adder2d_ref(x, w, b=None, stride=1, padding=0):
    N, C, H, W = x.shape
    F, _, kh, kw = w.shape
    xp = jnp.pad(x, ((0, 0), (0, 0), (padding, padding), (padding, padding)))
    h_out = (H - kh + 2 * padding) // stride + 1
    w_out = (W - kw + 2 * padding) // stride + 1
    out = jnp.zeros((N, F, h_out, w_out), jnp.float32)
    for i in range(kh):
        for j in range(kw):
            patch = xp[:, :, i:i + stride * h_out:stride, j:j + stride * w_out:stride]
            diff = jnp.abs(patch[:, None, :, :, :]
                           - w[None, :, :, i, j][:, :, :, None, None])
            out = out - jnp.sum(diff, axis=2)
    if b is not None:
        out = out + b[None, :, None, None]
    return out


if __name__ == "__main__":
    # Module config: adder2d(input_channel=16, output_channel=16, kernel_size=3,
    #                        stride=1, padding=1, bias=False)
    N, C, H, W = 2, 16, 16, 16
    F, ksize, stride, padding = 16, 3, 1, 1

    key = jax.random.PRNGKey(0)
    kx, kw_key = jax.random.split(key)
    x = jax.random.normal(kx, (N, C, H, W), dtype=jnp.float32)
    # Deterministic stand-in for nn.init.normal_(torch.randn(F, C, k, k))
    w = jax.random.normal(kw_key, (F, C, ksize, ksize), dtype=jnp.float32)

    # Small tiles chosen so the (F, P, K) grid is (2, 2, 2): exercises the
    # parallel F/P tiling and the K-axis accumulation (incl. zero-padded tail).
    fwd = jax.jit(functools.partial(adder2d_forward, stride=stride, padding=padding,
                                    tile_f=8, tile_p=256, tile_k=128))
    out = jax.block_until_ready(fwd(x, w))

    ref = adder2d_ref(x, w, b=None, stride=stride, padding=padding)
    np.testing.assert_allclose(np.asarray(out), np.asarray(ref),
                               rtol=1e-4, atol=1e-3)

    assert out.shape == (N, F, H, W)
    print("KERNEL_OK")
</pallas_src>

<mosaic_0001>
module attributes {stable_mosaic.version = 11 : i64} {
  func.func @_adder_kernel(%arg0: i32, %arg1: i32, %arg2: i32, %arg3: memref<8x128xf32, #tpu.memory_space<vmem>>, %arg4: memref<128x256xf32, #tpu.memory_space<vmem>>, %arg5: memref<8x256xf32, #tpu.memory_space<vmem>>, %arg6: memref<8x256xf32, #tpu.memory_space<vmem>>) attributes {dimension_semantics = [#tpu.dimension_semantics<parallel>, #tpu.dimension_semantics<parallel>, #tpu.dimension_semantics<arbitrary>], iteration_bounds = array<i64: 2, 2, 2>, scalar_prefetch = 0 : i64, scratch_operands = 1 : i64, tpu.core_type = #tpu.core_type<tc>, window_params = [{transform_indices = @transform_0, window_bounds = array<i64: 8, 128>}, {transform_indices = @transform_1, window_bounds = array<i64: 128, 256>}, {transform_indices = @transform_2, window_bounds = array<i64: 8, 256>}]} {
    %c0_i32 = arith.constant 0 : i32
    %0 = arith.cmpi eq, %arg2, %c0_i32 : i32
    %1 = arith.extui %0 : i1 to i32
    %c0_i32_0 = arith.constant 0 : i32
    %2 = arith.cmpi ne, %1, %c0_i32_0 : i32
    scf.if %2 {
      %cst = arith.constant 0.000000e+00 : f32
      %906 = vector.broadcast %cst : f32 to vector<8x256xf32>
      %c0_9 = arith.constant 0 : index
      %c0_10 = arith.constant 0 : index
      %907 = vector.load %arg6[%c0_9, %c0_10] : memref<8x256xf32, #tpu.memory_space<vmem>>, vector<8x256xf32>
      tpu.vector_store %arg6[%c0_9, %c0_10], %906 {strides = array<i32>} : memref<8x256xf32, #tpu.memory_space<vmem>>, vector<8x256xf32>,
    } else {
    }
    %c0 = arith.constant 0 : index
    %c0_1 = arith.constant 0 : index
    %3 = vector.load %arg3[%c0, %c0_1] : memref<8x128xf32, #tpu.memory_space<vmem>>, vector<8x128xf32>
    %c0_2 = arith.constant 0 : index
    %c0_3 = arith.constant 0 : index
    %4 = vector.load %arg4[%c0_2, %c0_3] : memref<128x256xf32, #tpu.memory_space<vmem>>, vector<128x256xf32>
    %c0_4 = arith.constant 0 : index
    %c0_5 = arith.constant 0 : index
    %5 = vector.load %arg6[%c0_4, %c0_5] : memref<8x256xf32, #tpu.memory_space<vmem>>, vector<8x256xf32>
    %6 = vector.extract_strided_slice %3 {offsets = [0, 0], sizes = [8, 1], strides = [1, 1]} : vector<8x128xf32> to vector<8x1xf32>
    %7 = vector.extract_strided_slice %4 {offsets = [0, 0], sizes = [1, 256], strides = [1, 1]} : vector<128x256xf32> to vector<1x256xf32>
    %8 = vector.broadcast %6 : vector<8x1xf32> to vector<8x256xf32>
    %9 = vector.broadcast %7 : vector<1x256xf32> to vector<8x256xf32>
    %10 = arith.subf %8, %9 : vector<8x256xf32>
    %11 = math.absf %10 : vector<8x256xf32>
    %12 = arith.addf %5, %11 : vector<8x256xf32>
    %13 = vector.extract_strided_slice %3 {offsets = [0, 1], sizes = [8, 1], strides = [1, 1]} : vector<8x128xf32> to vector<8x1xf32>
    %14 = vector.extract_strided_slice %4 {offsets = [1, 0], sizes = [1, 256], strides = [1, 1]} : vector<128x256xf32> to vector<1x256xf32>
    %15 = vector.broadcast %13 : vector<8x1xf32> to vector<8x256xf32>
    %16 = vector.broadcast %14 : vector<1x256xf32> to vector<8x256xf32>
    %17 = arith.subf %15, %16 : vector<8x256xf32>
    %18 = math.absf %17 : vector<8x256xf32>
    %19 = arith.addf %12, %18 : vector<8x256xf32>
    %20 = vector.extract_strided_slice %3 {offsets = [0, 2], sizes = [8, 1], strides = [1, 1]} : vector<8x128xf32> to vector<8x1xf32>
    %21 = vector.extract_strided_slice %4 {offsets = [2, 0], sizes = [1, 256], strides = [1, 1]} : vector<128x256xf32> to vector<1x256xf32>
    %22 = vector.broadcast %20 : vector<8x1xf32> to vector<8x256xf32>
    %23 = vector.broadcast %21 : vector<1x256xf32> to vector<8x256xf32>
    %24 = arith.subf %22, %23 : vector<8x256xf32>
    %25 = math.absf %24 : vector<8x256xf32>
    %26 = arith.addf %19, %25 : vector<8x256xf32>
    %27 = vector.extract_strided_slice %3 {offsets = [0, 3], sizes = [8, 1], strides = [1, 1]} : vector<8x128xf32> to vector<8x1xf32>
    %28 = vector.extract_strided_slice %4 {offsets = [3, 0], sizes = [1, 256], strides = [1, 1]} : vector<128x256xf32> to vector<1x256xf32>
    %29 = vector.broadcast %27 : vector<8x1xf32> to vector<8x256xf32>
    %30 = vector.broadcast %28 : vector<1x256xf32> to vector<8x256xf32>
    %31 = arith.subf %29, %30 : vector<8x256xf32>
    %32 = math.absf %31 : vector<8x256xf32>
    %33 = arith.addf %26, %32 : vector<8x256xf32>
    %34 = vector.extract_strided_slice %3 {offsets = [0, 4], sizes = [8, 1], strides = [1, 1]} : vector<8x128xf32> to vector<8x1xf32>
    %35 = vector.extract_strided_slice %4 {offsets = [4, 0], sizes = [1, 256], strides = [1, 1]} : vector<128x256xf32> to vector<1x256xf32>
    %36 = vector.broadcast %34 : vector<8x1xf32> to vector<8x256xf32>
    %37 = vector.broadcast %35 : vector<1x256xf32> to vector<8x256xf32>
    %38 = arith.subf %36, %37 : vector<8x256xf32>
    %39 = math.absf %38 : vector<8x256xf32>
    %40 = arith.addf %33, %39 : vector<8x256xf32>
    %41 = vector.extract_strided_slice %3 {offsets = [0, 5], sizes = [8, 1], strides = [1, 1]} : vector<8x128xf32> to vector<8x1xf32>
    %42 = vector.extract_strided_slice %4 {offsets = [5, 0], sizes = [1, 256], strides = [1, 1]} : vector<128x256xf32> to vector<1x256xf32>
    %43 = vector.broadcast %41 : vector<8x1xf32> to vector<8x256xf32>
    %44 = vector.broadcast %42 : vector<1x256xf32> to vector<8x256xf32>
    %45 = arith.subf %43, %44 : vector<8x256xf32>
    %46 = math.absf %45 : vector<8x256xf32>
    %47 = arith.addf %40, %46 : vector<8x256xf32>
    %48 = vector.extract_strided_slice %3 {offsets = [0, 6], sizes = [8, 1], strides = [1, 1]} : vector<8x128xf32> to vector<8x1xf32>
    %49 = vector.extract_strided_slice %4 {offsets = [6, 0], sizes = [1, 256], strides = [1, 1]} : vector<128x256xf32> to vector<1x256xf32>
    %50 = vector.broadcast %48 : vector<8x1xf32> to vector<8x256xf32>
    %51 = vector.broadcast %49 : vector<1x256xf32> to vector<8x256xf32>
    %52 = arith.subf %50, %51 : vector<8x256xf32>
    %53 = math.absf %52 : vector<8x256xf32>
    %54 = arith.addf %47, %53 : vector<8x256xf32>
    %55 = vector.extract_strided_slice %3 {offsets = [0, 7], sizes = [8, 1], strides = [1, 1]} : vector<8x128xf32> to vector<8x1xf32>
    %56 = vector.extract_strided_slice %4 {offsets = [7, 0], sizes = [1, 256], strides = [1, 1]} : vector<128x256xf32> to vector<1x256xf32>
    %57 = vector.broadcast %55 : vector<8x1xf32> to vector<8x256xf32>
    %58 = vector.broadcast %56 : vector<1x256xf32> to vector<8x256xf32>
    %59 = arith.subf %57, %58 : vector<8x256xf32>
    %60 = math.absf %59 : vector<8x256xf32>
    %61 = arith.addf %54, %60 : vector<8x256xf32>
    %62 = vector.extract_strided_slice %3 {offsets = [0, 8], sizes = [8, 1], strides = [1, 1]} : vector<8x128xf32> to vector<8x1xf32>
    %63 = vector.extract_strided_slice %4 {offsets = [8, 0], sizes = [1, 256], strides = [1, 1]} : vector<128x256xf32> to vector<1x256xf32>
    %64 = vector.broadcast %62 : vector<8x1xf32> to vector<8x256xf32>
    %65 = vector.broadcast %63 : vector<1x256xf32> to vector<8x256xf32>
    %66 = arith.subf %64, %65 : vector<8x256xf32>
    %67 = math.absf %66 : vector<8x256xf32>
    %68 = arith.addf %61, %67 : vector<8x256xf32>
    %69 = vector.extract_strided_slice %3 {offsets = [0, 9], sizes = [8, 1], strides = [1, 1]} : vector<8x128xf32> to vector<8x1xf32>
    %70 = vector.extract_strided_slice %4 {offsets = [9, 0], sizes = [1, 256], strides = [1, 1]} : vector<128x256xf32> to vector<1x256xf32>
    %71 = vector.broadcast %69 : vector<8x1xf32> to vector<8x256xf32>
    %72 = vector.broadcast %70 : vector<1x256xf32> to vector<8x256xf32>
    %73 = arith.subf %71, %72 : vector<8x256xf32>
    %74 = math.absf %73 : vector<8x256xf32>
    %75 = arith.addf %68, %74 : vector<8x256xf32>
    %76 = vector.extract_strided_slice %3 {offsets = [0, 10], sizes = [8, 1], strides = [1, 1]} : vector<8x128xf32> to vector<8x1xf32>
    %77 = vector.extract_strided_slice %4 {offsets = [10, 0], sizes = [1, 256], strides = [1, 1]} : vector<128x256xf32> to vector<1x256xf32>
    %78 = vector.broadcast %76 : vector<8x1xf32> to vector<8x256xf32>
    %79 = vector.broadcast %77 : vector<1x256xf32> to vector<8x256xf32>
    %80 = arith.subf %78, %79 : vector<8x256xf32>
    %81 = math.absf %80 : vector<8x256xf32>
    %82 = arith.addf %75, %81 : vector<8x256xf32>
    %83 = vector.extract_strided_slice %3 {offsets = [0, 11], sizes = [8, 1], strides = [1, 1]} : vector<8x128xf32> to vector<8x1xf32>
    %84 = vector.extract_strided_slice %4 {offsets = [11, 0], sizes = [1, 256], strides = [1, 1]} : vector<128x256xf32> to vector<1x256xf32>
    %85 = vector.broadcast %83 : vector<8x1xf32> to vector<8x256xf32>
    %86 = vector.broadcast %84 : vector<1x256xf32> to vector<8x256xf32>
    %87 = arith.subf %85, %86 : vector<8x256xf32>
    %88 = math.absf %87 : vector<8x256xf32>
    %89 = arith.addf %82, %88 : vector<8x256xf32>
    %90 = vector.extract_strided_slice %3 {offsets = [0, 12], sizes = [8, 1], strides = [1, 1]} : vector<8x128xf32> to vector<8x1xf32>
    %91 = vector.extract_strided_slice %4 {offsets = [12, 0], sizes = [1, 256], strides = [1, 1]} : vector<128x256xf32> to vector<1x256xf32>
    %92 = vector.broadcast %90 : vector<8x1xf32> to vector<8x256xf32>
    %93 = vector.broadcast %91 : vector<1x256xf32> to vector<8x256xf32>
    %94 = arith.subf %92, %93 : vector<8x256xf32>
    %95 = math.absf %94 : vector<8x256xf32>
    %96 = arith.addf %89, %95 : vector<8x256xf32>
    %97 = vector.extract_strided_slice %3 {offsets = [0, 13], sizes = [8, 1], strides = [1, 1]} : vector<8x128xf32> to vector<8x1xf32>
    %98 = vector.extract_strided_slice %4 {offsets = [13, 0], sizes = [1, 256], strides = [1, 1]} : vector<128x256xf32> to vector<1x256xf32>
    %99 = vector.broadcast %97 : vector<8x1xf32> to vector<8x256xf32>
    %100 = vector.broadcast %98 : vector<1x256xf32> to vector<8x256xf32>
    %101 = arith.subf %99, %100 : vector<8x256xf32>
    %102 = math.absf %101 : vector<8x256xf32>
    %103 = arith.addf %96, %102 : vector<8x256xf32>
    %104 = vector.extract_strided_slice %3 {offsets = [0, 14], sizes = [8, 1], strides = [1, 1]} : vector<8x128xf32> to vector<8x1xf32>
    %105 = vector.extract_strided_slice %4 {offsets = [14, 0], sizes = [1, 256], strides = [1, 1]} : vector<128x256xf32> to vector<1x256xf32>
    %106 = vector.broadcast %104 : vector<8x1xf32> to vector<8x256xf32>
    %107 = vector.broadcast %105 : vector<1x256xf32> to vector<8x256xf32>
    %108 = arith.subf %106, %107 : vector<8x256xf32>
    %109 = math.absf %108 : vector<8x256xf32>
    %110 = arith.addf %103, %109 : vector<8x256xf32>
    %111 = vector.extract_strided_slice %3 {offsets = [0, 15], sizes = [8, 1], strides = [1, 1]} : vector<8x128xf32> to vector<8x1xf32>
    %112 = vector.extract_strided_slice %4 {offsets = [15, 0], sizes = [1, 256], strides = [1, 1]} : vector<128x256xf32> to vector<1x256xf32>
    %113 = vector.broadcast %111 : vector<8x1xf32> to vector<8x256xf32>
    %114 = vector.broadcast %112 : vector<1x256xf32> to vector<8x256xf32>
    %115 = arith.subf %113, %114 : vector<8x256xf32>
    %116 = math.absf %115 : vector<8x256xf32>
    %117 = arith.addf %110, %116 : vector<8x256xf32>
    %118 = vector.extract_strided_slice %3 {offsets = [0, 16], sizes = [8, 1], strides = [1, 1]} : vector<8x128xf32> to vector<8x1xf32>
    %119 = vector.extract_strided_slice %4 {offsets = [16, 0], sizes = [1, 256], strides = [1, 1]} : vector<128x256xf32> to vector<1x256xf32>
    %120 = vector.broadcast %118 : vector<8x1xf32> to vector<8x256xf32>
    %121 = vector.broadcast %119 : vector<1x256xf32> to vector<8x256xf32>
    %122 = arith.subf %120, %121 : vector<8x256xf32>
    %123 = math.absf %122 : vector<8x256xf32>
    %124 = arith.addf %117, %123 : vector<8x256xf32>
    %125 = vector.extract_strided_slice %3 {offsets = [0, 17], sizes = [8, 1], strides = [1, 1]} : vector<8x128xf32> to vector<8x1xf32>
    %126 = vector.extract_strided_slice %4 {offsets = [17, 0], sizes = [1, 256], strides = [1, 1]} : vector<128x256xf32> to vector<1x256xf32>
    %127 = vector.broadcast %125 : vector<8x1xf32> to vector<8x256xf32>
    %128 = vector.broadcast %126 : vector<1x256xf32> to vector<8x256xf32>
    %129 = arith.subf %127, %128 : vector<8x256xf32>
    %130 = math.absf %129 : vector<8x256xf32>
    %131 = arith.addf %124, %130 : vector<8x256xf32>
    %132 = vector.extract_strided_slice %3 {offsets = [0, 18], sizes = [8, 1], strides = [1, 1]} : vector<8x128xf32> to vector<8x1xf32>
    %133 = vector.extract_strided_slice %4 {offsets = [18, 0], sizes = [1, 256], strides = [1, 1]} : vector<128x256xf32> to vector<1x256xf32>
    %134 = vector.broadcast %132 : vector<8x1xf32> to vector<8x256xf32>
    %135 = vector.broadcast %133 : vector<1x256xf32> to vector<8x256xf32>
    %136 = arith.subf %134, %135 : vector<8x256xf32>
    %137 = math.absf %136 : vector<8x256xf32>
    %138 = arith.addf %131, %137 : vector<8x256xf32>
    %139 = vector.extract_strided_slice %3 {offsets = [0, 19], sizes = [8, 1], strides = [1, 1]} : vector<8x128xf32> to vector<8x1xf32>
    %140 = vector.extract_strided_slice %4 {offsets = [19, 0], sizes = [1, 256], strides = [1, 1]} : vector<128x256xf32> to vector<1x256xf32>
    %141 = vector.broadcast %139 : vector<8x1xf32> to vector<8x256xf32>
    %142 = vector.broadcast %140 : vector<1x256xf32> to vector<8x256xf32>
    %143 = arith.subf %141, %142 : vector<8x256xf32>
    %144 = math.absf %143 : vector<8x256xf32>
    %145 = arith.addf %138, %144 : vector<8x256xf32>
    %146 = vector.extract_strided_slice %3 {offsets = [0, 20], sizes = [8, 1], strides = [1, 1]} : vector<8x128xf32> to vector<8x1xf32>
    %147 = vector.extract_strided_slice %4 {offsets = [20, 0], sizes = [1, 256], strides = [1, 1]} : vector<128x256xf32> to vector<1x256xf32>
    %148 = vector.broadcast %146 : vector<8x1xf32> to vector<8x256xf32>
    %149 = vector.broadcast %147 : vector<1x256xf32> to vector<8x256xf32>
    %150 = arith.subf %148, %149 : vector<8x256xf32>
    %151 = math.absf %150 : vector<8x256xf32>
    %152 = arith.addf %145, %151 : vector<8x256xf32>
    %153 = vector.extract_strided_slice %3 {offsets = [0, 21], sizes = [8, 1], strides = [1, 1]} : vector<8x128xf32> to vector<8x1xf32>
    %154 = vector.extract_strided_slice %4 {offsets = [21, 0], sizes = [1, 256], strides = [1, 1]} : vector<128x256xf32> to vector<1x256xf32>
    %155 = vector.broadcast %153 : vector<8x1xf32> to vector<8x256xf32>
    %156 = vector.broadcast %154 : vector<1x256xf32> to vector<8x256xf32>
    %157 = arith.subf %155, %156 : vector<8x256xf32>
    %158 = math.absf %157 : vector<8x256xf32>
    %159 = arith.addf %152, %158 : vector<8x256xf32>
    %160 = vector.extract_strided_slice %3 {offsets = [0, 22], sizes = [8, 1], strides = [1, 1]} : vector<8x128xf32> to vector<8x1xf32>
    %161 = vector.extract_strided_slice %4 {offsets = [22, 0], sizes = [1, 256], strides = [1, 1]} : vector<128x256xf32> to vector<1x256xf32>
    %162 = vector.broadcast %160 : vector<8x1xf32> to vector<8x256xf32>
    %163 = vector.broadcast %161 : vector<1x256xf32> to vector<8x256xf32>
    %164 = arith.subf %162, %163 : vector<8x256xf32>
    %165 = math.absf %164 : vector<8x256xf32>
    %166 = arith.addf %159, %165 : vector<8x256xf32>
    %167 = vector.extract_strided_slice %3 {offsets = [0, 23], sizes = [8, 1], strides = [1, 1]} : vector<8x128xf32> to vector<8x1xf32>
    %168 = vector.extract_strided_slice %4 {offsets = [23, 0], sizes = [1, 256], strides = [1, 1]} : vector<128x256xf32> to vector<1x256xf32>
    %169 = vector.broadcast %167 : vector<8x1xf32> to vector<8x256xf32>
    %170 = vector.broadcast %168 : vector<1x256xf32> to vector<8x256xf32>
    %171 = arith.subf %169, %170 : vector<8x256xf32>
    %172 = math.absf %171 : vector<8x256xf32>
    %173 = arith.addf %166, %172 : vector<8x256xf32>
    %174 = vector.extract_strided_slice %3 {offsets = [0, 24], sizes = [8, 1], strides = [1, 1]} : vector<8x128xf32> to vector<8x1xf32>
    %175 = vector.extract_strided_slice %4 {offsets = [24, 0], sizes = [1, 256], strides = [1, 1]} : vector<128x256xf32> to vector<1x256xf32>
    %176 = vector.broadcast %174 : vector<8x1xf32> to vector<8x256xf32>
    %177 = vector.broadcast %175 : vector<1x256xf32> to vector<8x256xf32>
    %178 = arith.subf %176, %177 : vector<8x256xf32>
    %179 = math.absf %178 : vector<8x256xf32>
    %180 = arith.addf %173, %179 : vector<8x256xf32>
    %181 = vector.extract_strided_slice %3 {offsets = [0, 25], sizes = [8, 1], strides = [1, 1]} : vector<8x128xf32> to vector<8x1xf32>
    %182 = vector.extract_strided_slice %4 {offsets = [25, 0], sizes = [1, 256], strides = [1, 1]} : vector<128x256xf32> to vector<1x256xf32>
    %183 = vector.broadcast %181 : vector<8x1xf32> to vector<8x256xf32>
    %184 = vector.broadcast %182 : vector<1x256xf32> to vector<8x256xf32>
    %185 = arith.subf %183, %184 : vector<8x256xf32>
    %186 = math.absf %185 : vector<8x256xf32>
    %187 = arith.addf %180, %186 : vector<8x256xf32>
    %188 = vector.extract_strided_slice %3 {offsets = [0, 26], sizes = [8, 1], strides = [1, 1]} : vector<8x128xf32> to vector<8x1xf32>
    %189 = vector.extract_strided_slice %4 {offsets = [26, 0], sizes = [1, 256], strides = [1, 1]} : vector<128x256xf32> to vector<1x256xf32>
    %190 = vector.broadcast %188 : vector<8x1xf32> to vector<8x256xf32>
    %191 = vector.broadcast %189 : vector<1x256xf32> to vector<8x256xf32>
    %192 = arith.subf %190, %191 : vector<8x256xf32>
    %193 = math.absf %192 : vector<8x256xf32>
    %194 = arith.addf %187, %193 : vector<8x256xf32>
    %195 = vector.extract_strided_slice %3 {offsets = [0, 27], sizes = [8, 1], strides = [1, 1]} : vector<8x128xf32> to vector<8x1xf32>
    %196 = vector.extract_strided_slice %4 {offsets = [27, 0], sizes = [1, 256], strides = [1, 1]} : vector<128x256xf32> to vector<1x256xf32>
    %197 = vector.broadcast %195 : vector<8x1xf32> to vector<8x256xf32>
    %198 = vector.broadcast %196 : vector<1x256xf32> to vector<8x256xf32>
    %199 = arith.subf %197, %198 : vector<8x256xf32>
    %200 = math.absf %199 : vector<8x256xf32>
    %201 = arith.addf %194, %200 : vector<8x256xf32>
    %202 = vector.extract_strided_slice %3 {offsets = [0, 28], sizes = [8, 1], strides = [1, 1]} : vector<8x128xf32> to vector<8x1xf32>
    %203 = vector.extract_strided_slice %4 {offsets = [28, 0], sizes = [1, 256], strides = [1, 1]} : vector<128x256xf32> to vector<1x256xf32>
    %204 = vector.broadcast %202 : vector<8x1xf32> to vector<8x256xf32>
    %205 = vector.broadcast %203 : vector<1x256xf32> to vector<8x256xf32>
    %206 = arith.subf %204, %205 : vector<8x256xf32>
    %207 = math.absf %206 : vector<8x256xf32>
    %208 = arith.addf %201, %207 : vector<8x256xf32>
    %209 = vector.extract_strided_slice %3 {offsets = [0, 29], sizes = [8, 1], strides = [1, 1]} : vector<8x128xf32> to vector<8x1xf32>
    %210 = vector.extract_strided_slice %4 {offsets = [29, 0], sizes = [1, 256], strides = [1, 1]} : vector<128x256xf32> to vector<1x256xf32>
    %211 = vector.broadcast %209 : vector<8x1xf32> to vector<8x256xf32>
    %212 = vector.broadcast %210 : vector<1x256xf32> to vector<8x256xf32>
    %213 = arith.subf %211, %212 : vector<8x256xf32>
    %214 = math.absf %213 : vector<8x256xf32>
    %215 = arith.addf %208, %214 : vector<8x256xf32>
    %216 = vector.extract_strided_slice %3 {offsets = [0, 30], sizes = [8, 1], strides = [1, 1]} : vector<8x128xf32> to vector<8x1xf32>
    %217 = vector.extract_strided_slice %4 {offsets = [30, 0], sizes = [1, 256], strides = [1, 1]} : vector<128x256xf32> to vector<1x256xf32>
    %218 = vector.broadcast %216 : vector<8x1xf32> to vector<8x256xf32>
    %219 = vector.broadcast %217 : vector<1x256xf32> to vector<8x256xf32>
    %220 = arith.subf %218, %219 : vector<8x256xf32>
    %221 = math.absf %220 : vector<8x256xf32>
    %222 = arith.addf %215, %221 : vector<8x256xf32>
    %223 = vector.extract_strided_slice %3 {offsets = [0, 31], sizes = [8, 1], strides = [1, 1]} : vector<8x128xf32> to vector<8x1xf32>
    %224 = vector.extract_strided_slice %4 {offsets = [31, 0], sizes = [1, 256], strides = [1, 1]} : vector<128x256xf32> to vector<1x256xf32>
    %225 = vector.broadcast %223 : vector<8x1xf32> to vector<8x256xf32>
    %226 = vector.broadcast %224 : vector<1x256xf32> to vector<8x256xf32>
    %227 = arith.subf %225, %226 : vector<8x256xf32>
    %228 = math.absf %227 : vector<8x256xf32>
    %229 = arith.addf %222, %228 : vector<8x256xf32>
    %230 = vector.extract_strided_slice %3 {offsets = [0, 32], sizes = [8, 1], strides = [1, 1]} : vector<8x128xf32> to vector<8x1xf32>
    %231 = vector.extract_strided_slice %4 {offsets = [32, 0], sizes = [1, 256], strides = [1, 1]} : vector<128x256xf32> to vector<1x256xf32>
    %232 = vector.broadcast %230 : vector<8x1xf32> to vector<8x256xf32>
    %233 = vector.broadcast %231 : vector<1x256xf32> to vector<8x256xf32>
    %234 = arith.subf %232, %233 : vector<8x256xf32>
    %235 = math.absf %234 : vector<8x256xf32>
    %236 = arith.addf %229, %235 : vector<8x256xf32>
    %237 = vector.extract_strided_slice %3 {offsets = [0, 33], sizes = [8, 1], strides = [1, 1]} : vector<8x128xf32> to vector<8x1xf32>
    %238 = vector.extract_strided_slice %4 {offsets = [33, 0], sizes = [1, 256], strides = [1, 1]} : vector<128x256xf32> to vector<1x256xf32>
    %239 = vector.broadcast %237 : vector<8x1xf32> to vector<8x256xf32>
    %240 = vector.broadcast %238 : vector<1x256xf32> to vector<8x256xf32>
    %241 = arith.subf %239, %240 : vector<8x256xf32>
    %242 = math.absf %241 : vector<8x256xf32>
    %243 = arith.addf %236, %242 : vector<8x256xf32>
    %244 = vector.extract_strided_slice %3 {offsets = [0, 34], sizes = [8, 1], strides = [1, 1]} : vector<8x128xf32> to vector<8x1xf32>
    %245 = vector.extract_strided_slice %4 {offsets = [34, 0], sizes = [1, 256], strides = [1, 1]} : vector<128x256xf32> to vector<1x256xf32>
    %246 = vector.broadcast %244 : vector<8x1xf32> to vector<8x256xf32>
    %247 = vector.broadcast %245 : vector<1x256xf32> to vector<8x256xf32>
    %248 = arith.subf %246, %247 : vector<8x256xf32>
    %249 = math.absf %248 : vector<8x256xf32>
    %250 = arith.addf %243, %249 : vector<8x256xf32>
    %251 = vector.extract_strided_slice %3 {offsets = [0, 35], sizes = [8, 1], strides = [1, 1]} : vector<8x128xf32> to vector<8x1xf32>
    %252 = vector.extract_strided_slice %4 {offsets = [35, 0], sizes = [1, 256], strides = [1, 1]} : vector<128x256xf32> to vector<1x256xf32>
    %253 = vector.broadcast %251 : vector<8x1xf32> to vector<8x256xf32>
    %254 = vector.broadcast %252 : vector<1x256xf32> to vector<8x256xf32>
    %255 = arith.subf %253, %254 : vector<8x256xf32>
    %256 = math.absf %255 : vector<8x256xf32>
    %257 = arith.addf %250, %256 : vector<8x256xf32>
    %258 = vector.extract_strided_slice %3 {offsets = [0, 36], sizes = [8, 1], strides = [1, 1]} : vector<8x128xf32> to vector<8x1xf32>
    %259 = vector.extract_strided_slice %4 {offsets = [36, 0], sizes = [1, 256], strides = [1, 1]} : vector<128x256xf32> to vector<1x256xf32>
    %260 = vector.broadcast %258 : vector<8x1xf32> to vector<8x256xf32>
    %261 = vector.broadcast %259 : vector<1x256xf32> to vector<8x256xf32>
    %262 = arith.subf %260, %261 : vector<8x256xf32>
    %263 = math.absf %262 : vector<8x256xf32>
    %264 = arith.addf %257, %263 : vector<8x256xf32>
    %265 = vector.extract_strided_slice %3 {offsets = [0, 37], sizes = [8, 1], strides = [1, 1]} : vector<8x128xf32> to vector<8x1xf32>
    %266 = vector.extract_strided_slice %4 {offsets = [37, 0], sizes = [1, 256], strides = [1, 1]} : vector<128x256xf32> to vector<1x256xf32>
    %267 = vector.broadcast %265 : vector<8x1xf32> to vector<8x256xf32>
    %268 = vector.broadcast %266 : vector<1x256xf32> to vector<8x256xf32>
    %269 = arith.subf %267, %268 : vector<8x256xf32>
    %270 = math.absf %269 : vector<8x256xf32>
    %271 = arith.addf %264, %270 : vector<8x256xf32>
    %272 = vector.extract_strided_slice %3 {offsets = [0, 38], sizes = [8, 1], strides = [1, 1]} : vector<8x128xf32> to vector<8x1xf32>
    %273 = vector.extract_strided_slice %4 {offsets = [38, 0], sizes = [1, 256], strides = [1, 1]} : vector<128x256xf32> to vector<1x256xf32>
    %274 = vector.broadcast %272 : vector<8x1xf32> to vector<8x256xf32>
    %275 = vector.broadcast %273 : vector<1x256xf32> to vector<8x256xf32>
    %276 = arith.subf %274, %275 : vector<8x256xf32>
    %277 = math.absf %276 : vector<8x256xf32>
    %278 = arith.addf %271, %277 : vector<8x256xf32>
    %279 = vector.extract_strided_slice %3 {offsets = [0, 39], sizes = [8, 1], strides = [1, 1]} : vector<8x128xf32> to vector<8x1xf32>
    %280 = vector.extract_strided_slice %4 {offsets = [39, 0], sizes = [1, 256], strides = [1, 1]} : vector<128x256xf32> to vector<1x256xf32>
    %281 = vector.broadcast %279 : vector<8x1xf32> to vector<8x256xf32>
    %282 = vector.broadcast %280 : vector<1x256xf32> to vector<8x256xf32>
    %283 = arith.subf %281, %282 : vector<8x256xf32>
    %284 = math.absf %283 : vector<8x256xf32>
    %285 = arith.addf %278, %284 : vector<8x256xf32>
    %286 = vector.extract_strided_slice %3 {offsets = [0, 40], sizes = [8, 1], strides = [1, 1]} : vector<8x128xf32> to vector<8x1xf32>
    %287 = vector.extract_strided_slice %4 {offsets = [40, 0], sizes = [1, 256], strides = [1, 1]} : vector<128x256xf32> to vector<1x256xf32>
    %288 = vector.broadcast %286 : vector<8x1xf32> to vector<8x256xf32>
    %289 = vector.broadcast %287 : vector<1x256xf32> to vector<8x256xf32>
    %290 = arith.subf %288, %289 : vector<8x256xf32>
    %291 = math.absf %290 : vector<8x256xf32>
    %292 = arith.addf %285, %291 : vector<8x256xf32>
    %293 = vector.extract_strided_slice %3 {offsets = [0, 41], sizes = [8, 1], strides = [1, 1]} : vector<8x128xf32> to vector<8x1xf32>
    %294 = vector.extract_strided_slice %4 {offsets = [41, 0], sizes = [1, 256], strides = [1, 1]} : vector<128x256xf32> to vector<1x256xf32>
    %295 = vector.broadcast %293 : vector<8x1xf32> to vector<8x256xf32>
    %296 = vector.broadcast %294 : vector<1x256xf32> to vector<8x256xf32>
    %297 = arith.subf %295, %296 : vector<8x256xf32>
    %298 = math.absf %297 : vector<8x256xf32>
    %299 = arith.addf %292, %298 : vector<8x256xf32>
    %300 = vector.extract_strided_slice %3 {offsets = [0, 42], sizes = [8, 1], strides = [1, 1]} : vector<8x128xf32> to vector<8x1xf32>
    %301 = vector.extract_strided_slice %4 {offsets = [42, 0], sizes = [1, 256], strides = [1, 1]} : vector<128x256xf32> to vector<1x256xf32>
    %302 = vector.broadcast %300 : vector<8x1xf32> to vector<8x256xf32>
    %303 = vector.broadcast %301 : vector<1x256xf32> to vector<8x256xf32>
    %304 = arith.subf %302, %303 : vector<8x256xf32>
    %305 = math.absf %304 : vector<8x256xf32>
    %306 = arith.addf %299, %305 : vector<8x256xf32>
    %307 = vector.extract_strided_slice %3 {offsets = [0, 43], sizes = [8, 1], strides = [1, 1]} : vector<8x128xf32> to vector<8x1xf32>
    %308 = vector.extract_strided_slice %4 {offsets = [43, 0], sizes = [1, 256], strides = [1, 1]} : vector<128x256xf32> to vector<1x256xf32>
    %309 = vector.broadcast %307 : vector<8x1xf32> to vector<8x256xf32>
    %310 = vector.broadcast %308 : vector<1x256xf32> to vector<8x256xf32>
    %311 = arith.subf %309, %310 : vector<8x256xf32>
    %312 = math.absf %311 : vector<8x256xf32>
    %313 = arith.addf %306, %312 : vector<8x256xf32>
    %314 = vector.extract_strided_slice %3 {offsets = [0, 44], sizes = [8, 1], strides = [1, 1]} : vector<8x128xf32> to vector<8x1xf32>
    %315 = vector.extract_strided_slice %4 {offsets = [44, 0], sizes = [1, 256], strides = [1, 1]} : vector<128x256xf32> to vector<1x256xf32>
    %316 = vector.broadcast %314 : vector<8x1xf32> to vector<8x256xf32>
    %317 = vector.broadcast %315 : vector<1x256xf32> to vector<8x256xf32>
    %318 = arith.subf %316, %317 : vector<8x256xf32>
    %319 = math.absf %318 : vector<8x256xf32>
    %320 = arith.addf %313, %319 : vector<8x256xf32>
    %321 = vector.extract_strided_slice %3 {offsets = [0, 45], sizes = [8, 1], strides = [1, 1]} : vector<8x128xf32> to vector<8x1xf32>
    %322 = vector.extract_strided_slice %4 {offsets = [45, 0], sizes = [1, 256], strides = [1, 1]} : vector<128x256xf32> to vector<1x256xf32>
    %323 = vector.broadcast %321 : vector<8x1xf32> to vector<8x256xf32>
    %324 = vector.broadcast %322 : vector<1x256xf32> to vector<8x256xf32>
    %325 = arith.subf %323, %324 : vector<8x256xf32>
    %326 = math.absf %325 : vector<8x256xf32>
    %327 = arith.addf %320, %326 : vector<8x256xf32>
    %328 = vector.extract_strided_slice %3 {offsets = [0, 46], sizes = [8, 1], strides = [1, 1]} : vector<8x128xf32> to vector<8x1xf32>
    %329 = vector.extract_strided_slice %4 {offsets = [46, 0], sizes = [1, 256], strides = [1, 1]} : vector<128x256xf32> to vector<1x256xf32>
    %330 = vector.broadcast %328 : vector<8x1xf32> to vector<8x256xf32>
    %331 = vector.broadcast %329 : vector<1x256xf32> to vector<8x256xf32>
    %332 = arith.subf %330, %331 : vector<8x256xf32>
    %333 = math.absf %332 : vector<8x256xf32>
    %334 = arith.addf %327, %333 : vector<8x256xf32>
    %335 = vector.extract_strided_slice %3 {offsets = [0, 47], sizes = [8, 1], strides = [1, 1]} : vector<8x128xf32> to vector<8x1xf32>
    %336 = vector.extract_strided_slice %4 {offsets = [47, 0], sizes = [1, 256], strides = [1, 1]} : vector<128x256xf32> to vector<1x256xf32>
    %337 = vector.broadcast %335 : vector<8x1xf32> to vector<8x256xf32>
    %338 = vector.broadcast %336 : vector<1x256xf32> to vector<8x256xf32>
    %339 = arith.subf %337, %338 : vector<8x256xf32>
    %340 = math.absf %339 : vector<8x256xf32>
    %341 = arith.addf %334, %340 : vector<8x256xf32>
    %342 = vector.extract_strided_slice %3 {offsets = [0, 48], sizes = [8, 1], strides = [1, 1]} : vector<8x128xf32> to vector<8x1xf32>
    %343 = vector.extract_strided_slice %4 {offsets = [48, 0], sizes = [1, 256], strides = [1, 1]} : vector<128x256xf32> to vector<1x256xf32>
    %344 = vector.broadcast %342 : vector<8x1xf32> to vector<8x256xf32>
    %345 = vector.broadcast %343 : vector<1x256xf32> to vector<8x256xf32>
    %346 = arith.subf %344, %345 : vector<8x256xf32>
    %347 = math.absf %346 : vector<8x256xf32>
    %348 = arith.addf %341, %347 : vector<8x256xf32>
    %349 = vector.extract_strided_slice %3 {offsets = [0, 49], sizes = [8, 1], strides = [1, 1]} : vector<8x128xf32> to vector<8x1xf32>
    %350 = vector.extract_strided_slice %4 {offsets = [49, 0], sizes = [1, 256], strides = [1, 1]} : vector<128x256xf32> to vector<1x256xf32>
    %351 = vector.broadcast %349 : vector<8x1xf32> to vector<8x256xf32>
    %352 = vector.broadcast %350 : vector<1x256xf32> to vector<8x256xf32>
    %353 = arith.subf %351, %352 : vector<8x256xf32>
    %354 = math.absf %353 : vector<8x256xf32>
    %355 = arith.addf %348, %354 : vector<8x256xf32>
    %356 = vector.extract_strided_slice %3 {offsets = [0, 50], sizes = [8, 1], strides = [1, 1]} : vector<8x128xf32> to vector<8x1xf32>
    %357 = vector.extract_strided_slice %4 {offsets = [50, 0], sizes = [1, 256], strides = [1, 1]} : vector<128x256xf32> to vector<1x256xf32>
    %358 = vector.broadcast %356 : vector<8x1xf32> to vector<8x256xf32>
    %359 = vector.broadcast %357 : vector<1x256xf32> to vector<8x256xf32>
    %360 = arith.subf %358, %359 : vector<8x256xf32>
    %361 = math.absf %360 : vector<8x256xf32>
    %362 = arith.addf %355, %361 : vector<8x256xf32>
    %363 = vector.extract_strided_slice %3 {offsets = [0, 51], sizes = [8, 1], strides = [1, 1]} : vector<8x128xf32> to vector<8x1xf32>
    %364 = vector.extract_strided_slice %4 {offsets = [51, 0], sizes = [1, 256], strides = [1, 1]} : vector<128x256xf32> to vector<1x256xf32>
    %365 = vector.broadcast %363 : vector<8x1xf32> to vector<8x256xf32>
    %366 = vector.broadcast %364 : vector<1x256xf32> to vector<8x256xf32>
    %367 = arith.subf %365, %366 : vector<8x256xf32>
    %368 = math.absf %367 : vector<8x256xf32>
    %369 = arith.addf %362, %368 : vector<8x256xf32>
    %370 = vector.extract_strided_slice %3 {offsets = [0, 52], sizes = [8, 1], strides = [1, 1]} : vector<8x128xf32> to vector<8x1xf32>
    %371 = vector.extract_strided_slice %4 {offsets = [52, 0], sizes = [1, 256], strides = [1, 1]} : vector<128x256xf32> to vector<1x256xf32>
    %372 = vector.broadcast %370 : vector<8x1xf32> to vector<8x256xf32>
    %373 = vector.broadcast %371 : vector<1x256xf32> to vector<8x256xf32>
    %374 = arith.subf %372, %373 : vector<8x256xf32>
    %375 = math.absf %374 : vector<8x256xf32>
    %376 = arith.addf %369, %375 : vector<8x256xf32>
    %377 = vector.extract_strided_slice %3 {offsets = [0, 53], sizes = [8, 1], strides = [1, 1]} : vector<8x128xf32> to vector<8x1xf32>
    %378 = vector.extract_strided_slice %4 {offsets = [53, 0], sizes = [1, 256], strides = [1, 1]} : vector<128x256xf32> to vector<1x256xf32>
    %379 = vector.broadcast %377 : vector<8x1xf32> to vector<8x256xf32>
    %380 = vector.broadcast %378 : vector<1x256xf32> to vector<8x256xf32>
    %381 = arith.subf %379, %380 : vector<8x256xf32>
    %382 = math.absf %381 : vector<8x256xf32>
    %383 = arith.addf %376, %382 : vector<8x256xf32>
    %384 = vector.extract_strided_slice %3 {offsets = [0, 54], sizes = [8, 1], strides = [1, 1]} : vector<8x128xf32> to vector<8x1xf32>
    %385 = vector.extract_strided_slice %4 {offsets = [54, 0], sizes = [1, 256], strides = [1, 1]} : vector<128x256xf32> to vector<1x256xf32>
    %386 = vector.broadcast %384 : vector<8x1xf32> to vector<8x256xf32>
    %387 = vector.broadcast %385 : vector<1x256xf32> to vector<8x256xf32>
    %388 = arith.subf %386, %387 : vector<8x256xf32>
    %389 = math.absf %388 : vector<8x256xf32>
    %390 = arith.addf %383, %389 : vector<8x256xf32>
    %391 = vector.extract_strided_slice %3 {offsets = [0, 55], sizes = [8, 1], strides = [1, 1]} : vector<8x128xf32> to vector<8x1xf32>
    %392 = vector.extract_strided_slice %4 {offsets = [55, 0], sizes = [1, 256], strides = [1, 1]} : vector<128x256xf32> to vector<1x256xf32>
    %393 = vector.broadcast %391 : vector<8x1xf32> to vector<8x256xf32>
    %394 = vector.broadcast %392 : vector<1x256xf32> to vector<8x256xf32>
    %395 = arith.subf %393, %394 : vector<8x256xf32>
    %396 = math.absf %395 : vector<8x256xf32>
    %397 = arith.addf %390, %396 : vector<8x256xf32>
    %398 = vector.extract_strided_slice %3 {offsets = [0, 56], sizes = [8, 1], strides = [1, 1]} : vector<8x128xf32> to vector<8x1xf32>
    %399 = vector.extract_strided_slice %4 {offsets = [56, 0], sizes = [1, 256], strides = [1, 1]} : vector<128x256xf32> to vector<1x256xf32>
    %400 = vector.broadcast %398 : vector<8x1xf32> to vector<8x256xf32>
    %401 = vector.broadcast %399 : vector<1x256xf32> to vector<8x256xf32>
    %402 = arith.subf %400, %401 : vector<8x256xf32>
    %403 = math.absf %402 : vector<8x256xf32>
    %404 = arith.addf %397, %403 : vector<8x256xf32>
    %405 = vector.extract_strided_slice %3 {offsets = [0, 57], sizes = [8, 1], strides = [1, 1]} : vector<8x128xf32> to vector<8x1xf32>
    %406 = vector.extract_strided_slice %4 {offsets = [57, 0], sizes = [1, 256], strides = [1, 1]} : vector<128x256xf32> to vector<1x256xf32>
    %407 = vector.broadcast %405 : vector<8x1xf32> to vector<8x256xf32>
    %408 = vector.broadcast %406 : vector<1x256xf32> to vector<8x256xf32>
    %409 = arith.subf %407, %408 : vector<8x256xf32>
    %410 = math.absf %409 : vector<8x256xf32>
    %411 = arith.addf %404, %410 : vector<8x256xf32>
    %412 = vector.extract_strided_slice %3 {offsets = [0, 58], sizes = [8, 1], strides = [1, 1]} : vector<8x128xf32> to vector<8x1xf32>
    %413 = vector.extract_strided_slice %4 {offsets = [58, 0], sizes = [1, 256], strides = [1, 1]} : vector<128x256xf32> to vector<1x256xf32>
    %414 = vector.broadcast %412 : vector<8x1xf32> to vector<8x256xf32>
    %415 = vector.broadcast %413 : vector<1x256xf32> to vector<8x256xf32>
    %416 = arith.subf %414, %415 : vector<8x256xf32>
    %417 = math.absf %416 : vector<8x256xf32>
    %418 = arith.addf %411, %417 : vector<8x256xf32>
    %419 = vector.extract_strided_slice %3 {offsets = [0, 59], sizes = [8, 1], strides = [1, 1]} : vector<8x128xf32> to vector<8x1xf32>
    %420 = vector.extract_strided_slice %4 {offsets = [59, 0], sizes = [1, 256], strides = [1, 1]} : vector<128x256xf32> to vector<1x256xf32>
    %421 = vector.broadcast %419 : vector<8x1xf32> to vector<8x256xf32>
    %422 = vector.broadcast %420 : vector<1x256xf32> to vector<8x256xf32>
    %423 = arith.subf %421, %422 : vector<8x256xf32>
    %424 = math.absf %423 : vector<8x256xf32>
    %425 = arith.addf %418, %424 : vector<8x256xf32>
    %426 = vector.extract_strided_slice %3 {offsets = [0, 60], sizes = [8, 1], strides = [1, 1]} : vector<8x128xf32> to vector<8x1xf32>
    %427 = vector.extract_strided_slice %4 {offsets = [60, 0], sizes = [1, 256], strides = [1, 1]} : vector<128x256xf32> to vector<1x256xf32>
    %428 = vector.broadcast %426 : vector<8x1xf32> to vector<8x256xf32>
    %429 = vector.broadcast %427 : vector<1x256xf32> to vector<8x256xf32>
    %430 = arith.subf %428, %429 : vector<8x256xf32>
    %431 = math.absf %430 : vector<8x256xf32>
    %432 = arith.addf %425, %431 : vector<8x256xf32>
    %433 = vector.extract_strided_slice %3 {offsets = [0, 61], sizes = [8, 1], strides = [1, 1]} : vector<8x128xf32> to vector<8x1xf32>
    %434 = vector.extract_strided_slice %4 {offsets = [61, 0], sizes = [1, 256], strides = [1, 1]} : vector<128x256xf32> to vector<1x256xf32>
    %435 = vector.broadcast %433 : vector<8x1xf32> to vector<8x256xf32>
    %436 = vector.broadcast %434 : vector<1x256xf32> to vector<8x256xf32>
    %437 = arith.subf %435, %436 : vector<8x256xf32>
    %438 = math.absf %437 : vector<8x256xf32>
    %439 = arith.addf %432, %438 : vector<8x256xf32>
    %440 = vector.extract_strided_slice %3 {offsets = [0, 62], sizes = [8, 1], strides = [1, 1]} : vector<8x128xf32> to vector<8x1xf32>
    %441 = vector.extract_strided_slice %4 {offsets = [62, 0], sizes = [1, 256], strides = [1, 1]} : vector<128x256xf32> to vector<1x256xf32>
    %442 = vector.broadcast %440 : vector<8x1xf32> to vector<8x256xf32>
    %443 = vector.broadcast %441 : vector<1x256xf32> to vector<8x256xf32>
    %444 = arith.subf %442, %443 : vector<8x256xf32>
    %445 = math.absf %444 : vector<8x256xf32>
    %446 = arith.addf %439, %445 : vector<8x256xf32>
    %447 = vector.extract_strided_slice %3 {offsets = [0, 63], sizes = [8, 1], strides = [1, 1]} : vector<8x128xf32> to vector<8x1xf32>
    %448 = vector.extract_strided_slice %4 {offsets = [63, 0], sizes = [1, 256], strides = [1, 1]} : vector<128x256xf32> to vector<1x256xf32>
    %449 = vector.broadcast %447 : vector<8x1xf32> to vector<8x256xf32>
    %450 = vector.broadcast %448 : vector<1x256xf32> to vector<8x256xf32>
    %451 = arith.subf %449, %450 : vector<8x256xf32>
    %452 = math.absf %451 : vector<8x256xf32>
    %453 = arith.addf %446, %452 : vector<8x256xf32>
    %454 = vector.extract_strided_slice %3 {offsets = [0, 64], sizes = [8, 1], strides = [1, 1]} : vector<8x128xf32> to vector<8x1xf32>
    %455 = vector.extract_strided_slice %4 {offsets = [64, 0], sizes = [1, 256], strides = [1, 1]} : vector<128x256xf32> to vector<1x256xf32>
    %456 = vector.broadcast %454 : vector<8x1xf32> to vector<8x256xf32>
    %457 = vector.broadcast %455 : vector<1x256xf32> to vector<8x256xf32>
    %458 = arith.subf %456, %457 : vector<8x256xf32>
    %459 = math.absf %458 : vector<8x256xf32>
    %460 = arith.addf %453, %459 : vector<8x256xf32>
    %461 = vector.extract_strided_slice %3 {offsets = [0, 65], sizes = [8, 1], strides = [1, 1]} : vector<8x128xf32> to vector<8x1xf32>
    %462 = vector.extract_strided_slice %4 {offsets = [65, 0], sizes = [1, 256], strides = [1, 1]} : vector<128x256xf32> to vector<1x256xf32>
    %463 = vector.broadcast %461 : vector<8x1xf32> to vector<8x256xf32>
    %464 = vector.broadcast %462 : vector<1x256xf32> to vector<8x256xf32>
    %465 = arith.subf %463, %464 : vector<8x256xf32>
    %466 = math.absf %465 : vector<8x256xf32>
    %467 = arith.addf %460, %466 : vector<8x256xf32>
    %468 = vector.extract_strided_slice %3 {offsets = [0, 66], sizes = [8, 1], strides = [1, 1]} : vector<8x128xf32> to vector<8x1xf32>
    %469 = vector.extract_strided_slice %4 {offsets = [66, 0], sizes = [1, 256], strides = [1, 1]} : vector<128x256xf32> to vector<1x256xf32>
    %470 = vector.broadcast %468 : vector<8x1xf32> to vector<8x256xf32>
    %471 = vector.broadcast %469 : vector<1x256xf32> to vector<8x256xf32>
    %472 = arith.subf %470, %471 : vector<8x256xf32>
    %473 = math.absf %472 : vector<8x256xf32>
    %474 = arith.addf %467, %473 : vector<8x256xf32>
    %475 = vector.extract_strided_slice %3 {offsets = [0, 67], sizes = [8, 1], strides = [1, 1]} : vector<8x128xf32> to vector<8x1xf32>
    %476 = vector.extract_strided_slice %4 {offsets = [67, 0], sizes = [1, 256], strides = [1, 1]} : vector<128x256xf32> to vector<1x256xf32>
    %477 = vector.broadcast %475 : vector<8x1xf32> to vector<8x256xf32>
    %478 = vector.broadcast %476 : vector<1x256xf32> to vector<8x256xf32>
    %479 = arith.subf %477, %478 : vector<8x256xf32>
    %480 = math.absf %479 : vector<8x256xf32>
    %481 = arith.addf %474, %480 : vector<8x256xf32>
    %482 = vector.extract_strided_slice %3 {offsets = [0, 68], sizes = [8, 1], strides = [1, 1]} : vector<8x128xf32> to vector<8x1xf32>
    %483 = vector.extract_strided_slice %4 {offsets = [68, 0], sizes = [1, 256], strides = [1, 1]} : vector<128x256xf32> to vector<1x256xf32>
    %484 = vector.broadcast %482 : vector<8x1xf32> to vector<8x256xf32>
    %485 = vector.broadcast %483 : vector<1x256xf32> to vector<8x256xf32>
    %486 = arith.subf %484, %485 : vector<8x256xf32>
    %487 = math.absf %486 : vector<8x256xf32>
    %488 = arith.addf %481, %487 : vector<8x256xf32>
    %489 = vector.extract_strided_slice %3 {offsets = [0, 69], sizes = [8, 1], strides = [1, 1]} : vector<8x128xf32> to vector<8x1xf32>
    %490 = vector.extract_strided_slice %4 {offsets = [69, 0], sizes = [1, 256], strides = [1, 1]} : vector<128x256xf32> to vector<1x256xf32>
    %491 = vector.broadcast %489 : vector<8x1xf32> to vector<8x256xf32>
    %492 = vector.broadcast %490 : vector<1x256xf32> to vector<8x256xf32>
    %493 = arith.subf %491, %492 : vector<8x256xf32>
    %494 = math.absf %493 : vector<8x256xf32>
    %495 = arith.addf %488, %494 : vector<8x256xf32>
    %496 = vector.extract_strided_slice %3 {offsets = [0, 70], sizes = [8, 1], strides = [1, 1]} : vector<8x128xf32> to vector<8x1xf32>
    %497 = vector.extract_strided_slice %4 {offsets = [70, 0], sizes = [1, 256], strides = [1, 1]} : vector<128x256xf32> to vector<1x256xf32>
    %498 = vector.broadcast %496 : vector<8x1xf32> to vector<8x256xf32>
    %499 = vector.broadcast %497 : vector<1x256xf32> to vector<8x256xf32>
    %500 = arith.subf %498, %499 : vector<8x256xf32>
    %501 = math.absf %500 : vector<8x256xf32>
    %502 = arith.addf %495, %501 : vector<8x256xf32>
    %503 = vector.extract_strided_slice %3 {offsets = [0, 71], sizes = [8, 1], strides = [1, 1]} : vector<8x128xf32> to vector<8x1xf32>
    %504 = vector.extract_strided_slice %4 {offsets = [71, 0], sizes = [1, 256], strides = [1, 1]} : vector<128x256xf32> to vector<1x256xf32>
    %505 = vector.broadcast %503 : vector<8x1xf32> to vector<8x256xf32>
    %506 = vector.broadcast %504 : vector<1x256xf32> to vector<8x256xf32>
    %507 = arith.subf %505, %506 : vector<8x256xf32>
    %508 = math.absf %507 : vector<8x256xf32>
    %509 = arith.addf %502, %508 : vector<8x256xf32>
    %510 = vector.extract_strided_slice %3 {offsets = [0, 72], sizes = [8, 1], strides = [1, 1]} : vector<8x128xf32> to vector<8x1xf32>
    %511 = vector.extract_strided_slice %4 {offsets = [72, 0], sizes = [1, 256], strides = [1, 1]} : vector<128x256xf32> to vector<1x256xf32>
    %512 = vector.broadcast %510 : vector<8x1xf32> to vector<8x256xf32>
    %513 = vector.broadcast %511 : vector<1x256xf32> to vector<8x256xf32>
    %514 = arith.subf %512, %513 : vector<8x256xf32>
    %515 = math.absf %514 : vector<8x256xf32>
    %516 = arith.addf %509, %515 : vector<8x256xf32>
    %517 = vector.extract_strided_slice %3 {offsets = [0, 73], sizes = [8, 1], strides = [1, 1]} : vector<8x128xf32> to vector<8x1xf32>
    %518 = vector.extract_strided_slice %4 {offsets = [73, 0], sizes = [1, 256], strides = [1, 1]} : vector<128x256xf32> to vector<1x256xf32>
    %519 = vector.broadcast %517 : vector<8x1xf32> to vector<8x256xf32>
    %520 = vector.broadcast %518 : vector<1x256xf32> to vector<8x256xf32>
    %521 = arith.subf %519, %520 : vector<8x256xf32>
    %522 = math.absf %521 : vector<8x256xf32>
    %523 = arith.addf %516, %522 : vector<8x256xf32>
    %524 = vector.extract_strided_slice %3 {offsets = [0, 74], sizes = [8, 1], strides = [1, 1]} : vector<8x128xf32> to vector<8x1xf32>
    %525 = vector.extract_strided_slice %4 {offsets = [74, 0], sizes = [1, 256], strides = [1, 1]} : vector<128x256xf32> to vector<1x256xf32>
    %526 = vector.broadcast %524 : vector<8x1xf32> to vector<8x256xf32>
    %527 = vector.broadcast %525 : vector<1x256xf32> to vector<8x256xf32>
    %528 = arith.subf %526, %527 : vector<8x256xf32>
    %529 = math.absf %528 : vector<8x256xf32>
    %530 = arith.addf %523, %529 : vector<8x256xf32>
    %531 = vector.extract_strided_slice %3 {offsets = [0, 75], sizes = [8, 1], strides = [1, 1]} : vector<8x128xf32> to vector<8x1xf32>
    %532 = vector.extract_strided_slice %4 {offsets = [75, 0], sizes = [1, 256], strides = [1, 1]} : vector<128x256xf32> to vector<1x256xf32>
    %533 = vector.broadcast %531 : vector<8x1xf32> to vector<8x256xf32>
    %534 = vector.broadcast %532 : vector<1x256xf32> to vector<8x256xf32>
    %535 = arith.subf %533, %534 : vector<8x256xf32>
    %536 = math.absf %535 : vector<8x256xf32>
    %537 = arith.addf %530, %536 : vector<8x256xf32>
    %538 = vector.extract_strided_slice %3 {offsets = [0, 76], sizes = [8, 1], strides = [1, 1]} : vector<8x128xf32> to vector<8x1xf32>
    %539 = vector.extract_strided_slice %4 {offsets = [76, 0], sizes = [1, 256], strides = [1, 1]} : vector<128x256xf32> to vector<1x256xf32>
    %540 = vector.broadcast %538 : vector<8x1xf32> to vector<8x256xf32>
    %541 = vector.broadcast %539 : vector<1x256xf32> to vector<8x256xf32>
    %542 = arith.subf %540, %541 : vector<8x256xf32>
    %543 = math.absf %542 : vector<8x256xf32>
    %544 = arith.addf %537, %543 : vector<8x256xf32>
    %545 = vector.extract_strided_slice %3 {offsets = [0, 77], sizes = [8, 1], strides = [1, 1]} : vector<8x128xf32> to vector<8x1xf32>
    %546 = vector.extract_strided_slice %4 {offsets = [77, 0], sizes = [1, 256], strides = [1, 1]} : vector<128x256xf32> to vector<1x256xf32>
    %547 = vector.broadcast %545 : vector<8x1xf32> to vector<8x256xf32>
    %548 = vector.broadcast %546 : vector<1x256xf32> to vector<8x256xf32>
    %549 = arith.subf %547, %548 : vector<8x256xf32>
    %550 = math.absf %549 : vector<8x256xf32>
    %551 = arith.addf %544, %550 : vector<8x256xf32>
    %552 = vector.extract_strided_slice %3 {offsets = [0, 78], sizes = [8, 1], strides = [1, 1]} : vector<8x128xf32> to vector<8x1xf32>
    %553 = vector.extract_strided_slice %4 {offsets = [78, 0], sizes = [1, 256], strides = [1, 1]} : vector<128x256xf32> to vector<1x256xf32>
    %554 = vector.broadcast %552 : vector<8x1xf32> to vector<8x256xf32>
    %555 = vector.broadcast %553 : vector<1x256xf32> to vector<8x256xf32>
    %556 = arith.subf %554, %555 : vector<8x256xf32>
    %557 = math.absf %556 : vector<8x256xf32>
    %558 = arith.addf %551, %557 : vector<8x256xf32>
    %559 = vector.extract_strided_slice %3 {offsets = [0, 79], sizes = [8, 1], strides = [1, 1]} : vector<8x128xf32> to vector<8x1xf32>
    %560 = vector.extract_strided_slice %4 {offsets = [79, 0], sizes = [1, 256], strides = [1, 1]} : vector<128x256xf32> to vector<1x256xf32>
    %561 = vector.broadcast %559 : vector<8x1xf32> to vector<8x256xf32>
    %562 = vector.broadcast %560 : vector<1x256xf32> to vector<8x256xf32>
    %563 = arith.subf %561, %562 : vector<8x256xf32>
    %564 = math.absf %563 : vector<8x256xf32>
    %565 = arith.addf %558, %564 : vector<8x256xf32>
    %566 = vector.extract_strided_slice %3 {offsets = [0, 80], sizes = [8, 1], strides = [1, 1]} : vector<8x128xf32> to vector<8x1xf32>
    %567 = vector.extract_strided_slice %4 {offsets = [80, 0], sizes = [1, 256], strides = [1, 1]} : vector<128x256xf32> to vector<1x256xf32>
    %568 = vector.broadcast %566 : vector<8x1xf32> to vector<8x256xf32>
    %569 = vector.broadcast %567 : vector<1x256xf32> to vector<8x256xf32>
    %570 = arith.subf %568, %569 : vector<8x256xf32>
    %571 = math.absf %570 : vector<8x256xf32>
    %572 = arith.addf %565, %571 : vector<8x256xf32>
    %573 = vector.extract_strided_slice %3 {offsets = [0, 81], sizes = [8, 1], strides = [1, 1]} : vector<8x128xf32> to vector<8x1xf32>
    %574 = vector.extract_strided_slice %4 {offsets = [81, 0], sizes = [1, 256], strides = [1, 1]} : vector<128x256xf32> to vector<1x256xf32>
    %575 = vector.broadcast %573 : vector<8x1xf32> to vector<8x256xf32>
    %576 = vector.broadcast %574 : vector<1x256xf32> to vector<8x256xf32>
    %577 = arith.subf %575, %576 : vector<8x256xf32>
    %578 = math.absf %577 : vector<8x256xf32>
    %579 = arith.addf %572, %578 : vector<8x256xf32>
    %580 = vector.extract_strided_slice %3 {offsets = [0, 82], sizes = [8, 1], strides = [1, 1]} : vector<8x128xf32> to vector<8x1xf32>
    %581 = vector.extract_strided_slice %4 {offsets = [82, 0], sizes = [1, 256], strides = [1, 1]} : vector<128x256xf32> to vector<1x256xf32>
    %582 = vector.broadcast %580 : vector<8x1xf32> to vector<8x256xf32>
    %583 = vector.broadcast %581 : vector<1x256xf32> to vector<8x256xf32>
    %584 = arith.subf %582, %583 : vector<8x256xf32>
    %585 = math.absf %584 : vector<8x256xf32>
    %586 = arith.addf %579, %585 : vector<8x256xf32>
    %587 = vector.extract_strided_slice %3 {offsets = [0, 83], sizes = [8, 1], strides = [1, 1]} : vector<8x128xf32> to vector<8x1xf32>
    %588 = vector.extract_strided_slice %4 {offsets = [83, 0], sizes = [1, 256], strides = [1, 1]} : vector<128x256xf32> to vector<1x256xf32>
    %589 = vector.broadcast %587 : vector<8x1xf32> to vector<8x256xf32>
    %590 = vector.broadcast %588 : vector<1x256xf32> to vector<8x256xf32>
    %591 = arith.subf %589, %590 : vector<8x256xf32>
    %592 = math.absf %591 : vector<8x256xf32>
    %593 = arith.addf %586, %592 : vector<8x256xf32>
    %594 = vector.extract_strided_slice %3 {offsets = [0, 84], sizes = [8, 1], strides = [1, 1]} : vector<8x128xf32> to vector<8x1xf32>
    %595 = vector.extract_strided_slice %4 {offsets = [84, 0], sizes = [1, 256], strides = [1, 1]} : vector<128x256xf32> to vector<1x256xf32>
    %596 = vector.broadcast %594 : vector<8x1xf32> to vector<8x256xf32>
    %597 = vector.broadcast %595 : vector<1x256xf32> to vector<8x256xf32>
    %598 = arith.subf %596, %597 : vector<8x256xf32>
    %599 = math.absf %598 : vector<8x256xf32>
    %600 = arith.addf %593, %599 : vector<8x256xf32>
    %601 = vector.extract_strided_slice %3 {offsets = [0, 85], sizes = [8, 1], strides = [1, 1]} : vector<8x128xf32> to vector<8x1xf32>
    %602 = vector.extract_strided_slice %4 {offsets = [85, 0], sizes = [1, 256], strides = [1, 1]} : vector<128x256xf32> to vector<1x256xf32>
    %603 = vector.broadcast %601 : vector<8x1xf32> to vector<8x256xf32>
    %604 = vector.broadcast %602 : vector<1x256xf32> to vector<8x256xf32>
    %605 = arith.subf %603, %604 : vector<8x256xf32>
    %606 = math.absf %605 : vector<8x256xf32>
    %607 = arith.addf %600, %606 : vector<8x256xf32>
    %608 = vector.extract_strided_slice %3 {offsets = [0, 86], sizes = [8, 1], strides = [1, 1]} : vector<8x128xf32> to vector<8x1xf32>
    %609 = vector.extract_strided_slice %4 {offsets = [86, 0], sizes = [1, 256], strides = [1, 1]} : vector<128x256xf32> to vector<1x256xf32>
    %610 = vector.broadcast %608 : vector<8x1xf32> to vector<8x256xf32>
    %611 = vector.broadcast %609 : vector<1x256xf32> to vector<8x256xf32>
    %612 = arith.subf %610, %611 : vector<8x256xf32>
    %613 = math.absf %612 : vector<8x256xf32>
    %614 = arith.addf %607, %613 : vector<8x256xf32>
    %615 = vector.extract_strided_slice %3 {offsets = [0, 87], sizes = [8, 1], strides = [1, 1]} : vector<8x128xf32> to vector<8x1xf32>
    %616 = vector.extract_strided_slice %4 {offsets = [87, 0], sizes = [1, 256], strides = [1, 1]} : vector<128x256xf32> to vector<1x256xf32>
    %617 = vector.broadcast %615 : vector<8x1xf32> to vector<8x256xf32>
    %618 = vector.broadcast %616 : vector<1x256xf32> to vector<8x256xf32>
    %619 = arith.subf %617, %618 : vector<8x256xf32>
    %620 = math.absf %619 : vector<8x256xf32>
    %621 = arith.addf %614, %620 : vector<8x256xf32>
    %622 = vector.extract_strided_slice %3 {offsets = [0, 88], sizes = [8, 1], strides = [1, 1]} : vector<8x128xf32> to vector<8x1xf32>
    %623 = vector.extract_strided_slice %4 {offsets = [88, 0], sizes = [1, 256], strides = [1, 1]} : vector<128x256xf32> to vector<1x256xf32>
    %624 = vector.broadcast %622 : vector<8x1xf32> to vector<8x256xf32>
    %625 = vector.broadcast %623 : vector<1x256xf32> to vector<8x256xf32>
    %626 = arith.subf %624, %625 : vector<8x256xf32>
    %627 = math.absf %626 : vector<8x256xf32>
    %628 = arith.addf %621, %627 : vector<8x256xf32>
    %629 = vector.extract_strided_slice %3 {offsets = [0, 89], sizes = [8, 1], strides = [1, 1]} : vector<8x128xf32> to vector<8x1xf32>
    %630 = vector.extract_strided_slice %4 {offsets = [89, 0], sizes = [1, 256], strides = [1, 1]} : vector<128x256xf32> to vector<1x256xf32>
    %631 = vector.broadcast %629 : vector<8x1xf32> to vector<8x256xf32>
    %632 = vector.broadcast %630 : vector<1x256xf32> to vector<8x256xf32>
    %633 = arith.subf %631, %632 : vector<8x256xf32>
    %634 = math.absf %633 : vector<8x256xf32>
    %635 = arith.addf %628, %634 : vector<8x256xf32>
    %636 = vector.extract_strided_slice %3 {offsets = [0, 90], sizes = [8, 1], strides = [1, 1]} : vector<8x128xf32> to vector<8x1xf32>
    %637 = vector.extract_strided_slice %4 {offsets = [90, 0], sizes = [1, 256], strides = [1, 1]} : vector<128x256xf32> to vector<1x256xf32>
    %638 = vector.broadcast %636 : vector<8x1xf32> to vector<8x256xf32>
    %639 = vector.broadcast %637 : vector<1x256xf32> to vector<8x256xf32>
    %640 = arith.subf %638, %639 : vector<8x256xf32>
    %641 = math.absf %640 : vector<8x256xf32>
    %642 = arith.addf %635, %641 : vector<8x256xf32>
    %643 = vector.extract_strided_slice %3 {offsets = [0, 91], sizes = [8, 1], strides = [1, 1]} : vector<8x128xf32> to vector<8x1xf32>
    %644 = vector.extract_strided_slice %4 {offsets = [91, 0], sizes = [1, 256], strides = [1, 1]} : vector<128x256xf32> to vector<1x256xf32>
    %645 = vector.broadcast %643 : vector<8x1xf32> to vector<8x256xf32>
    %646 = vector.broadcast %644 : vector<1x256xf32> to vector<8x256xf32>
    %647 = arith.subf %645, %646 : vector<8x256xf32>
    %648 = math.absf %647 : vector<8x256xf32>
    %649 = arith.addf %642, %648 : vector<8x256xf32>
    %650 = vector.extract_strided_slice %3 {offsets = [0, 92], sizes = [8, 1], strides = [1, 1]} : vector<8x128xf32> to vector<8x1xf32>
    %651 = vector.extract_strided_slice %4 {offsets = [92, 0], sizes = [1, 256], strides = [1, 1]} : vector<128x256xf32> to vector<1x256xf32>
    %652 = vector.broadcast %650 : vector<8x1xf32> to vector<8x256xf32>
    %653 = vector.broadcast %651 : vector<1x256xf32> to vector<8x256xf32>
    %654 = arith.subf %652, %653 : vector<8x256xf32>
    %655 = math.absf %654 : vector<8x256xf32>
    %656 = arith.addf %649, %655 : vector<8x256xf32>
    %657 = vector.extract_strided_slice %3 {offsets = [0, 93], sizes = [8, 1], strides = [1, 1]} : vector<8x128xf32> to vector<8x1xf32>
    %658 = vector.extract_strided_slice %4 {offsets = [93, 0], sizes = [1, 256], strides = [1, 1]} : vector<128x256xf32> to vector<1x256xf32>
    %659 = vector.broadcast %657 : vector<8x1xf32> to vector<8x256xf32>
    %660 = vector.broadcast %658 : vector<1x256xf32> to vector<8x256xf32>
    %661 = arith.subf %659, %660 : vector<8x256xf32>
    %662 = math.absf %661 : vector<8x256xf32>
    %663 = arith.addf %656, %662 : vector<8x256xf32>
    %664 = vector.extract_strided_slice %3 {offsets = [0, 94], sizes = [8, 1], strides = [1, 1]} : vector<8x128xf32> to vector<8x1xf32>
    %665 = vector.extract_strided_slice %4 {offsets = [94, 0], sizes = [1, 256], strides = [1, 1]} : vector<128x256xf32> to vector<1x256xf32>
    %666 = vector.broadcast %664 : vector<8x1xf32> to vector<8x256xf32>
    %667 = vector.broadcast %665 : vector<1x256xf32> to vector<8x256xf32>
    %668 = arith.subf %666, %667 : vector<8x256xf32>
    %669 = math.absf %668 : vector<8x256xf32>
    %670 = arith.addf %663, %669 : vector<8x256xf32>
    %671 = vector.extract_strided_slice %3 {offsets = [0, 95], sizes = [8, 1], strides = [1, 1]} : vector<8x128xf32> to vector<8x1xf32>
    %672 = vector.extract_strided_slice %4 {offsets = [95, 0], sizes = [1, 256], strides = [1, 1]} : vector<128x256xf32> to vector<1x256xf32>
    %673 = vector.broadcast %671 : vector<8x1xf32> to vector<8x256xf32>
    %674 = vector.broadcast %672 : vector<1x256xf32> to vector<8x256xf32>
    %675 = arith.subf %673, %674 : vector<8x256xf32>
    %676 = math.absf %675 : vector<8x256xf32>
    %677 = arith.addf %670, %676 : vector<8x256xf32>
    %678 = vector.extract_strided_slice %3 {offsets = [0, 96], sizes = [8, 1], strides = [1, 1]} : vector<8x128xf32> to vector<8x1xf32>
    %679 = vector.extract_strided_slice %4 {offsets = [96, 0], sizes = [1, 256], strides = [1, 1]} : vector<128x256xf32> to vector<1x256xf32>
    %680 = vector.broadcast %678 : vector<8x1xf32> to vector<8x256xf32>
    %681 = vector.broadcast %679 : vector<1x256xf32> to vector<8x256xf32>
    %682 = arith.subf %680, %681 : vector<8x256xf32>
    %683 = math.absf %682 : vector<8x256xf32>
    %684 = arith.addf %677, %683 : vector<8x256xf32>
    %685 = vector.extract_strided_slice %3 {offsets = [0, 97], sizes = [8, 1], strides = [1, 1]} : vector<8x128xf32> to vector<8x1xf32>
    %686 = vector.extract_strided_slice %4 {offsets = [97, 0], sizes = [1, 256], strides = [1, 1]} : vector<128x256xf32> to vector<1x256xf32>
    %687 = vector.broadcast %685 : vector<8x1xf32> to vector<8x256xf32>
    %688 = vector.broadcast %686 : vector<1x256xf32> to vector<8x256xf32>
    %689 = arith.subf %687, %688 : vector<8x256xf32>
    %690 = math.absf %689 : vector<8x256xf32>
    %691 = arith.addf %684, %690 : vector<8x256xf32>
    %692 = vector.extract_strided_slice %3 {offsets = [0, 98], sizes = [8, 1], strides = [1, 1]} : vector<8x128xf32> to vector<8x1xf32>
    %693 = vector.extract_strided_slice %4 {offsets = [98, 0], sizes = [1, 256], strides = [1, 1]} : vector<128x256xf32> to vector<1x256xf32>
    %694 = vector.broadcast %692 : vector<8x1xf32> to vector<8x256xf32>
    %695 = vector.broadcast %693 : vector<1x256xf32> to vector<8x256xf32>
    %696 = arith.subf %694, %695 : vector<8x256xf32>
    %697 = math.absf %696 : vector<8x256xf32>
    %698 = arith.addf %691, %697 : vector<8x256xf32>
    %699 = vector.extract_strided_slice %3 {offsets = [0, 99], sizes = [8, 1], strides = [1, 1]} : vector<8x128xf32> to vector<8x1xf32>
    %700 = vector.extract_strided_slice %4 {offsets = [99, 0], sizes = [1, 256], strides = [1, 1]} : vector<128x256xf32> to vector<1x256xf32>
    %701 = vector.broadcast %699 : vector<8x1xf32> to vector<8x256xf32>
    %702 = vector.broadcast %700 : vector<1x256xf32> to vector<8x256xf32>
    %703 = arith.subf %701, %702 : vector<8x256xf32>
    %704 = math.absf %703 : vector<8x256xf32>
    %705 = arith.addf %698, %704 : vector<8x256xf32>
    %706 = vector.extract_strided_slice %3 {offsets = [0, 100], sizes = [8, 1], strides = [1, 1]} : vector<8x128xf32> to vector<8x1xf32>
    %707 = vector.extract_strided_slice %4 {offsets = [100, 0], sizes = [1, 256], strides = [1, 1]} : vector<128x256xf32> to vector<1x256xf32>
    %708 = vector.broadcast %706 : vector<8x1xf32> to vector<8x256xf32>
    %709 = vector.broadcast %707 : vector<1x256xf32> to vector<8x256xf32>
    %710 = arith.subf %708, %709 : vector<8x256xf32>
    %711 = math.absf %710 : vector<8x256xf32>
    %712 = arith.addf %705, %711 : vector<8x256xf32>
    %713 = vector.extract_strided_slice %3 {offsets = [0, 101], sizes = [8, 1], strides = [1, 1]} : vector<8x128xf32> to vector<8x1xf32>
    %714 = vector.extract_strided_slice %4 {offsets = [101, 0], sizes = [1, 256], strides = [1, 1]} : vector<128x256xf32> to vector<1x256xf32>
    %715 = vector.broadcast %713 : vector<8x1xf32> to vector<8x256xf32>
    %716 = vector.broadcast %714 : vector<1x256xf32> to vector<8x256xf32>
    %717 = arith.subf %715, %716 : vector<8x256xf32>
    %718 = math.absf %717 : vector<8x256xf32>
    %719 = arith.addf %712, %718 : vector<8x256xf32>
    %720 = vector.extract_strided_slice %3 {offsets = [0, 102], sizes = [8, 1], strides = [1, 1]} : vector<8x128xf32> to vector<8x1xf32>
    %721 = vector.extract_strided_slice %4 {offsets = [102, 0], sizes = [1, 256], strides = [1, 1]} : vector<128x256xf32> to vector<1x256xf32>
    %722 = vector.broadcast %720 : vector<8x1xf32> to vector<8x256xf32>
    %723 = vector.broadcast %721 : vector<1x256xf32> to vector<8x256xf32>
    %724 = arith.subf %722, %723 : vector<8x256xf32>
    %725 = math.absf %724 : vector<8x256xf32>
    %726 = arith.addf %719, %725 : vector<8x256xf32>
    %727 = vector.extract_strided_slice %3 {offsets = [0, 103], sizes = [8, 1], strides = [1, 1]} : vector<8x128xf32> to vector<8x1xf32>
    %728 = vector.extract_strided_slice %4 {offsets = [103, 0], sizes = [1, 256], strides = [1, 1]} : vector<128x256xf32> to vector<1x256xf32>
    %729 = vector.broadcast %727 : vector<8x1xf32> to vector<8x256xf32>
    %730 = vector.broadcast %728 : vector<1x256xf32> to vector<8x256xf32>
    %731 = arith.subf %729, %730 : vector<8x256xf32>
    %732 = math.absf %731 : vector<8x256xf32>
    %733 = arith.addf %726, %732 : vector<8x256xf32>
    %734 = vector.extract_strided_slice %3 {offsets = [0, 104], sizes = [8, 1], strides = [1, 1]} : vector<8x128xf32> to vector<8x1xf32>
    %735 = vector.extract_strided_slice %4 {offsets = [104, 0], sizes = [1, 256], strides = [1, 1]} : vector<128x256xf32> to vector<1x256xf32>
    %736 = vector.broadcast %734 : vector<8x1xf32> to vector<8x256xf32>
    %737 = vector.broadcast %735 : vector<1x256xf32> to vector<8x256xf32>
    %738 = arith.subf %736, %737 : vector<8x256xf32>
    %739 = math.absf %738 : vector<8x256xf32>
    %740 = arith.addf %733, %739 : vector<8x256xf32>
    %741 = vector.extract_strided_slice %3 {offsets = [0, 105], sizes = [8, 1], strides = [1, 1]} : vector<8x128xf32> to vector<8x1xf32>
    %742 = vector.extract_strided_slice %4 {offsets = [105, 0], sizes = [1, 256], strides = [1, 1]} : vector<128x256xf32> to vector<1x256xf32>
    %743 = vector.broadcast %741 : vector<8x1xf32> to vector<8x256xf32>
    %744 = vector.broadcast %742 : vector<1x256xf32> to vector<8x256xf32>
    %745 = arith.subf %743, %744 : vector<8x256xf32>
    %746 = math.absf %745 : vector<8x256xf32>
    %747 = arith.addf %740, %746 : vector<8x256xf32>
    %748 = vector.extract_strided_slice %3 {offsets = [0, 106], sizes = [8, 1], strides = [1, 1]} : vector<8x128xf32> to vector<8x1xf32>
    %749 = vector.extract_strided_slice %4 {offsets = [106, 0], sizes = [1, 256], strides = [1, 1]} : vector<128x256xf32> to vector<1x256xf32>
    %750 = vector.broadcast %748 : vector<8x1xf32> to vector<8x256xf32>
    %751 = vector.broadcast %749 : vector<1x256xf32> to vector<8x256xf32>
    %752 = arith.subf %750, %751 : vector<8x256xf32>
    %753 = math.absf %752 : vector<8x256xf32>
    %754 = arith.addf %747, %753 : vector<8x256xf32>
    %755 = vector.extract_strided_slice %3 {offsets = [0, 107], sizes = [8, 1], strides = [1, 1]} : vector<8x128xf32> to vector<8x1xf32>
    %756 = vector.extract_strided_slice %4 {offsets = [107, 0], sizes = [1, 256], strides = [1, 1]} : vector<128x256xf32> to vector<1x256xf32>
    %757 = vector.broadcast %755 : vector<8x1xf32> to vector<8x256xf32>
    %758 = vector.broadcast %756 : vector<1x256xf32> to vector<8x256xf32>
    %759 = arith.subf %757, %758 : vector<8x256xf32>
    %760 = math.absf %759 : vector<8x256xf32>
    %761 = arith.addf %754, %760 : vector<8x256xf32>
    %762 = vector.extract_strided_slice %3 {offsets = [0, 108], sizes = [8, 1], strides = [1, 1]} : vector<8x128xf32> to vector<8x1xf32>
    %763 = vector.extract_strided_slice %4 {offsets = [108, 0], sizes = [1, 256], strides = [1, 1]} : vector<128x256xf32> to vector<1x256xf32>
    %764 = vector.broadcast %762 : vector<8x1xf32> to vector<8x256xf32>
    %765 = vector.broadcast %763 : vector<1x256xf32> to vector<8x256xf32>
    %766 = arith.subf %764, %765 : vector<8x256xf32>
    %767 = math.absf %766 : vector<8x256xf32>
    %768 = arith.addf %761, %767 : vector<8x256xf32>
    %769 = vector.extract_strided_slice %3 {offsets = [0, 109], sizes = [8, 1], strides = [1, 1]} : vector<8x128xf32> to vector<8x1xf32>
    %770 = vector.extract_strided_slice %4 {offsets = [109, 0], sizes = [1, 256], strides = [1, 1]} : vector<128x256xf32> to vector<1x256xf32>
    %771 = vector.broadcast %769 : vector<8x1xf32> to vector<8x256xf32>
    %772 = vector.broadcast %770 : vector<1x256xf32> to vector<8x256xf32>
    %773 = arith.subf %771, %772 : vector<8x256xf32>
    %774 = math.absf %773 : vector<8x256xf32>
    %775 = arith.addf %768, %774 : vector<8x256xf32>
    %776 = vector.extract_strided_slice %3 {offsets = [0, 110], sizes = [8, 1], strides = [1, 1]} : vector<8x128xf32> to vector<8x1xf32>
    %777 = vector.extract_strided_slice %4 {offsets = [110, 0], sizes = [1, 256], strides = [1, 1]} : vector<128x256xf32> to vector<1x256xf32>
    %778 = vector.broadcast %776 : vector<8x1xf32> to vector<8x256xf32>
    %779 = vector.broadcast %777 : vector<1x256xf32> to vector<8x256xf32>
    %780 = arith.subf %778, %779 : vector<8x256xf32>
    %781 = math.absf %780 : vector<8x256xf32>
    %782 = arith.addf %775, %781 : vector<8x256xf32>
    %783 = vector.extract_strided_slice %3 {offsets = [0, 111], sizes = [8, 1], strides = [1, 1]} : vector<8x128xf32> to vector<8x1xf32>
    %784 = vector.extract_strided_slice %4 {offsets = [111, 0], sizes = [1, 256], strides = [1, 1]} : vector<128x256xf32> to vector<1x256xf32>
    %785 = vector.broadcast %783 : vector<8x1xf32> to vector<8x256xf32>
    %786 = vector.broadcast %784 : vector<1x256xf32> to vector<8x256xf32>
    %787 = arith.subf %785, %786 : vector<8x256xf32>
    %788 = math.absf %787 : vector<8x256xf32>
    %789 = arith.addf %782, %788 : vector<8x256xf32>
    %790 = vector.extract_strided_slice %3 {offsets = [0, 112], sizes = [8, 1], strides = [1, 1]} : vector<8x128xf32> to vector<8x1xf32>
    %791 = vector.extract_strided_slice %4 {offsets = [112, 0], sizes = [1, 256], strides = [1, 1]} : vector<128x256xf32> to vector<1x256xf32>
    %792 = vector.broadcast %790 : vector<8x1xf32> to vector<8x256xf32>
    %793 = vector.broadcast %791 : vector<1x256xf32> to vector<8x256xf32>
    %794 = arith.subf %792, %793 : vector<8x256xf32>
    %795 = math.absf %794 : vector<8x256xf32>
    %796 = arith.addf %789, %795 : vector<8x256xf32>
    %797 = vector.extract_strided_slice %3 {offsets = [0, 113], sizes = [8, 1], strides = [1, 1]} : vector<8x128xf32> to vector<8x1xf32>
    %798 = vector.extract_strided_slice %4 {offsets = [113, 0], sizes = [1, 256], strides = [1, 1]} : vector<128x256xf32> to vector<1x256xf32>
    %799 = vector.broadcast %797 : vector<8x1xf32> to vector<8x256xf32>
    %800 = vector.broadcast %798 : vector<1x256xf32> to vector<8x256xf32>
    %801 = arith.subf %799, %800 : vector<8x256xf32>
    %802 = math.absf %801 : vector<8x256xf32>
    %803 = arith.addf %796, %802 : vector<8x256xf32>
    %804 = vector.extract_strided_slice %3 {offsets = [0, 114], sizes = [8, 1], strides = [1, 1]} : vector<8x128xf32> to vector<8x1xf32>
    %805 = vector.extract_strided_slice %4 {offsets = [114, 0], sizes = [1, 256], strides = [1, 1]} : vector<128x256xf32> to vector<1x256xf32>
    %806 = vector.broadcast %804 : vector<8x1xf32> to vector<8x256xf32>
    %807 = vector.broadcast %805 : vector<1x256xf32> to vector<8x256xf32>
    %808 = arith.subf %806, %807 : vector<8x256xf32>
    %809 = math.absf %808 : vector<8x256xf32>
    %810 = arith.addf %803, %809 : vector<8x256xf32>
    %811 = vector.extract_strided_slice %3 {offsets = [0, 115], sizes = [8, 1], strides = [1, 1]} : vector<8x128xf32> to vector<8x1xf32>
    %812 = vector.extract_strided_slice %4 {offsets = [115, 0], sizes = [1, 256], strides = [1, 1]} : vector<128x256xf32> to vector<1x256xf32>
    %813 = vector.broadcast %811 : vector<8x1xf32> to vector<8x256xf32>
    %814 = vector.broadcast %812 : vector<1x256xf32> to vector<8x256xf32>
    %815 = arith.subf %813, %814 : vector<8x256xf32>
    %816 = math.absf %815 : vector<8x256xf32>
    %817 = arith.addf %810, %816 : vector<8x256xf32>
    %818 = vector.extract_strided_slice %3 {offsets = [0, 116], sizes = [8, 1], strides = [1, 1]} : vector<8x128xf32> to vector<8x1xf32>
    %819 = vector.extract_strided_slice %4 {offsets = [116, 0], sizes = [1, 256], strides = [1, 1]} : vector<128x256xf32> to vector<1x256xf32>
    %820 = vector.broadcast %818 : vector<8x1xf32> to vector<8x256xf32>
    %821 = vector.broadcast %819 : vector<1x256xf32> to vector<8x256xf32>
    %822 = arith.subf %820, %821 : vector<8x256xf32>
    %823 = math.absf %822 : vector<8x256xf32>
    %824 = arith.addf %817, %823 : vector<8x256xf32>
    %825 = vector.extract_strided_slice %3 {offsets = [0, 117], sizes = [8, 1], strides = [1, 1]} : vector<8x128xf32> to vector<8x1xf32>
    %826 = vector.extract_strided_slice %4 {offsets = [117, 0], sizes = [1, 256], strides = [1, 1]} : vector<128x256xf32> to vector<1x256xf32>
    %827 = vector.broadcast %825 : vector<8x1xf32> to vector<8x256xf32>
    %828 = vector.broadcast %826 : vector<1x256xf32> to vector<8x256xf32>
    %829 = arith.subf %827, %828 : vector<8x256xf32>
    %830 = math.absf %829 : vector<8x256xf32>
    %831 = arith.addf %824, %830 : vector<8x256xf32>
    %832 = vector.extract_strided_slice %3 {offsets = [0, 118], sizes = [8, 1], strides = [1, 1]} : vector<8x128xf32> to vector<8x1xf32>
    %833 = vector.extract_strided_slice %4 {offsets = [118, 0], sizes = [1, 256], strides = [1, 1]} : vector<128x256xf32> to vector<1x256xf32>
    %834 = vector.broadcast %832 : vector<8x1xf32> to vector<8x256xf32>
    %835 = vector.broadcast %833 : vector<1x256xf32> to vector<8x256xf32>
    %836 = arith.subf %834, %835 : vector<8x256xf32>
    %837 = math.absf %836 : vector<8x256xf32>
    %838 = arith.addf %831, %837 : vector<8x256xf32>
    %839 = vector.extract_strided_slice %3 {offsets = [0, 119], sizes = [8, 1], strides = [1, 1]} : vector<8x128xf32> to vector<8x1xf32>
    %840 = vector.extract_strided_slice %4 {offsets = [119, 0], sizes = [1, 256], strides = [1, 1]} : vector<128x256xf32> to vector<1x256xf32>
    %841 = vector.broadcast %839 : vector<8x1xf32> to vector<8x256xf32>
    %842 = vector.broadcast %840 : vector<1x256xf32> to vector<8x256xf32>
    %843 = arith.subf %841, %842 : vector<8x256xf32>
    %844 = math.absf %843 : vector<8x256xf32>
    %845 = arith.addf %838, %844 : vector<8x256xf32>
    %846 = vector.extract_strided_slice %3 {offsets = [0, 120], sizes = [8, 1], strides = [1, 1]} : vector<8x128xf32> to vector<8x1xf32>
    %847 = vector.extract_strided_slice %4 {offsets = [120, 0], sizes = [1, 256], strides = [1, 1]} : vector<128x256xf32> to vector<1x256xf32>
    %848 = vector.broadcast %846 : vector<8x1xf32> to vector<8x256xf32>
    %849 = vector.broadcast %847 : vector<1x256xf32> to vector<8x256xf32>
    %850 = arith.subf %848, %849 : vector<8x256xf32>
    %851 = math.absf %850 : vector<8x256xf32>
    %852 = arith.addf %845, %851 : vector<8x256xf32>
    %853 = vector.extract_strided_slice %3 {offsets = [0, 121], sizes = [8, 1], strides = [1, 1]} : vector<8x128xf32> to vector<8x1xf32>
    %854 = vector.extract_strided_slice %4 {offsets = [121, 0], sizes = [1, 256], strides = [1, 1]} : vector<128x256xf32> to vector<1x256xf32>
    %855 = vector.broadcast %853 : vector<8x1xf32> to vector<8x256xf32>
    %856 = vector.broadcast %854 : vector<1x256xf32> to vector<8x256xf32>
    %857 = arith.subf %855, %856 : vector<8x256xf32>
    %858 = math.absf %857 : vector<8x256xf32>
    %859 = arith.addf %852, %858 : vector<8x256xf32>
    %860 = vector.extract_strided_slice %3 {offsets = [0, 122], sizes = [8, 1], strides = [1, 1]} : vector<8x128xf32> to vector<8x1xf32>
    %861 = vector.extract_strided_slice %4 {offsets = [122, 0], sizes = [1, 256], strides = [1, 1]} : vector<128x256xf32> to vector<1x256xf32>
    %862 = vector.broadcast %860 : vector<8x1xf32> to vector<8x256xf32>
    %863 = vector.broadcast %861 : vector<1x256xf32> to vector<8x256xf32>
    %864 = arith.subf %862, %863 : vector<8x256xf32>
    %865 = math.absf %864 : vector<8x256xf32>
    %866 = arith.addf %859, %865 : vector<8x256xf32>
    %867 = vector.extract_strided_slice %3 {offsets = [0, 123], sizes = [8, 1], strides = [1, 1]} : vector<8x128xf32> to vector<8x1xf32>
    %868 = vector.extract_strided_slice %4 {offsets = [123, 0], sizes = [1, 256], strides = [1, 1]} : vector<128x256xf32> to vector<1x256xf32>
    %869 = vector.broadcast %867 : vector<8x1xf32> to vector<8x256xf32>
    %870 = vector.broadcast %868 : vector<1x256xf32> to vector<8x256xf32>
    %871 = arith.subf %869, %870 : vector<8x256xf32>
    %872 = math.absf %871 : vector<8x256xf32>
    %873 = arith.addf %866, %872 : vector<8x256xf32>
    %874 = vector.extract_strided_slice %3 {offsets = [0, 124], sizes = [8, 1], strides = [1, 1]} : vector<8x128xf32> to vector<8x1xf32>
    %875 = vector.extract_strided_slice %4 {offsets = [124, 0], sizes = [1, 256], strides = [1, 1]} : vector<128x256xf32> to vector<1x256xf32>
    %876 = vector.broadcast %874 : vector<8x1xf32> to vector<8x256xf32>
    %877 = vector.broadcast %875 : vector<1x256xf32> to vector<8x256xf32>
    %878 = arith.subf %876, %877 : vector<8x256xf32>
    %879 = math.absf %878 : vector<8x256xf32>
    %880 = arith.addf %873, %879 : vector<8x256xf32>
    %881 = vector.extract_strided_slice %3 {offsets = [0, 125], sizes = [8, 1], strides = [1, 1]} : vector<8x128xf32> to vector<8x1xf32>
    %882 = vector.extract_strided_slice %4 {offsets = [125, 0], sizes = [1, 256], strides = [1, 1]} : vector<128x256xf32> to vector<1x256xf32>
    %883 = vector.broadcast %881 : vector<8x1xf32> to vector<8x256xf32>
    %884 = vector.broadcast %882 : vector<1x256xf32> to vector<8x256xf32>
    %885 = arith.subf %883, %884 : vector<8x256xf32>
    %886 = math.absf %885 : vector<8x256xf32>
    %887 = arith.addf %880, %886 : vector<8x256xf32>
    %888 = vector.extract_strided_slice %3 {offsets = [0, 126], sizes = [8, 1], strides = [1, 1]} : vector<8x128xf32> to vector<8x1xf32>
    %889 = vector.extract_strided_slice %4 {offsets = [126, 0], sizes = [1, 256], strides = [1, 1]} : vector<128x256xf32> to vector<1x256xf32>
    %890 = vector.broadcast %888 : vector<8x1xf32> to vector<8x256xf32>
    %891 = vector.broadcast %889 : vector<1x256xf32> to vector<8x256xf32>
    %892 = arith.subf %890, %891 : vector<8x256xf32>
    %893 = math.absf %892 : vector<8x256xf32>
    %894 = arith.addf %887, %893 : vector<8x256xf32>
    %895 = vector.extract_strided_slice %3 {offsets = [0, 127], sizes = [8, 1], strides = [1, 1]} : vector<8x128xf32> to vector<8x1xf32>
    %896 = vector.extract_strided_slice %4 {offsets = [127, 0], sizes = [1, 256], strides = [1, 1]} : vector<128x256xf32> to vector<1x256xf32>
    %897 = vector.broadcast %895 : vector<8x1xf32> to vector<8x256xf32>
    %898 = vector.broadcast %896 : vector<1x256xf32> to vector<8x256xf32>
    %899 = arith.subf %897, %898 : vector<8x256xf32>
    %900 = math.absf %899 : vector<8x256xf32>
    %901 = arith.addf %894, %900 : vector<8x256xf32>
    %c0_6 = arith.constant 0 : index
    %c0_7 = arith.constant 0 : index
    %902 = vector.load %arg6[%c0_6, %c0_7] : memref<8x256xf32, #tpu.memory_space<vmem>>, vector<8x256xf32>
    tpu.vector_store %arg6[%c0_6, %c0_7], %901 {strides = array<i32>} : memref<8x256xf32, #tpu.memory_space<vmem>>, vector<8x256xf32>,
    %c1_i32 = arith.constant 1 : i32
    %903 = arith.cmpi eq, %arg2, %c1_i32 : i32
    %904 = arith.extui %903 : i1 to i32
    %c0_i32_8 = arith.constant 0 : i32
    %905 = arith.cmpi ne, %904, %c0_i32_8 : i32
    scf.if %905 {
      %c0_9 = arith.constant 0 : index
      %c0_10 = arith.constant 0 : index
      %906 = vector.load %arg6[%c0_9, %c0_10] : memref<8x256xf32, #tpu.memory_space<vmem>>, vector<8x256xf32>
      %cst = arith.constant 0.000000e+00 : f32
      %907 = vector.broadcast %cst : f32 to vector<8x256xf32>
      %908 = arith.subf %907, %906 : vector<8x256xf32>
      %c0_11 = arith.constant 0 : index
      %c0_12 = arith.constant 0 : index
      %909 = vector.load %arg5[%c0_11, %c0_12] : memref<8x256xf32, #tpu.memory_space<vmem>>, vector<8x256xf32>
      tpu.vector_store %arg5[%c0_11, %c0_12], %908 {strides = array<i32>} : memref<8x256xf32, #tpu.memory_space<vmem>>, vector<8x256xf32>,
    } else {
    }
    return
  }
  func.func @transform_0(%arg0: i32, %arg1: i32, %arg2: i32) -> (i32, i32) {
    %c0_i32 = arith.constant 0 : i32
    return %arg0, %arg2 : i32, i32
  }
  func.func @transform_1(%arg0: i32, %arg1: i32, %arg2: i32) -> (i32, i32) {
    %c0_i32 = arith.constant 0 : i32
    return %arg2, %arg1 : i32, i32
  }
  func.func @transform_2(%arg0: i32, %arg1: i32, %arg2: i32) -> (i32, i32) {
    %c0_i32 = arith.constant 0 : i32
    return %arg0, %arg1 : i32, i32
  }
}

</mosaic_0001>

<bundles_post_ra>
// kernel: adder2d_forward.1
= control target key start
LH: loop header
LB: loop body
LE: loop exit
PB: predicated region body
PF: predicated region fallthrough
CT: control target
= control target key end

     0   :  { %s3338_s9 = smov 0   ;;  %s3340_s10 = smov 0   ;;  %s4304_s0 = inlined_call_operand.vmem [shape: f32[16,256], index: 0, kind: input, shape index: {}]   ;;  %s4305_s1 = inlined_call_operand.vmem [shape: f32[256,512], index: 1, kind: input, shape index: {}]   ;;  %s4306_s2 = inlined_call_operand.vmem [shape: f32[16,512], index: 2, kind: output, shape index: {}]  }
   0x1   :  { %s3342_s11 = smov 0   ;;  %s3344_s12 = smov 0  }
   0x2   :  { %s3346_s13 = smov 0   ;;  %s3348_s14 = smov 0  }
   0x3   :  { %s3350_s15 = smov 0   ;;  %s3352_s16 = smov 0  }
   0x4   :  { %s3354_s17 = smov 0  }
   0x5 LB: > { %s24_s18 = sadd.s32 1, %s3180_s14  ;;  %s27_s19 = sadd.s32 1, %s3184_s15  ;;  %s3192_s17 = sphi %s3354_s17, %s12_s17   ;;  %s3188_s16 = sphi %s3352_s16, %s4314_s16   ;;  %s3184_s15 = sphi %s3350_s15, %s4313_s15   ;;  %s3180_s14 = sphi %s3348_s14, %s4312_s14   ;;  %s3176_s13 = sphi %s3346_s13, %s4311_s13   ;;  %s3172_s12 = sphi %s3344_s12, %s4310_s12   ;;  %s3168_s11 = sphi %s3342_s11, %s4309_s11   ;;  %s3164_s10 = sphi %s3340_s10, %s4308_s10   ;;  %s3160_s9 = sphi %s3338_s9, %s4307_s9  }
   0x6   : > { %p25_p0 = scmp.ge.s32.totalorder %s24_s18, 2  ;;  %p75_p1 = scmp.ne.s32.totalorder %s3164_s10, %s3160_s9 }
   0x7   : > { %p76_p2 = scmp.eq.s32.totalorder %s3192_s17, 0  ;;  %s31_s20 = sadd.s32 1, %s3188_s16 }
   0x8   : > { %s4316_s18 = smov (%p25_p0, %s24_s18), 0  ;;  %s4318_s19 = smov (!%p25_p0, %s27_s19), %s3184_s15 }
   0x9   : > { %p29_p3 = scmp.ge.s32.totalorder %s4318_s19, 2  ;;  %s63_s21 = ssub.s32 %s3180_s14, %s4316_s18 }
   0xa   : > { %p77_p4 = por %p76_p2, %p75_p1  ;;  %s68_s23 = sadd.s32 1, %s3164_s10 }
   0xb   : > { %s4320_s19 = smov (%p29_p3, %s4318_s19), 0  ;;  %s4322_s20 = smov (!%p29_p3, %s31_s20), %s3188_s16 }
   0xc   : > { %s64_s22 = ssub.s32 %s3184_s15, %s4320_s19  ;;  %p33_p5 = scmp.ge.s32.totalorder %s4322_s20, 2 }
   0xd   : > { %s65_s24 = sor.u32 %s64_s22, %s63_s21  ;;  %p2772_p7 = scmp.ge.s32.totalorder %s3192_s17, 8 }
   0xe   : > { %p66_p6 = scmp.eq.s32.totalorder %s65_s24, 0  ;;  %s4324_s20 = smov (%p33_p5, %s4322_s20), 0 }
   0xf   : > { %129 = sbr.rel (%p2772_p7) target bundleno = 45 (0x2d), region = 16 }
  0x10   : > { %s3403_s25 = scalar_select %p66_p6, %s3164_s10, %s68_s23  }
  0x16   : > { %143 = sbr.rel (!%p77_p4) target bundleno = 45 (0x2d), region = 24  ;;  %s145_s26 = sand.u32 (%p77_p4), 1, %s3164_s10  }
  0x17   : > { %s2775_s27 = sshll.u32 (%p77_p4), %s3184_s15, 1  ;;  %s2773_s28 = sshll.u32 (%p77_p4), %s145_s26, 8 }
  0x18   : > { %s2789_s29 = sshll.u32 (%p77_p4), %s3180_s14, 6  ;;  %s3417_s7 = scalar_lea.vmem (%p77_p4), [#allocation3], %s2773_s28 }
  0x19   : > { %s151_s30 = sadd.s32 (%p77_p4), %s2789_s29, %s2775_s27 }
  0x1a   : > { %s2777_s3 = sshll.u32 (%p77_p4), %s151_s30, 3 }
  0x1b   : > { %s3412_s6 = scalar_lea.vmem (%p77_p4), %s4305_s1, %s2777_s3 }
  0x1c   : > { %v166_v0 = vld [vmem:[%s3412_s6] sm:$0xff] (%p77_p4)  ;;  %v168_v1 = vld [vmem:[%s3412_s6 + $0x8] sm:$0xff] (%p77_p4) }
  0x1d   : > { %v170_v2 = vld [vmem:[%s3412_s6 + $0x20] sm:$0xff]  ;;  %167 = vst [vmem:[%s3417_s7] sm:$0xff] %v166_v0  ;;  %169 = vst [vmem:[%s3417_s7 + $0x8] sm:$0xff] %v168_v1  ;;  %v172_v3 = vld [vmem:[%s3412_s6 + $0x28] sm:$0xff] }
  0x1e   : > { %171 = vst [vmem:[%s3417_s7 + $0x10] sm:$0xff] %v170_v2  ;;  %v174_v4 = vld [vmem:[%s3412_s6 + $0x40] sm:$0xff]  ;;  %v176_v5 = vld [vmem:[%s3412_s6 + $0x48] sm:$0xff]  ;;  %173 = vst [vmem:[%s3417_s7 + $0x18] sm:$0xff] %v172_v3 }
  0x1f   : > { %175 = vst [vmem:[%s3417_s7 + $0x20] sm:$0xff] %v174_v4  ;;  %177 = vst [vmem:[%s3417_s7 + $0x28] sm:$0xff] %v176_v5  ;;  %v178_v6 = vld [vmem:[%s3412_s6 + $0x60] sm:$0xff]  ;;  %v180_v7 = vld [vmem:[%s3412_s6 + $0x68] sm:$0xff] }
  0x20   : > { %v182_v8 = vld [vmem:[%s3412_s6 + $0x80] sm:$0xff]  ;;  %179 = vst [vmem:[%s3417_s7 + $0x30] sm:$0xff] %v178_v6  ;;  %181 = vst [vmem:[%s3417_s7 + $0x38] sm:$0xff] %v180_v7  ;;  %v184_v9 = vld [vmem:[%s3412_s6 + $0x88] sm:$0xff] }
  0x21   : > { %183 = vst [vmem:[%s3417_s7 + $0x40] sm:$0xff] %v182_v8  ;;  %v186_v10 = vld [vmem:[%s3412_s6 + $0xa0] sm:$0xff]  ;;  %v188_v11 = vld [vmem:[%s3412_s6 + $0xa8] sm:$0xff]  ;;  %185 = vst [vmem:[%s3417_s7 + $0x48] sm:$0xff] %v184_v9 }
  0x22   : > { %187 = vst [vmem:[%s3417_s7 + $0x50] sm:$0xff] %v186_v10  ;;  %189 = vst [vmem:[%s3417_s7 + $0x58] sm:$0xff] %v188_v11  ;;  %v190_v12 = vld [vmem:[%s3412_s6 + $0xc0] sm:$0xff]  ;;  %v192_v13 = vld [vmem:[%s3412_s6 + $0xc8] sm:$0xff] }
  0x23   : > { %v194_v14 = vld [vmem:[%s3412_s6 + $0xe0] sm:$0xff]  ;;  %191 = vst [vmem:[%s3417_s7 + $0x60] sm:$0xff] %v190_v12  ;;  %193 = vst [vmem:[%s3417_s7 + $0x68] sm:$0xff] %v192_v13  ;;  %v196_v15 = vld [vmem:[%s3412_s6 + $0xe8] sm:$0xff] }
  0x24   : > { %195 = vst [vmem:[%s3417_s7 + $0x70] sm:$0xff] %v194_v14  ;;  %v198_v16 = vld [vmem:[%s3412_s6 + $0x100] sm:$0xff]  ;;  %v200_v17 = vld [vmem:[%s3412_s6 + $0x108] sm:$0xff]  ;;  %197 = vst [vmem:[%s3417_s7 + $0x78] sm:$0xff] %v196_v15 }
  0x25   : > { %199 = vst [vmem:[%s3417_s7 + $0x80] sm:$0xff] %v198_v16  ;;  %201 = vst [vmem:[%s3417_s7 + $0x88] sm:$0xff] %v200_v17  ;;  %v202_v18 = vld [vmem:[%s3412_s6 + $0x120] sm:$0xff]  ;;  %v204_v19 = vld [vmem:[%s3412_s6 + $0x128] sm:$0xff] }
  0x26   : > { %v206_v20 = vld [vmem:[%s3412_s6 + $0x140] sm:$0xff]  ;;  %203 = vst [vmem:[%s3417_s7 + $0x90] sm:$0xff] %v202_v18  ;;  %205 = vst [vmem:[%s3417_s7 + $0x98] sm:$0xff] %v204_v19  ;;  %v208_v21 = vld [vmem:[%s3412_s6 + $0x148] sm:$0xff] }
  0x27   : > { %207 = vst [vmem:[%s3417_s7 + $0xa0] sm:$0xff] %v206_v20  ;;  %v210_v22 = vld [vmem:[%s3412_s6 + $0x160] sm:$0xff]  ;;  %v212_v23 = vld [vmem:[%s3412_s6 + $0x168] sm:$0xff]  ;;  %209 = vst [vmem:[%s3417_s7 + $0xa8] sm:$0xff] %v208_v21 }
  0x28   : > { %211 = vst [vmem:[%s3417_s7 + $0xb0] sm:$0xff] %v210_v22  ;;  %213 = vst [vmem:[%s3417_s7 + $0xb8] sm:$0xff] %v212_v23  ;;  %v214_v24 = vld [vmem:[%s3412_s6 + $0x180] sm:$0xff]  ;;  %v216_v25 = vld [vmem:[%s3412_s6 + $0x188] sm:$0xff] }
  0x29   : > { %v218_v26 = vld [vmem:[%s3412_s6 + $0x1a0] sm:$0xff]  ;;  %215 = vst [vmem:[%s3417_s7 + $0xc0] sm:$0xff] %v214_v24  ;;  %217 = vst [vmem:[%s3417_s7 + $0xc8] sm:$0xff] %v216_v25  ;;  %v220_v27 = vld [vmem:[%s3412_s6 + $0x1a8] sm:$0xff] }
  0x2a   : > { %219 = vst [vmem:[%s3417_s7 + $0xd0] sm:$0xff] %v218_v26  ;;  %v222_v28 = vld [vmem:[%s3412_s6 + $0x1c0] sm:$0xff]  ;;  %v224_v29 = vld [vmem:[%s3412_s6 + $0x1c8] sm:$0xff]  ;;  %221 = vst [vmem:[%s3417_s7 + $0xd8] sm:$0xff] %v220_v27 }
  0x2b   : > { %223 = vst [vmem:[%s3417_s7 + $0xe0] sm:$0xff] %v222_v28  ;;  %225 = vst [vmem:[%s3417_s7 + $0xe8] sm:$0xff] %v224_v29  ;;  %v226_v30 = vld [vmem:[%s3412_s6 + $0x1e0] sm:$0xff]  ;;  %v228_v31 = vld [vmem:[%s3412_s6 + $0x1e8] sm:$0xff] }
  0x2c   : > { %227 = vst [vmem:[%s3417_s7 + $0xf0] sm:$0xff] %v226_v30  ;;  %229 = vst [vmem:[%s3417_s7 + $0xf8] sm:$0xff] %v228_v31 }
  0x2d PF: > { %p2778_p8 = scmp.ge.s32.totalorder %s3192_s17, 1  ;;  %p234_p9 = scmp.lt.s32.totalorder %s3192_s17, 9 }
  0x2f   : > { %p235_p10 = pnand %p2778_p8, %p234_p9 }
  0x30   : > { %s241_s8 = sand.u32 (!%p235_p10), 1, %s3160_s9   ;;  %p274_p11 = scmp.lt.s32.totalorder (!%p235_p10), %s3176_s13, 1 }
  0x31   : > { %238 = sbr.rel (%p235_p10) target bundleno = 636 (0x27c), region = 47  ;;  %s2779_s21 = sshll.u32 (!%p235_p10), %s241_s8, 8 }
  0x32   : > { %p276_p12 = scmp.lt.s32.totalorder (!%p235_p10), %s3168_s11, 1  ;;  %s2782_s22 = sshll.u32 (!%p235_p10), %s3172_s12, 1 }
  0x33   : > { %p287_p13 = scmp.lt.s32.totalorder (!%p235_p10), %s2782_s22, 3  ;;  %s3498_s12 = scalar_lea.vmem (!%p235_p10), [#allocation3], %s2779_s21 }
  0x34   : > { %p2785_p0 = scmp.ne.s32.totalorder (!%p235_p10), %s3168_s11, 0 }
  0x38   : > { %s4326_s13 = smov (!%p274_p11, %s3176_s13), 1  ;;  %s4328_s22 = smov (!%p287_p13, %s2782_s22), 3 }
  0x39   : > { %s277_s23 = scalar_select %p276_p12, %s3168_s11, 1 }
  0x3a   : > { %s2780_s24 = sshll.u32 %s4326_s13, 1  ;;  %s2783_s3 = sshll.u32 %s4326_s13, 2  ;;  %v3194_v32 = vmov (!%p2785_p0), 0.0  }
  0x3b   : > { %s279_s26 = sadd.s32 %s2780_s24, %s277_s23  ;;  %s290_s4 = sadd.s32 %s2783_s3, %s4328_s22  ;;  %298 = vst [vmem:[#allocation2] sm:$0xff] (!%p2785_p0), %v3194_v32  ;;  %299 = vst [vmem:[#allocation2 + $0x8] sm:$0xff] (!%p2785_p0), %v3194_v32 }
  0x3c   : > { %s2781_s27 = sshll.u32 %s279_s26, 3  ;;  %s2784_s5 = sshll.u32 %s290_s4, 3 }
  0x3d   : > { %s3491_s30 = scalar_lea.vmem %s4304_s0, %s2781_s27  ;;  %s3496_s7 = scalar_lea.vmem %s4306_s2, %s2784_s5 }
  0x3e   : > { %297 = sbr.rel (%p2785_p0) target bundleno = 69 (0x45), region = 55 }
  0x45 PF: > { %v3502_v33 = vld [vmem:[%s3491_s30] sm:$0xff]  ;;  %v3195_v34 = vmov 2   ;;  %v3196_v35 = vmov 0   ;;  %v3197_v36 = vmov 3   ;;  %v3198_v37 = vmov 1   ;;  %v3560_v23 = vld [vmem:[%s3498_s12] sm:$0xff] }
  0x46   : > { %2993 = vset.pattern.permute.xlu1 %v3195_v34  ;;  %2991 = vset.pattern.permute.xlu0 %v3196_v35  ;;  %v3199_v38 = vmov 4   ;;  %v3200_v39 = vmov 5   ;;  %v3201_v40 = vmov 6   ;;  %v3202_v41 = vmov 8   ;;  %v3563_v24 = vld [vmem:[%s3498_s12 + $0x8] sm:$0xff]  ;;  %p2786_p1 = scmp.ne.s32.totalorder %s3168_s11, 1 }
  0x47   : > { %373 = vperm.xlu1 %2993, %v3502_v33   ;;  %337 = vperm.xlu0 %2991, %v3502_v33   ;;  %v3203_v42 = vmov 7   ;;  %v3204_v43 = vmov 11   ;;  %v3205_v44 = vmov 9   ;;  %v3206_v45 = vmov 14  }
  0x48   : > { %v3207_v46 = vmov 10   ;;  %v3208_v47 = vmov 17   ;;  %v3209_v48 = vmov 12   ;;  %v3210_v49 = vmov 20  }
  0x49   : > { %v3211_v50 = vmov 13   ;;  %v3212_v51 = vmov 23   ;;  %v3213_v52 = vmov 15   ;;  %v3214_v53 = vmov 26  }
  0x4a   : > { %v3215_v54 = vmov 16   ;;  %v3216_v55 = vmov 29   ;;  %v3217_v56 = vmov 18   ;;  %v3218_v57 = vmov 32  }
  0x4b   : > { %2994 = vset.pattern.permute.xlu1 %v3197_v36  ;;  %2992 = vset.pattern.permute.xlu0 %v3198_v37  ;;  %v3219_v58 = vmov 19   ;;  %v3220_v59 = vmov 35   ;;  %v3221_v60 = vmov 21   ;;  %v3222_v61 = vmov 38  }
  0x4c   : > { %391 = vperm.xlu1 %2994, %v3502_v33   ;;  %355 = vperm.xlu0 %2992, %v3502_v33   ;;  %v3223_v62 = vmov 22   ;;  %v3224_v63 = vmov 41   ;;  %v3225_v0 = vmov 24   ;;  %v3226_v1 = vmov 44  }
  0x4d   : > { %v3227_v2 = vmov 25   ;;  %v3228_v3 = vmov 47   ;;  %v3229_v4 = vmov 27   ;;  %v3230_v5 = vmov 50  }
  0x4e   : > { %v3231_v6 = vmov 28   ;;  %v3232_v7 = vmov 53   ;;  %v3233_v8 = vmov 30   ;;  %v3234_v9 = vmov 56  }
  0x4f   : > { %v3235_v10 = vmov 31   ;;  %v3236_v11 = vmov 59   ;;  %v3237_v12 = vmov 33   ;;  %v3238_v13 = vmov 62  }
  0x50   : > { %2995 = vset.pattern.permute.xlu1 %v3199_v38  ;;  %2996 = vset.pattern.permute.xlu0 %v3200_v39  ;;  %v3239_v14 = vmov 34   ;;  %v3240_v15 = vmov 65   ;;  %v3241_v16 = vmov 36   ;;  %v340_v17 = vlaneseq }
  0x51   : > { %409 = vperm.xlu1 %2995, %v3502_v33   ;;  %427 = vperm.xlu0 %2996, %v3502_v33   ;;  %v3242_v18 = vmov 68   ;;  %v3243_v20 = vmov 37   ;;  %v3244_v21 = vmov 71   ;;  %v3245_v25 = vmov 39  }
  0x52   : > { %v3552_v19 = vshrl.u32 %v340_v17, 7  ;;  %v3246_v28 = vmov 74  }
  0x54   : > { %v3556_v22 = vsub.s32 0, %v3552_v19  ;;  %v3571_v29 = vsub.s32 2, %v3552_v19  ;;  %v3574_v30 = vsub.s32 1, %v3552_v19  ;;  %v3578_v34 = vsub.s32 3, %v3552_v19 }
  0x55   : > { %2997 = vset.pattern.permute.xlu1 %v3201_v40  ;;  %2999 = vset.pattern.permute.xlu0 %v3202_v41  ;;  %v3581_v37 = vsub.s32 4, %v3552_v19  ;;  %v3247_v40 = vmov 40  }
  0x56   : > { %445 = vperm.xlu1 %2997, %v3502_v33   ;;  %481 = vperm.xlu0 %2999, %v3502_v33   ;;  %v343_v26 = vrot.slane %v3560_v23, %v3556_v22  ;;  %v347_v27 = vrot.slane %v3563_v24, %v3556_v22  ;;  %v379_v38 = vrot.slane %v3560_v23, %v3571_v29 }
  0x57   : > { %v383_v39 = vrot.slane %v3563_v24, %v3571_v29  ;;  %v361_v41 = vrot.slane %v3560_v23, %v3574_v30 }
  0x5a   : > { %2998 = vset.pattern.permute.xlu1 %v3203_v42  ;;  %3002 = vset.pattern.permute.xlu0 %v3204_v43  ;;  %v3248_v42 = vmov 77   ;;  %v333_v43 = vld [vmem:[#allocation2] sm:$0xff] }
  0x5b   : > { %463 = vperm.xlu1 %2998, %v3502_v33   ;;  %535 = vperm.xlu0 %3002, %v3502_v33  }
  0x5f   : > { %3000 = vset.pattern.permute.xlu1 %v3205_v44  ;;  %3005 = vset.pattern.permute.xlu0 %v3206_v45  ;;  %v365_v45 = vrot.slane %v3563_v24, %v3574_v30 }
  0x60   : > { %499 = vperm.xlu1 %3000, %v3502_v33   ;;  %589 = vperm.xlu0 %3005, %v3502_v33  }
  0x64   : > { %3001 = vset.pattern.permute.xlu1 %v3207_v46  ;;  %3008 = vset.pattern.permute.xlu0 %v3208_v47  ;;  %v3593_v46 = vsub.s32 5, %v3552_v19  ;;  %v334_v47 = vld [vmem:[#allocation2 + $0x8] sm:$0xff] }
  0x65   : > { %517 = vperm.xlu1 %3001, %v3502_v33   ;;  %643 = vperm.xlu0 %3008, %v3502_v33  }
  0x69   : > { %3003 = vset.pattern.permute.xlu1 %v3209_v48  ;;  %3011 = vset.pattern.permute.xlu0 %v3210_v49  ;;  %v397_v49 = vrot.slane %v3560_v23, %v3578_v34 }
  0x6a   : > { %553 = vperm.xlu1 %3003, %v3502_v33   ;;  %697 = vperm.xlu0 %3011, %v3502_v33  }
  0x6e   : > { %3004 = vset.pattern.permute.xlu1 %v3211_v50  ;;  %3014 = vset.pattern.permute.xlu0 %v3212_v51  ;;  %v401_v50 = vrot.slane %v3563_v24, %v3578_v34 }
  0x6f   : > { %571 = vperm.xlu1 %3004, %v3502_v33   ;;  %751 = vperm.xlu0 %3014, %v3502_v33  }
  0x73   : > { %3006 = vset.pattern.permute.xlu1 %v3213_v52  ;;  %3017 = vset.pattern.permute.xlu0 %v3214_v53  ;;  %v415_v53 = vrot.slane %v3560_v23, %v3581_v37 }
  0x74   : > { %607 = vperm.xlu1 %3006, %v3502_v33   ;;  %805 = vperm.xlu0 %3017, %v3502_v33  }
  0x78   : > { %3007 = vset.pattern.permute.xlu1 %v3215_v54  ;;  %3020 = vset.pattern.permute.xlu0 %v3216_v55  ;;  %v419_v54 = vrot.slane %v3563_v24, %v3581_v37  ;;  %v3605_v55 = vsub.s32 6, %v3552_v19 }
  0x79   : > { %625 = vperm.xlu1 %3007, %v3502_v33   ;;  %859 = vperm.xlu0 %3020, %v3502_v33  }
  0x7d   : > { %3009 = vset.pattern.permute.xlu1 %v3217_v56  ;;  %3023 = vset.pattern.permute.xlu0 %v3218_v57 }
  0x7e   : > { %661 = vperm.xlu1 %3009, %v3502_v33   ;;  %913 = vperm.xlu0 %3023, %v3502_v33  }
  0x82   : > { %3010 = vset.pattern.permute.xlu1 %v3219_v58  ;;  %3026 = vset.pattern.permute.xlu0 %v3220_v59 }
  0x83   : > { %679 = vperm.xlu1 %3010, %v3502_v33   ;;  %967 = vperm.xlu0 %3026, %v3502_v33  }
  0x87   : > { %3012 = vset.pattern.permute.xlu1 %v3221_v60  ;;  %3029 = vset.pattern.permute.xlu0 %v3222_v61 }
  0x88   : > { %715 = vperm.xlu1 %3012, %v3502_v33   ;;  %1021 = vperm.xlu0 %3029, %v3502_v33  }
  0x8c   : > { %3013 = vset.pattern.permute.xlu1 %v3223_v62  ;;  %3032 = vset.pattern.permute.xlu0 %v3224_v63  ;;  %v3249_v62 = vmov 42   ;;  %v433_v63 = vrot.slane %v3560_v23, %v3593_v46 }
  0x8d   : > { %733 = vperm.xlu1 %3013, %v3502_v33   ;;  %1075 = vperm.xlu0 %3032, %v3502_v33  }
  0x91   : > { %3015 = vset.pattern.permute.xlu1 %v3225_v0  ;;  %3035 = vset.pattern.permute.xlu0 %v3226_v1 }
  0x92   : > { %769 = vperm.xlu1 %3015, %v3502_v33   ;;  %1129 = vperm.xlu0 %3035, %v3502_v33  }
  0x96   : > { %3016 = vset.pattern.permute.xlu1 %v3227_v2  ;;  %3038 = vset.pattern.permute.xlu0 %v3228_v3  ;;  %v437_v2 = vrot.slane %v3563_v24, %v3593_v46  ;;  %v3250_v3 = vmov 80  }
  0x97   : > { %787 = vperm.xlu1 %3016, %v3502_v33   ;;  %1183 = vperm.xlu0 %3038, %v3502_v33  }
  0x9b   : > { %3018 = vset.pattern.permute.xlu1 %v3229_v4  ;;  %3041 = vset.pattern.permute.xlu0 %v3230_v5 }
  0x9c   : > { %823 = vperm.xlu1 %3018, %v3502_v33   ;;  %1237 = vperm.xlu0 %3041, %v3502_v33  }
  0xa0   : > { %3019 = vset.pattern.permute.xlu1 %v3231_v6  ;;  %3044 = vset.pattern.permute.xlu0 %v3232_v7  ;;  %v451_v6 = vrot.slane %v3560_v23, %v3605_v55 }
  0xa1   : > { %841 = vperm.xlu1 %3019, %v3502_v33   ;;  %1291 = vperm.xlu0 %3044, %v3502_v33  }
  0xa5   : > { %3021 = vset.pattern.permute.xlu1 %v3233_v8  ;;  %3047 = vset.pattern.permute.xlu0 %v3234_v9 }
  0xa6   : > { %877 = vperm.xlu1 %3021, %v3502_v33   ;;  %1345 = vperm.xlu0 %3047, %v3502_v33  }
  0xaa   : > { %3022 = vset.pattern.permute.xlu1 %v3235_v10  ;;  %3050 = vset.pattern.permute.xlu0 %v3236_v11 }
  0xab   : > { %895 = vperm.xlu1 %3022, %v3502_v33   ;;  %1399 = vperm.xlu0 %3050, %v3502_v33  }
  0xaf   : > { %3024 = vset.pattern.permute.xlu1 %v3237_v12  ;;  %3053 = vset.pattern.permute.xlu0 %v3238_v13  ;;  %v3616_v12 = vsub.s32 7, %v3552_v19 }
  0xb0   : > { %931 = vperm.xlu1 %3024, %v3502_v33   ;;  %1453 = vperm.xlu0 %3053, %v3502_v33  }
  0xb4   : > { %3025 = vset.pattern.permute.xlu1 %v3239_v14  ;;  %3056 = vset.pattern.permute.xlu0 %v3240_v15 }
  0xb5   : > { %949 = vperm.xlu1 %3025, %v3502_v33   ;;  %1507 = vperm.xlu0 %3056, %v3502_v33  }
  0xb9   : > { %3027 = vset.pattern.permute.xlu1 %v3241_v16  ;;  %3059 = vset.pattern.permute.xlu0 %v3242_v18 }
  0xba   : > { %985 = vperm.xlu1 %3027, %v3502_v33   ;;  %1561 = vperm.xlu0 %3059, %v3502_v33  }
  0xbe   : > { %3028 = vset.pattern.permute.xlu1 %v3243_v20  ;;  %3062 = vset.pattern.permute.xlu0 %v3244_v21  ;;  %v3251_v20 = vmov 43  }
  0xbf   : > { %1003 = vperm.xlu1 %3028, %v3502_v33   ;;  %1615 = vperm.xlu0 %3062, %v3502_v33  }
  0xc3   : > { %3030 = vset.pattern.permute.xlu1 %v3245_v25  ;;  %3065 = vset.pattern.permute.xlu0 %v3246_v28  ;;  %v455_v25 = vrot.slane %v3563_v24, %v3605_v55 }
  0xc4   : > { %1039 = vperm.xlu1 %3030, %v3502_v33   ;;  %1669 = vperm.xlu0 %3065, %v3502_v33  }
  0xc6   : > { %v374_v31 = vpop.permute.xlu1 %373  ;;  %v338_v32 = vpop.permute.xlu0 %337 }
  0xc7   : > { %v348_v35 = vsub.f32 %v338_v32, %v343_v26  ;;  %v349_v36 = vsub.f32 %v338_v32, %v347_v27  ;;  %v384_v56 = vsub.f32 %v374_v31, %v379_v38  ;;  %v385_v57 = vsub.f32 %v374_v31, %v383_v39  ;;  %v3622_v32 = vld [vmem:[%s3498_s12 + $0x10] sm:$0xff] }
  0xc8   : > { %3031 = vset.pattern.permute.xlu1 %v3247_v40  ;;  %3068 = vset.pattern.permute.xlu0 %v3248_v42 }
  0xc9   : > { %v350_v44 = vand.u32 2147483647, %v348_v35  ;;  %1057 = vperm.xlu1 %3031, %v3502_v33   ;;  %1723 = vperm.xlu0 %3068, %v3502_v33   ;;  %v351_v48 = vand.u32 2147483647, %v349_v36  ;;  %v386_v7 = vand.u32 2147483647, %v384_v56 }
  0xca   : > { %v387_v8 = vand.u32 2147483647, %v385_v57  ;;  %v3625_v35 = vld [vmem:[%s3498_s12 + $0x18] sm:$0xff] }
  0xcb   : > { %v392_v51 = vpop.permute.xlu1 %391  ;;  %v356_v52 = vpop.permute.xlu0 %355  ;;  %v352_v58 = vadd.f32 %v350_v44, %v333_v43  ;;  %v353_v60 = vadd.f32 %v351_v48, %v334_v47  ;;  %v3252_v48 = vmov 45  }
  0xcc   : > { %v366_v59 = vsub.f32 %v356_v52, %v361_v41  ;;  %v367_v61 = vsub.f32 %v356_v52, %v365_v45  ;;  %v402_v0 = vsub.f32 %v392_v51, %v397_v49  ;;  %v403_v4 = vsub.f32 %v392_v51, %v401_v50 }
  0xcd   : > { %3033 = vset.pattern.permute.xlu1 %v3249_v62  ;;  %3071 = vset.pattern.permute.xlu0 %v3250_v3  ;;  %v469_v41 = vrot.slane %v3560_v23, %v3616_v12  ;;  %v473_v45 = vrot.slane %v3563_v24, %v3616_v12  ;;  %v487_v49 = vrot.slane %v3622_v32, %v3556_v22  ;;  %v3253_v52 = vmov 83  }
  0xce   : > { %v368_v1 = vand.u32 2147483647, %v366_v59  ;;  %1093 = vperm.xlu1 %3033, %v3502_v33   ;;  %v369_v5 = vand.u32 2147483647, %v367_v61  ;;  %1777 = vperm.xlu0 %3071, %v3502_v33   ;;  %v404_v17 = vand.u32 2147483647, %v402_v0  ;;  %v491_v50 = vrot.slane %v3625_v35, %v3556_v22 }
  0xcf   : > { %v405_v26 = vand.u32 2147483647, %v403_v4  ;;  %v3254_v61 = vmov 46   ;;  %v505_v62 = vrot.slane %v3622_v32, %v3574_v30 }
  0xd0   : > { %v370_v9 = vadd.f32 %v368_v1, %v352_v58  ;;  %v410_v10 = vpop.permute.xlu1 %409  ;;  %v428_v11 = vpop.permute.xlu0 %427  ;;  %v371_v13 = vadd.f32 %v369_v5, %v353_v60 }
  0xd1   : > { %v420_v14 = vsub.f32 %v410_v10, %v415_v53  ;;  %v421_v15 = vsub.f32 %v410_v10, %v419_v54  ;;  %v438_v16 = vsub.f32 %v428_v11, %v433_v63  ;;  %v439_v21 = vsub.f32 %v428_v11, %v437_v2 }
  0xd2   : > { %v388_v18 = vadd.f32 %v386_v7, %v370_v9  ;;  %3034 = vset.pattern.permute.xlu1 %v3251_v20  ;;  %v389_v27 = vadd.f32 %v387_v8, %v371_v13  ;;  %3074 = vset.pattern.permute.xlu0 %v3253_v52  ;;  %v509_v63 = vrot.slane %v3625_v35, %v3574_v30  ;;  %v3255_v13 = vmov 48  }
  0xd3   : > { %v422_v28 = vand.u32 2147483647, %v420_v14  ;;  %v423_v31 = vand.u32 2147483647, %v421_v15  ;;  %1111 = vperm.xlu1 %3034, %v3502_v33   ;;  %v440_v38 = vand.u32 2147483647, %v438_v16  ;;  %1831 = vperm.xlu0 %3074, %v3502_v33   ;;  %v523_v11 = vrot.slane %v3622_v32, %v3571_v29 }
  0xd4   : > { %v406_v19 = vadd.f32 %v404_v17, %v388_v18  ;;  %v407_v36 = vadd.f32 %v405_v26, %v389_v27  ;;  %v441_v39 = vand.u32 2147483647, %v439_v21  ;;  %v527_v14 = vrot.slane %v3625_v35, %v3571_v29 }
  0xd5   : > { %v446_v40 = vpop.permute.xlu1 %445  ;;  %v482_v51 = vpop.permute.xlu0 %481  ;;  %v541_v15 = vrot.slane %v3622_v32, %v3578_v34  ;;  %v545_v16 = vrot.slane %v3625_v35, %v3578_v34  ;;  %v3256_v18 = vmov 86  }
  0xd6   : > { %v424_v42 = vadd.f32 %v422_v28, %v406_v19  ;;  %v456_v43 = vsub.f32 %v446_v40, %v451_v6  ;;  %v457_v44 = vsub.f32 %v446_v40, %v455_v25  ;;  %v425_v47 = vadd.f32 %v423_v31, %v407_v36 }
  0xd7   : > { %3036 = vset.pattern.permute.xlu1 %v3252_v48  ;;  %v492_v59 = vsub.f32 %v482_v51, %v487_v49  ;;  %v493_v60 = vsub.f32 %v482_v51, %v491_v50  ;;  %3077 = vset.pattern.permute.xlu0 %v3256_v18  ;;  %v563_v40 = vrot.slane %v3625_v35, %v3581_v37 }
  0xd8   : > { %1147 = vperm.xlu1 %3036, %v3502_v33   ;;  %v442_v23 = vadd.f32 %v440_v38, %v424_v42  ;;  %v443_v53 = vadd.f32 %v441_v39, %v425_v47  ;;  %v458_v54 = vand.u32 2147483647, %v456_v43  ;;  %v459_v56 = vand.u32 2147483647, %v457_v44  ;;  %1885 = vperm.xlu0 %3077, %v3502_v33  }
  0xd9   : > { %v494_v6 = vand.u32 2147483647, %v492_v59  ;;  %v495_v7 = vand.u32 2147483647, %v493_v60  ;;  %v3257_v38 = vmov 49   ;;  %v559_v39 = vrot.slane %v3622_v32, %v3581_v37 }
  0xda   : > { %v464_v24 = vpop.permute.xlu1 %463  ;;  %v460_v0 = vadd.f32 %v458_v54, %v442_v23  ;;  %v461_v1 = vadd.f32 %v459_v56, %v443_v53  ;;  %v536_v17 = vpop.permute.xlu0 %535  ;;  %v577_v23 = vrot.slane %v3622_v32, %v3593_v46  ;;  %v3258_v53 = vmov 51  }
  0xdb   : > { %v474_v57 = vsub.f32 %v464_v24, %v469_v41  ;;  %v475_v58 = vsub.f32 %v464_v24, %v473_v45  ;;  %v546_v19 = vsub.f32 %v536_v17, %v541_v15  ;;  %v547_v36 = vsub.f32 %v536_v17, %v545_v16 }
  0xdc   : > { %3037 = vset.pattern.permute.xlu1 %v3254_v61  ;;  %v581_v54 = vrot.slane %v3625_v35, %v3593_v46  ;;  %v595_v56 = vrot.slane %v3622_v32, %v3605_v55  ;;  %v599_v24 = vrot.slane %v3625_v35, %v3605_v55 }
  0xdd   : > { %v476_v2 = vand.u32 2147483647, %v474_v57  ;;  %v477_v3 = vand.u32 2147483647, %v475_v58  ;;  %1165 = vperm.xlu1 %3037, %v3502_v33   ;;  %v548_v48 = vand.u32 2147483647, %v546_v19 }
  0xde   : > { %v549_v49 = vand.u32 2147483647, %v547_v36  ;;  %v3259_v58 = vmov 89  }
  0xdf   : > { %v478_v4 = vadd.f32 %v476_v2, %v460_v0  ;;  %v479_v5 = vadd.f32 %v477_v3, %v461_v1  ;;  %v500_v8 = vpop.permute.xlu1 %499  ;;  %v590_v57 = vpop.permute.xlu0 %589  ;;  %3080 = vset.pattern.permute.xlu0 %v3259_v58 }
  0xe0   : > { %v510_v9 = vsub.f32 %v500_v8, %v505_v62  ;;  %v511_v10 = vsub.f32 %v500_v8, %v509_v63  ;;  %1939 = vperm.xlu0 %3080, %v3502_v33   ;;  %v600_v2 = vsub.f32 %v590_v57, %v595_v56  ;;  %v601_v3 = vsub.f32 %v590_v57, %v599_v24 }
  0xe1   : > { %3039 = vset.pattern.permute.xlu1 %v3255_v13  ;;  %v496_v20 = vadd.f32 %v494_v6, %v478_v4  ;;  %v497_v21 = vadd.f32 %v495_v7, %v479_v5  ;;  %v3260_v4 = vmov 52   ;;  %v613_v5 = vrot.slane %v3622_v32, %v3616_v12  ;;  %v3676_v13 = vld [vmem:[%s3498_s12 + $0x28] sm:$0xff] }
  0xe2   : > { %1201 = vperm.xlu1 %3039, %v3502_v33   ;;  %v512_v25 = vand.u32 2147483647, %v510_v9  ;;  %v513_v26 = vand.u32 2147483647, %v511_v10  ;;  %v617_v6 = vrot.slane %v3625_v35, %v3616_v12  ;;  %v602_v16 = vand.u32 2147483647, %v600_v2 }
  0xe3   : > { %v603_v17 = vand.u32 2147483647, %v601_v3 }
  0xe4   : > { %v518_v27 = vpop.permute.xlu1 %517  ;;  %v514_v41 = vadd.f32 %v512_v25, %v496_v20  ;;  %v515_v42 = vadd.f32 %v513_v26, %v497_v21  ;;  %v3261_v21 = vmov 54   ;;  %v635_v25 = vrot.slane %v3676_v13, %v3556_v22 }
  0xe5   : > { %v528_v28 = vsub.f32 %v518_v27, %v523_v11  ;;  %v529_v31 = vsub.f32 %v518_v27, %v527_v14  ;;  %v3673_v11 = vld [vmem:[%s3498_s12 + $0x20] sm:$0xff]  ;;  %v653_v27 = vrot.slane %v3676_v13, %v3574_v30 }
  0xe6   : > { %3040 = vset.pattern.permute.xlu1 %v3257_v38  ;;  %v631_v35 = vrot.slane %v3673_v11, %v3556_v22  ;;  %v649_v26 = vrot.slane %v3673_v11, %v3574_v30 }
  0xe7   : > { %v530_v43 = vand.u32 2147483647, %v528_v28  ;;  %v531_v44 = vand.u32 2147483647, %v529_v31  ;;  %1219 = vperm.xlu1 %3040, %v3502_v33   ;;  %v644_v28 = vpop.permute.xlu0 %643  ;;  %v3262_v31 = vmov 92  }
  0xe8   : > { %3083 = vset.pattern.permute.xlu0 %v3262_v31 }
  0xe9   : > { %v532_v45 = vadd.f32 %v530_v43, %v514_v41  ;;  %v533_v47 = vadd.f32 %v531_v44, %v515_v42  ;;  %v554_v50 = vpop.permute.xlu1 %553  ;;  %1993 = vperm.xlu0 %3083, %v3502_v33   ;;  %v654_v43 = vsub.f32 %v644_v28, %v649_v26  ;;  %v655_v44 = vsub.f32 %v644_v28, %v653_v27 }
  0xea   : > { %v564_v51 = vsub.f32 %v554_v50, %v559_v39  ;;  %v565_v52 = vsub.f32 %v554_v50, %v563_v40 }
  0xeb   : > { %3042 = vset.pattern.permute.xlu1 %v3258_v53  ;;  %v550_v59 = vadd.f32 %v548_v48, %v532_v45  ;;  %v551_v60 = vadd.f32 %v549_v49, %v533_v47  ;;  %v3263_v45 = vmov 55   ;;  %v667_v47 = vrot.slane %v3673_v11, %v3571_v29 }
  0xec   : > { %1255 = vperm.xlu1 %3042, %v3502_v33   ;;  %v566_v61 = vand.u32 2147483647, %v564_v51  ;;  %v567_v62 = vand.u32 2147483647, %v565_v52  ;;  %v671_v48 = vrot.slane %v3676_v13, %v3571_v29  ;;  %v657_v56 = vand.u32 2147483647, %v655_v44 }
  0xee   : > { %v572_v63 = vpop.permute.xlu1 %571  ;;  %v568_v7 = vadd.f32 %v566_v61, %v550_v59  ;;  %v569_v8 = vadd.f32 %v567_v62, %v551_v60  ;;  %v685_v59 = vrot.slane %v3673_v11, %v3578_v34  ;;  %v3264_v60 = vmov 57  }
  0xef   : > { %v582_v0 = vsub.f32 %v572_v63, %v577_v23  ;;  %v583_v1 = vsub.f32 %v572_v63, %v581_v54  ;;  %v656_v54 = vand.u32 2147483647, %v654_v43  ;;  %v689_v61 = vrot.slane %v3676_v13, %v3578_v34 }
  0xf0   : > { %3043 = vset.pattern.permute.xlu1 %v3260_v4  ;;  %v703_v62 = vrot.slane %v3673_v11, %v3581_v37  ;;  %v707_v63 = vrot.slane %v3676_v13, %v3581_v37 }
  0xf1   : > { %v584_v9 = vand.u32 2147483647, %v582_v0  ;;  %v585_v10 = vand.u32 2147483647, %v583_v1  ;;  %1273 = vperm.xlu1 %3043, %v3502_v33   ;;  %v698_v0 = vpop.permute.xlu0 %697  ;;  %v3265_v1 = vmov 95  }
  0xf2   : > { %3086 = vset.pattern.permute.xlu0 %v3265_v1 }
  0xf3   : > { %v586_v14 = vadd.f32 %v584_v9, %v568_v7  ;;  %v587_v15 = vadd.f32 %v585_v10, %v569_v8  ;;  %v608_v18 = vpop.permute.xlu1 %607  ;;  %2047 = vperm.xlu0 %3086, %v3502_v33   ;;  %v708_v9 = vsub.f32 %v698_v0, %v703_v62  ;;  %v709_v10 = vsub.f32 %v698_v0, %v707_v63 }
  0xf4   : > { %v618_v20 = vsub.f32 %v608_v18, %v613_v5  ;;  %v619_v32 = vsub.f32 %v608_v18, %v617_v6 }
  0xf5   : > { %3045 = vset.pattern.permute.xlu1 %v3261_v21  ;;  %v604_v19 = vadd.f32 %v602_v16, %v586_v14  ;;  %v605_v36 = vadd.f32 %v603_v17, %v587_v15  ;;  %v3266_v14 = vmov 58   ;;  %v721_v15 = vrot.slane %v3673_v11, %v3593_v46 }
  0xf6   : > { %1309 = vperm.xlu1 %3045, %v3502_v33   ;;  %v620_v38 = vand.u32 2147483647, %v618_v20  ;;  %v621_v39 = vand.u32 2147483647, %v619_v32  ;;  %v725_v16 = vrot.slane %v3676_v13, %v3593_v46  ;;  %v711_v26 = vand.u32 2147483647, %v709_v10 }
  0xf8   : > { %v626_v40 = vpop.permute.xlu1 %625  ;;  %v622_v49 = vadd.f32 %v620_v38, %v604_v19  ;;  %v623_v50 = vadd.f32 %v621_v39, %v605_v36  ;;  %v739_v19 = vrot.slane %v3673_v11, %v3605_v55  ;;  %v3267_v36 = vmov 60  }
  0xf9   : > { %v636_v41 = vsub.f32 %v626_v40, %v631_v35  ;;  %v637_v42 = vsub.f32 %v626_v40, %v635_v25  ;;  %v710_v25 = vand.u32 2147483647, %v708_v9  ;;  %v743_v38 = vrot.slane %v3676_v13, %v3605_v55 }
  0xfa   : > { %3046 = vset.pattern.permute.xlu1 %v3263_v45  ;;  %v757_v39 = vrot.slane %v3673_v11, %v3616_v12  ;;  %v761_v40 = vrot.slane %v3676_v13, %v3616_v12 }
  0xfb   : > { %v638_v51 = vand.u32 2147483647, %v636_v41  ;;  %v639_v52 = vand.u32 2147483647, %v637_v42  ;;  %1327 = vperm.xlu1 %3046, %v3502_v33   ;;  %v752_v41 = vpop.permute.xlu0 %751  ;;  %v3268_v42 = vmov 98  }
  0xfc   : > { %3089 = vset.pattern.permute.xlu0 %v3268_v42  ;;  %v763_v13 = vsub.f32 %v752_v41, %v761_v40 }
  0xfd   : > { %v640_v23 = vadd.f32 %v638_v51, %v622_v49  ;;  %v641_v53 = vadd.f32 %v639_v52, %v623_v50  ;;  %v662_v24 = vpop.permute.xlu1 %661  ;;  %v3721_v49 = vld [vmem:[%s3498_s12 + $0x38] sm:$0xff]  ;;  %2101 = vperm.xlu0 %3089, %v3502_v33   ;;  %v762_v52 = vsub.f32 %v752_v41, %v757_v39 }
  0xfe   : > { %v672_v57 = vsub.f32 %v662_v24, %v667_v47  ;;  %v673_v58 = vsub.f32 %v662_v24, %v671_v48  ;;  %v3718_v48 = vld [vmem:[%s3498_s12 + $0x30] sm:$0xff]  ;;  %v765_v62 = vand.u32 2147483647, %v763_v13  ;;  %v3274_v13 = vmov 104  }
  0xff   : > { %3048 = vset.pattern.permute.xlu1 %v3264_v60  ;;  %v658_v2 = vadd.f32 %v656_v54, %v640_v23  ;;  %v659_v3 = vadd.f32 %v657_v56, %v641_v53  ;;  %v3269_v23 = vmov 61   ;;  %v775_v53 = vrot.slane %v3718_v48, %v3556_v22 }
 0x100   : > { %1363 = vperm.xlu1 %3048, %v3502_v33   ;;  %v674_v4 = vand.u32 2147483647, %v672_v57  ;;  %v675_v5 = vand.u32 2147483647, %v673_v58  ;;  %v779_v54 = vrot.slane %v3721_v49, %v3556_v22 }
 0x102   : > { %v680_v6 = vpop.permute.xlu1 %679  ;;  %v676_v17 = vadd.f32 %v674_v4, %v658_v2  ;;  %v677_v18 = vadd.f32 %v675_v5, %v659_v3  ;;  %v793_v2 = vrot.slane %v3718_v48, %v3574_v30  ;;  %v3270_v3 = vmov 63  }
 0x103   : > { %v690_v7 = vsub.f32 %v680_v6, %v685_v59  ;;  %v691_v8 = vsub.f32 %v680_v6, %v689_v61  ;;  %v764_v61 = vand.u32 2147483647, %v762_v52  ;;  %v797_v4 = vrot.slane %v3721_v49, %v3574_v30 }
 0x104   : > { %3049 = vset.pattern.permute.xlu1 %v3266_v14  ;;  %v811_v5 = vrot.slane %v3718_v48, %v3571_v29  ;;  %v815_v6 = vrot.slane %v3721_v49, %v3571_v29 }
 0x105   : > { %v692_v20 = vand.u32 2147483647, %v690_v7  ;;  %v693_v32 = vand.u32 2147483647, %v691_v8  ;;  %1381 = vperm.xlu1 %3049, %v3502_v33   ;;  %v806_v7 = vpop.permute.xlu0 %805  ;;  %v3271_v8 = vmov 101  }
 0x106   : > { %3092 = vset.pattern.permute.xlu0 %v3271_v8 }
 0x107   : > { %v694_v35 = vadd.f32 %v692_v20, %v676_v17  ;;  %v695_v21 = vadd.f32 %v693_v32, %v677_v18  ;;  %v716_v27 = vpop.permute.xlu1 %715  ;;  %2155 = vperm.xlu0 %3092, %v3502_v33   ;;  %v816_v20 = vsub.f32 %v806_v7, %v811_v5  ;;  %v817_v32 = vsub.f32 %v806_v7, %v815_v6 }
 0x108   : > { %v726_v28 = vsub.f32 %v716_v27, %v721_v15  ;;  %v727_v31 = vsub.f32 %v716_v27, %v725_v16 }
 0x109   : > { %3051 = vset.pattern.permute.xlu1 %v3267_v36  ;;  %v712_v43 = vadd.f32 %v710_v25, %v694_v35  ;;  %v713_v44 = vadd.f32 %v711_v26, %v695_v21  ;;  %v3272_v35 = vmov 64   ;;  %v829_v21 = vrot.slane %v3718_v48, %v3578_v34 }
 0x10a   : > { %1417 = vperm.xlu1 %3051, %v3502_v33   ;;  %v728_v45 = vand.u32 2147483647, %v726_v28  ;;  %v729_v47 = vand.u32 2147483647, %v727_v31  ;;  %v833_v25 = vrot.slane %v3721_v49, %v3578_v34  ;;  %v869_v36 = vrot.slane %v3721_v49, %v3593_v46 }
 0x10b   : > { %v818_v40 = vand.u32 2147483647, %v816_v20  ;;  %v819_v41 = vand.u32 2147483647, %v817_v32  ;;  %3095 = vset.pattern.permute.xlu0 %v3274_v13  ;;  %v3276_v32 = vmov 69  }
 0x10c   : > { %v734_v50 = vpop.permute.xlu1 %733  ;;  %v730_v56 = vadd.f32 %v728_v45, %v712_v43  ;;  %v731_v24 = vadd.f32 %v729_v47, %v713_v44  ;;  %v860_v43 = vpop.permute.xlu0 %859  ;;  %v3273_v47 = vmov 66  }
 0x10d   : > { %v744_v11 = vsub.f32 %v734_v50, %v739_v19  ;;  %v745_v51 = vsub.f32 %v734_v50, %v743_v38  ;;  %v865_v19 = vrot.slane %v3718_v48, %v3593_v46  ;;  %v847_v50 = vrot.slane %v3718_v48, %v3581_v37 }
 0x10e   : > { %3052 = vset.pattern.permute.xlu1 %v3269_v23  ;;  %v871_v52 = vsub.f32 %v860_v43, %v869_v36 }
 0x10f   : > { %v746_v57 = vand.u32 2147483647, %v744_v11  ;;  %v747_v58 = vand.u32 2147483647, %v745_v51  ;;  %1435 = vperm.xlu1 %3052, %v3502_v33   ;;  %v851_v11 = vrot.slane %v3721_v49, %v3581_v37  ;;  %v870_v51 = vsub.f32 %v860_v43, %v865_v19 }
 0x111   : > { %v748_v59 = vadd.f32 %v746_v57, %v730_v56  ;;  %v749_v60 = vadd.f32 %v747_v58, %v731_v24  ;;  %v770_v63 = vpop.permute.xlu1 %769  ;;  %v3754_v24 = vld [vmem:[%s3491_s30] sm:$0xff] }
 0x112   : > { %v780_v0 = vsub.f32 %v770_v63, %v775_v53  ;;  %v781_v1 = vsub.f32 %v770_v63, %v779_v54  ;;  %2209 = vperm.xlu0 %3095, %v3754_v24   ;;  %v883_v63 = vrot.slane %v3718_v48, %v3605_v55 }
 0x113   : > { %3054 = vset.pattern.permute.xlu1 %v3270_v3  ;;  %v766_v9 = vadd.f32 %v764_v61, %v748_v59  ;;  %v767_v10 = vadd.f32 %v765_v62, %v749_v60  ;;  %v3758_v60 = vld [vmem:[%s3498_s12 + $0x40] sm:$0xff]  ;;  %v3275_v61 = vmov 67   ;;  %v873_v62 = vand.u32 2147483647, %v871_v52 }
 0x114   : > { %1471 = vperm.xlu1 %3054, %v3502_v33   ;;  %v782_v14 = vand.u32 2147483647, %v780_v0  ;;  %v783_v15 = vand.u32 2147483647, %v781_v1  ;;  %v887_v0 = vrot.slane %v3721_v49, %v3605_v55  ;;  %v3765_v1 = vld [vmem:[%s3498_s12 + $0x48] sm:$0xff]  ;;  %v919_v6 = vrot.slane %v3758_v60, %v3556_v22 }
 0x115   : > { %v959_v13 = vrot.slane %v3765_v1, %v3571_v29 }
 0x116   : > { %v788_v16 = vpop.permute.xlu1 %787  ;;  %v784_v26 = vadd.f32 %v782_v14, %v766_v9  ;;  %v785_v27 = vadd.f32 %v783_v15, %v767_v10  ;;  %v923_v10 = vrot.slane %v3765_v1, %v3556_v22  ;;  %v914_v14 = vpop.permute.xlu0 %913 }
 0x117   : > { %v798_v17 = vsub.f32 %v788_v16, %v793_v2  ;;  %v799_v18 = vsub.f32 %v788_v16, %v797_v4 }
 0x118   : > { %3055 = vset.pattern.permute.xlu1 %v3272_v35  ;;  %v905_v35 = vrot.slane %v3721_v49, %v3616_v12  ;;  %v937_v49 = vrot.slane %v3758_v60, %v3574_v30 }
 0x119   : > { %v800_v28 = vand.u32 2147483647, %v798_v17  ;;  %v801_v31 = vand.u32 2147483647, %v799_v18  ;;  %1489 = vperm.xlu1 %3055, %v3502_v33   ;;  %v901_v17 = vrot.slane %v3718_v48, %v3616_v12 }
 0x11b   : > { %v802_v38 = vadd.f32 %v800_v28, %v784_v26  ;;  %v803_v39 = vadd.f32 %v801_v31, %v785_v27  ;;  %v824_v42 = vpop.permute.xlu1 %823  ;;  %v924_v26 = vsub.f32 %v914_v14, %v919_v6  ;;  %v3277_v27 = vmov 107  }
 0x11c   : > { %v834_v44 = vsub.f32 %v824_v42, %v829_v21  ;;  %v835_v45 = vsub.f32 %v824_v42, %v833_v25  ;;  %3098 = vset.pattern.permute.xlu0 %v3277_v27  ;;  %v925_v28 = vsub.f32 %v914_v14, %v923_v10  ;;  %v3281_v6 = vmov 73  }
 0x11d   : > { %3057 = vset.pattern.permute.xlu1 %v3273_v47  ;;  %v820_v23 = vadd.f32 %v818_v40, %v802_v38  ;;  %v821_v53 = vadd.f32 %v819_v41, %v803_v39  ;;  %2263 = vperm.xlu0 %3098, %v3754_v24   ;;  %v3278_v39 = vmov 70   ;;  %v926_v40 = vand.u32 2147483647, %v924_v26 }
 0x11e   : > { %1525 = vperm.xlu1 %3057, %v3502_v33   ;;  %v836_v54 = vand.u32 2147483647, %v834_v44  ;;  %v837_v56 = vand.u32 2147483647, %v835_v45  ;;  %v872_v33 = vand.u32 2147483647, %v870_v51  ;;  %v941_v41 = vrot.slane %v3765_v1, %v3574_v30 }
 0x11f   : > { %v927_v44 = vand.u32 2147483647, %v925_v28  ;;  %v1027_v26 = vrot.slane %v3758_v60, %v3605_v55  ;;  %v1031_v27 = vrot.slane %v3765_v1, %v3605_v55 }
 0x120   : > { %v842_v57 = vpop.permute.xlu1 %841  ;;  %v838_v2 = vadd.f32 %v836_v54, %v820_v23  ;;  %v839_v3 = vadd.f32 %v837_v56, %v821_v53  ;;  %v973_v23 = vrot.slane %v3758_v60, %v3578_v34  ;;  %v3279_v56 = vmov 72  }
 0x121   : > { %v852_v58 = vsub.f32 %v842_v57, %v847_v50  ;;  %v853_v59 = vsub.f32 %v842_v57, %v851_v11  ;;  %v955_v11 = vrot.slane %v3758_v60, %v3571_v29  ;;  %v977_v57 = vrot.slane %v3765_v1, %v3578_v34 }
 0x122   : > { %3058 = vset.pattern.permute.xlu1 %v3275_v61  ;;  %v968_v61 = vpop.permute.xlu0 %967 }
 0x123   : > { %v854_v4 = vand.u32 2147483647, %v852_v58  ;;  %v855_v5 = vand.u32 2147483647, %v853_v59  ;;  %1543 = vperm.xlu1 %3058, %v3754_v24  }
 0x125   : > { %v856_v7 = vadd.f32 %v854_v4, %v838_v2  ;;  %v857_v8 = vadd.f32 %v855_v5, %v839_v3  ;;  %v878_v9 = vpop.permute.xlu1 %877  ;;  %v978_v4 = vsub.f32 %v968_v61, %v973_v23  ;;  %v979_v5 = vsub.f32 %v968_v61, %v977_v57 }
 0x126   : > { %v888_v15 = vsub.f32 %v878_v9, %v883_v63  ;;  %v889_v16 = vsub.f32 %v878_v9, %v887_v0  ;;  %v1022_v28 = vpop.permute.xlu0 %1021 }
 0x127   : > { %v874_v18 = vadd.f32 %v872_v33, %v856_v7  ;;  %v875_v20 = vadd.f32 %v873_v62, %v857_v8  ;;  %3060 = vset.pattern.permute.xlu1 %v3276_v32  ;;  %v3280_v33 = vmov 110   ;;  %v991_v7 = vrot.slane %v3758_v60, %v3581_v37 }
 0x128   : > { %v890_v21 = vand.u32 2147483647, %v888_v15  ;;  %v891_v25 = vand.u32 2147483647, %v889_v16  ;;  %1579 = vperm.xlu1 %3060, %v3754_v24   ;;  %3101 = vset.pattern.permute.xlu0 %v3280_v33  ;;  %v995_v8 = vrot.slane %v3765_v1, %v3581_v37  ;;  %v980_v16 = vand.u32 2147483647, %v978_v4 }
 0x129   : > { %2317 = vperm.xlu0 %3101, %v3754_v24  }
 0x12a   : > { %v892_v31 = vadd.f32 %v890_v21, %v874_v18  ;;  %v893_v19 = vadd.f32 %v891_v25, %v875_v20  ;;  %v896_v48 = vpop.permute.xlu1 %895  ;;  %v3282_v21 = vmov 75   ;;  %v1013_v25 = vrot.slane %v3765_v1, %v3593_v46 }
 0x12b   : > { %v906_v36 = vsub.f32 %v896_v48, %v901_v17  ;;  %v907_v38 = vsub.f32 %v896_v48, %v905_v35  ;;  %v981_v17 = vand.u32 2147483647, %v979_v5  ;;  %v1009_v35 = vrot.slane %v3758_v60, %v3593_v46 }
 0x12c   : > { %3061 = vset.pattern.permute.xlu1 %v3278_v39 }
 0x12d   : > { %v908_v42 = vand.u32 2147483647, %v906_v36  ;;  %v909_v43 = vand.u32 2147483647, %v907_v38  ;;  %1597 = vperm.xlu1 %3061, %v3754_v24  }
 0x12f   : > { %v910_v45 = vadd.f32 %v908_v42, %v892_v31  ;;  %v911_v47 = vadd.f32 %v909_v43, %v893_v19  ;;  %v932_v50 = vpop.permute.xlu1 %931  ;;  %v3283_v31 = vmov 113   ;;  %v1033_v42 = vsub.f32 %v1022_v28, %v1031_v27 }
 0x130   : > { %v942_v51 = vsub.f32 %v932_v50, %v937_v49  ;;  %v943_v52 = vsub.f32 %v932_v50, %v941_v41  ;;  %3104 = vset.pattern.permute.xlu0 %v3283_v31  ;;  %v1032_v41 = vsub.f32 %v1022_v28, %v1027_v26  ;;  %v3284_v43 = vmov 76  }
 0x131   : > { %v928_v53 = vadd.f32 %v926_v40, %v910_v45  ;;  %v929_v54 = vadd.f32 %v927_v44, %v911_v47  ;;  %3063 = vset.pattern.permute.xlu1 %v3279_v56  ;;  %2371 = vperm.xlu0 %3104, %v3754_v24   ;;  %v1045_v44 = vrot.slane %v3758_v60, %v3616_v12  ;;  %v1035_v56 = vand.u32 2147483647, %v1033_v42 }
 0x132   : > { %v944_v58 = vand.u32 2147483647, %v942_v51  ;;  %v945_v59 = vand.u32 2147483647, %v943_v52  ;;  %1633 = vperm.xlu1 %3063, %v3754_v24   ;;  %v1049_v45 = vrot.slane %v3765_v1, %v3616_v12  ;;  %v3814_v52 = vld [vmem:[%s3498_s12 + $0x50] sm:$0xff] }
 0x133   : > { %v1063_v1 = vrot.slane %v3814_v52, %v3556_v22  ;;  %v1081_v33 = vrot.slane %v3814_v52, %v3574_v30 }
 0x134   : > { %v946_v62 = vadd.f32 %v944_v58, %v928_v53  ;;  %v947_v63 = vadd.f32 %v945_v59, %v929_v54  ;;  %v950_v0 = vpop.permute.xlu1 %949  ;;  %v1034_v54 = vand.u32 2147483647, %v1032_v41  ;;  %v3285_v59 = vmov 78  }
 0x135   : > { %v960_v2 = vsub.f32 %v950_v0, %v955_v11  ;;  %v961_v3 = vsub.f32 %v950_v0, %v959_v13  ;;  %v3817_v13 = vld [vmem:[%s3498_s12 + $0x58] sm:$0xff]  ;;  %v3286_v0 = vmov 116  }
 0x136   : > { %3064 = vset.pattern.permute.xlu1 %v3281_v6  ;;  %v1067_v61 = vrot.slane %v3817_v13, %v3556_v22  ;;  %3107 = vset.pattern.permute.xlu0 %v3286_v0 }
 0x137   : > { %v962_v9 = vand.u32 2147483647, %v960_v2  ;;  %v963_v10 = vand.u32 2147483647, %v961_v3  ;;  %1651 = vperm.xlu1 %3064, %v3754_v24   ;;  %2425 = vperm.xlu0 %3107, %v3754_v24  }
 0x139   : > { %v964_v14 = vadd.f32 %v962_v9, %v946_v62  ;;  %v965_v15 = vadd.f32 %v963_v10, %v947_v63  ;;  %v986_v18 = vpop.permute.xlu1 %985  ;;  %v1085_v62 = vrot.slane %v3817_v13, %v3574_v30  ;;  %v1076_v63 = vpop.permute.xlu0 %1075 }
 0x13a   : > { %v996_v20 = vsub.f32 %v986_v18, %v991_v7  ;;  %v997_v32 = vsub.f32 %v986_v18, %v995_v8  ;;  %v1086_v9 = vsub.f32 %v1076_v63, %v1081_v33 }
 0x13b   : > { %3066 = vset.pattern.permute.xlu1 %v3282_v21  ;;  %v982_v19 = vadd.f32 %v980_v16, %v964_v14  ;;  %v983_v48 = vadd.f32 %v981_v17, %v965_v15  ;;  %v1087_v10 = vsub.f32 %v1076_v63, %v1085_v62  ;;  %v3287_v14 = vmov 79  }
 0x13c   : > { %1687 = vperm.xlu1 %3066, %v3754_v24   ;;  %v998_v36 = vand.u32 2147483647, %v996_v20  ;;  %v999_v38 = vand.u32 2147483647, %v997_v32  ;;  %v1099_v15 = vrot.slane %v3814_v52, %v3571_v29  ;;  %v1103_v16 = vrot.slane %v3817_v13, %v3571_v29 }
 0x13d   : > { %v1089_v26 = vand.u32 2147483647, %v1087_v10 }
 0x13e   : > { %v1004_v39 = vpop.permute.xlu1 %1003  ;;  %v1000_v47 = vadd.f32 %v998_v36, %v982_v19  ;;  %v1001_v50 = vadd.f32 %v999_v38, %v983_v48  ;;  %v3288_v19 = vmov 81   ;;  %v1117_v48 = vrot.slane %v3814_v52, %v3578_v34 }
 0x13f   : > { %v1014_v40 = vsub.f32 %v1004_v39, %v1009_v35  ;;  %v1015_v49 = vsub.f32 %v1004_v39, %v1013_v25  ;;  %v1088_v25 = vand.u32 2147483647, %v1086_v9  ;;  %v1121_v36 = vrot.slane %v3817_v13, %v3578_v34 }
 0x140   : > { %3067 = vset.pattern.permute.xlu1 %v3284_v43  ;;  %v1135_v38 = vrot.slane %v3814_v52, %v3581_v37  ;;  %v1139_v39 = vrot.slane %v3817_v13, %v3581_v37 }
 0x141   : > { %v1016_v11 = vand.u32 2147483647, %v1014_v40  ;;  %v1017_v51 = vand.u32 2147483647, %v1015_v49  ;;  %1705 = vperm.xlu1 %3067, %v3754_v24   ;;  %v1130_v40 = vpop.permute.xlu0 %1129  ;;  %v3289_v49 = vmov 119  }
 0x142   : > { %3110 = vset.pattern.permute.xlu0 %v3289_v49 }
 0x143   : > { %v1018_v23 = vadd.f32 %v1016_v11, %v1000_v47  ;;  %v1019_v53 = vadd.f32 %v1017_v51, %v1001_v50  ;;  %v1040_v57 = vpop.permute.xlu1 %1039  ;;  %2479 = vperm.xlu0 %3110, %v3754_v24   ;;  %v1140_v11 = vsub.f32 %v1130_v40, %v1135_v38  ;;  %v1141_v51 = vsub.f32 %v1130_v40, %v1139_v39 }
 0x144   : > { %v1050_v58 = vsub.f32 %v1040_v57, %v1045_v44  ;;  %v1051_v60 = vsub.f32 %v1040_v57, %v1049_v45 }
 0x145   : > { %3069 = vset.pattern.permute.xlu1 %v3285_v59  ;;  %v1036_v2 = vadd.f32 %v1034_v54, %v1018_v23  ;;  %v1037_v3 = vadd.f32 %v1035_v56, %v1019_v53  ;;  %v3290_v23 = vmov 82   ;;  %v1153_v53 = vrot.slane %v3814_v52, %v3593_v46 }
 0x146   : > { %1741 = vperm.xlu1 %3069, %v3754_v24   ;;  %v1052_v4 = vand.u32 2147483647, %v1050_v58  ;;  %v1053_v5 = vand.u32 2147483647, %v1051_v60  ;;  %v1157_v54 = vrot.slane %v3817_v13, %v3593_v46  ;;  %v1143_v33 = vand.u32 2147483647, %v1141_v51 }
 0x148   : > { %v1058_v6 = vpop.permute.xlu1 %1057  ;;  %v1054_v17 = vadd.f32 %v1052_v4, %v1036_v2  ;;  %v1055_v18 = vadd.f32 %v1053_v5, %v1037_v3  ;;  %v3291_v2 = vmov 84   ;;  %v1171_v3 = vrot.slane %v3814_v52, %v3605_v55 }
 0x149   : > { %v1068_v7 = vsub.f32 %v1058_v6, %v1063_v1  ;;  %v1069_v8 = vsub.f32 %v1058_v6, %v1067_v61  ;;  %v1142_v61 = vand.u32 2147483647, %v1140_v11  ;;  %v1175_v4 = vrot.slane %v3817_v13, %v3605_v55 }
 0x14a   : > { %3070 = vset.pattern.permute.xlu1 %v3287_v14  ;;  %v1189_v5 = vrot.slane %v3814_v52, %v3616_v12  ;;  %v1193_v6 = vrot.slane %v3817_v13, %v3616_v12 }
 0x14b   : > { %v1070_v20 = vand.u32 2147483647, %v1068_v7  ;;  %v1071_v32 = vand.u32 2147483647, %v1069_v8  ;;  %1759 = vperm.xlu1 %3070, %v3754_v24   ;;  %v1184_v7 = vpop.permute.xlu0 %1183  ;;  %v3292_v8 = vmov 122  }
 0x14c   : > { %3113 = vset.pattern.permute.xlu0 %v3292_v8  ;;  %v1195_v13 = vsub.f32 %v1184_v7, %v1193_v6 }
 0x14d   : > { %v1072_v35 = vadd.f32 %v1070_v20, %v1054_v17  ;;  %v1073_v21 = vadd.f32 %v1071_v32, %v1055_v18  ;;  %v1094_v27 = vpop.permute.xlu1 %1093  ;;  %v3862_v17 = vld [vmem:[%s3498_s12 + $0x68] sm:$0xff]  ;;  %2533 = vperm.xlu0 %3113, %v3754_v24   ;;  %v1194_v32 = vsub.f32 %v1184_v7, %v1189_v5  ;;  %v3297_v7 = vmov 127  }
 0x14e   : > { %v1104_v28 = vsub.f32 %v1094_v27, %v1099_v15  ;;  %v1105_v31 = vsub.f32 %v1094_v27, %v1103_v16  ;;  %v3859_v16 = vld [vmem:[%s3498_s12 + $0x60] sm:$0xff]  ;;  %v1197_v38 = vand.u32 2147483647, %v1195_v13 }
 0x14f   : > { %3072 = vset.pattern.permute.xlu1 %v3288_v19  ;;  %v1090_v41 = vadd.f32 %v1088_v25, %v1072_v35  ;;  %v1091_v42 = vadd.f32 %v1089_v26, %v1073_v21  ;;  %v3293_v35 = vmov 85   ;;  %v1207_v21 = vrot.slane %v3859_v16, %v3556_v22 }
 0x150   : > { %1795 = vperm.xlu1 %3072, %v3754_v24   ;;  %v1106_v43 = vand.u32 2147483647, %v1104_v28  ;;  %v1107_v44 = vand.u32 2147483647, %v1105_v31  ;;  %v1211_v25 = vrot.slane %v3862_v17, %v3556_v22 }
 0x152   : > { %v1112_v45 = vpop.permute.xlu1 %1111  ;;  %v1108_v56 = vadd.f32 %v1106_v43, %v1090_v41  ;;  %v1109_v57 = vadd.f32 %v1107_v44, %v1091_v42  ;;  %v3294_v41 = vmov 87   ;;  %v1225_v42 = vrot.slane %v3859_v16, %v3574_v30 }
 0x153   : > { %v1122_v47 = vsub.f32 %v1112_v45, %v1117_v48  ;;  %v1123_v50 = vsub.f32 %v1112_v45, %v1121_v36  ;;  %v1196_v36 = vand.u32 2147483647, %v1194_v32  ;;  %v1229_v43 = vrot.slane %v3862_v17, %v3574_v30 }
 0x154   : > { %3073 = vset.pattern.permute.xlu1 %v3290_v23  ;;  %v1243_v44 = vrot.slane %v3859_v16, %v3571_v29  ;;  %v1247_v45 = vrot.slane %v3862_v17, %v3571_v29 }
 0x155   : > { %v1124_v58 = vand.u32 2147483647, %v1122_v47  ;;  %v1125_v60 = vand.u32 2147483647, %v1123_v50  ;;  %1813 = vperm.xlu1 %3073, %v3754_v24   ;;  %v1238_v47 = vpop.permute.xlu0 %1237  ;;  %v3295_v50 = vmov 125  }
 0x156   : > { %3116 = vset.pattern.permute.xlu0 %v3295_v50 }
 0x157   : > { %v1126_v1 = vadd.f32 %v1124_v58, %v1108_v56  ;;  %v1127_v59 = vadd.f32 %v1125_v60, %v1109_v57  ;;  %v1148_v62 = vpop.permute.xlu1 %1147  ;;  %2587 = vperm.xlu0 %3116, %v3754_v24   ;;  %v1248_v58 = vsub.f32 %v1238_v47, %v1243_v44  ;;  %v1249_v60 = vsub.f32 %v1238_v47, %v1247_v45 }
 0x158   : > { %v1158_v63 = vsub.f32 %v1148_v62, %v1153_v53  ;;  %v1159_v0 = vsub.f32 %v1148_v62, %v1157_v54 }
 0x159   : > { %3075 = vset.pattern.permute.xlu1 %v3291_v2  ;;  %v1144_v9 = vadd.f32 %v1142_v61, %v1126_v1  ;;  %v1145_v10 = vadd.f32 %v1143_v33, %v1127_v59  ;;  %v3296_v1 = vmov 88   ;;  %v1261_v59 = vrot.slane %v3859_v16, %v3578_v34 }
 0x15a   : > { %1849 = vperm.xlu1 %3075, %v3754_v24   ;;  %v1160_v14 = vand.u32 2147483647, %v1158_v63  ;;  %v1161_v15 = vand.u32 2147483647, %v1159_v0  ;;  %v1265_v61 = vrot.slane %v3862_v17, %v3578_v34  ;;  %v1251_v5 = vand.u32 2147483647, %v1249_v60 }
 0x15b   : > { %3119 = vset.pattern.permute.xlu0 %v3297_v7 }
 0x15c   : > { %v1166_v18 = vpop.permute.xlu1 %1165  ;;  %v1162_v26 = vadd.f32 %v1160_v14, %v1144_v9  ;;  %v1163_v27 = vadd.f32 %v1161_v15, %v1145_v10  ;;  %v3298_v10 = vmov 90   ;;  %v1279_v14 = vrot.slane %v3859_v16, %v3581_v37 }
 0x15d   : > { %v1176_v52 = vsub.f32 %v1166_v18, %v1171_v3  ;;  %v1177_v20 = vsub.f32 %v1166_v18, %v1175_v4  ;;  %v1250_v4 = vand.u32 2147483647, %v1248_v58  ;;  %v1283_v15 = vrot.slane %v3862_v17, %v3581_v37 }
 0x15e   : > { %3076 = vset.pattern.permute.xlu1 %v3293_v35  ;;  %v1297_v18 = vrot.slane %v3859_v16, %v3593_v46 }
 0x15f   : > { %v1178_v28 = vand.u32 2147483647, %v1176_v52  ;;  %v1179_v31 = vand.u32 2147483647, %v1177_v20  ;;  %1867 = vperm.xlu1 %3076, %v3754_v24   ;;  %v1301_v52 = vrot.slane %v3862_v17, %v3593_v46  ;;  %v1292_v20 = vpop.permute.xlu0 %1291 }
 0x161   : > { %v1180_v19 = vadd.f32 %v1178_v28, %v1162_v26  ;;  %v1181_v48 = vadd.f32 %v1179_v31, %v1163_v27  ;;  %v1202_v39 = vpop.permute.xlu1 %1201  ;;  %v1302_v28 = vsub.f32 %v1292_v20, %v1297_v18  ;;  %v1303_v31 = vsub.f32 %v1292_v20, %v1301_v52 }
 0x162   : > { %v1212_v40 = vsub.f32 %v1202_v39, %v1207_v21  ;;  %v1213_v49 = vsub.f32 %v1202_v39, %v1211_v25 }
 0x163   : > { %3078 = vset.pattern.permute.xlu1 %v3294_v41  ;;  %v1198_v11 = vadd.f32 %v1196_v36, %v1180_v19  ;;  %v1199_v51 = vadd.f32 %v1197_v38, %v1181_v48  ;;  %v3299_v19 = vmov 91   ;;  %v1315_v48 = vrot.slane %v3859_v16, %v3605_v55  ;;  %v3901_v41 = vld [vmem:[%s3498_s12 + $0x70] sm:$0xff]  ;;  %v1346_v58 = vpop.permute.xlu0 %1345 }
 0x164   : > { %1903 = vperm.xlu1 %3078, %v3754_v24   ;;  %v1214_v23 = vand.u32 2147483647, %v1212_v40  ;;  %v1215_v53 = vand.u32 2147483647, %v1213_v49  ;;  %v1319_v36 = vrot.slane %v3862_v17, %v3605_v55  ;;  %v1304_v45 = vand.u32 2147483647, %v1302_v28 }
 0x165   : > { %v1305_v47 = vand.u32 2147483647, %v1303_v31 }
 0x166   : > { %v1220_v54 = vpop.permute.xlu1 %1219  ;;  %v1216_v33 = vadd.f32 %v1214_v23, %v1198_v11  ;;  %v1217_v62 = vadd.f32 %v1215_v53, %v1199_v51  ;;  %v3300_v23 = vmov 93   ;;  %v1333_v53 = vrot.slane %v3859_v16, %v3616_v12 }
 0x167   : > { %v1230_v56 = vsub.f32 %v1220_v54, %v1225_v42  ;;  %v1231_v57 = vsub.f32 %v1220_v54, %v1229_v43  ;;  %v3904_v42 = vld [vmem:[%s3498_s12 + $0x78] sm:$0xff]  ;;  %v1337_v54 = vrot.slane %v3862_v17, %v3616_v12  ;;  %v1369_v17 = vrot.slane %v3901_v41, %v3574_v30 }
 0x168   : > { %3079 = vset.pattern.permute.xlu1 %v3296_v1 }
 0x169   : > { %v1232_v63 = vand.u32 2147483647, %v1230_v56  ;;  %v1233_v0 = vand.u32 2147483647, %v1231_v57  ;;  %1921 = vperm.xlu1 %3079, %v3754_v24   ;;  %v1351_v56 = vrot.slane %v3901_v41, %v3556_v22  ;;  %v1355_v57 = vrot.slane %v3904_v42, %v3556_v22 }
 0x16b   : > { %v1234_v2 = vadd.f32 %v1232_v63, %v1216_v33  ;;  %v1235_v3 = vadd.f32 %v1233_v0, %v1217_v62  ;;  %v1256_v6 = vpop.permute.xlu1 %1255  ;;  %v1356_v16 = vsub.f32 %v1346_v58, %v1351_v56  ;;  %v1357_v0 = vsub.f32 %v1346_v58, %v1355_v57 }
 0x16c   : > { %v1266_v8 = vsub.f32 %v1256_v6, %v1261_v59  ;;  %v1267_v9 = vsub.f32 %v1256_v6, %v1265_v61 }
 0x16d   : > { %3081 = vset.pattern.permute.xlu1 %v3298_v10  ;;  %v1252_v32 = vadd.f32 %v1250_v4, %v1234_v2  ;;  %v1253_v13 = vadd.f32 %v1251_v5, %v1235_v3  ;;  %v3301_v2 = vmov 94   ;;  %v1373_v3 = vrot.slane %v3904_v42, %v3574_v30 }
 0x16e   : > { %1957 = vperm.xlu1 %3081, %v3754_v24   ;;  %v1268_v35 = vand.u32 2147483647, %v1266_v8  ;;  %v1269_v21 = vand.u32 2147483647, %v1267_v9 }
 0x170   : > { %v1274_v25 = vpop.permute.xlu1 %1273  ;;  %v1270_v38 = vadd.f32 %v1268_v35, %v1252_v32  ;;  %v1271_v39 = vadd.f32 %v1269_v21, %v1253_v13  ;;  %v3302_v32 = vmov 96   ;;  %v1387_v13 = vrot.slane %v3901_v41, %v3571_v29 }
 0x171   : > { %v1284_v26 = vsub.f32 %v1274_v25, %v1279_v14  ;;  %v1285_v27 = vsub.f32 %v1274_v25, %v1283_v15  ;;  %v1358_v14 = vand.u32 2147483647, %v1356_v16  ;;  %v1359_v15 = vand.u32 2147483647, %v1357_v0 }
 0x172   : > { %3082 = vset.pattern.permute.xlu1 %v3299_v19  ;;  %v1391_v35 = vrot.slane %v3904_v42, %v3571_v29  ;;  %v1405_v21 = vrot.slane %v3901_v41, %v3578_v34  ;;  %v1409_v25 = vrot.slane %v3904_v42, %v3578_v34 }
 0x173   : > { %v1286_v40 = vand.u32 2147483647, %v1284_v26  ;;  %v1287_v49 = vand.u32 2147483647, %v1285_v27  ;;  %1975 = vperm.xlu1 %3082, %v3754_v24   ;;  %v1400_v26 = vpop.permute.xlu0 %1399 }
 0x175   : > { %v1288_v43 = vadd.f32 %v1286_v40, %v1270_v38  ;;  %v1289_v44 = vadd.f32 %v1287_v49, %v1271_v39  ;;  %v1310_v50 = vpop.permute.xlu1 %1309  ;;  %v1410_v39 = vsub.f32 %v1400_v26, %v1405_v21  ;;  %v1411_v40 = vsub.f32 %v1400_v26, %v1409_v25 }
 0x176   : > { %v1320_v11 = vsub.f32 %v1310_v50, %v1315_v48  ;;  %v1321_v51 = vsub.f32 %v1310_v50, %v1319_v36  ;;  %v3303_v49 = vmov 97  }
 0x177   : > { %3084 = vset.pattern.permute.xlu1 %v3300_v23  ;;  %v1306_v60 = vadd.f32 %v1304_v45, %v1288_v43  ;;  %v1307_v1 = vadd.f32 %v1305_v47, %v1289_v44  ;;  %v1423_v43 = vrot.slane %v3901_v41, %v3581_v37  ;;  %v1427_v44 = vrot.slane %v3904_v42, %v3581_v37 }
 0x178   : > { %2011 = vperm.xlu1 %3084, %v3754_v24   ;;  %v1322_v59 = vand.u32 2147483647, %v1320_v11  ;;  %v1323_v61 = vand.u32 2147483647, %v1321_v51 }
 0x17a   : > { %v1328_v33 = vpop.permute.xlu1 %1327  ;;  %v1324_v4 = vadd.f32 %v1322_v59, %v1306_v60  ;;  %v1325_v5 = vadd.f32 %v1323_v61, %v1307_v1  ;;  %v3304_v60 = vmov 99   ;;  %v1441_v1 = vrot.slane %v3901_v41, %v3593_v46 }
 0x17b   : > { %v1338_v62 = vsub.f32 %v1328_v33, %v1333_v53  ;;  %v1339_v63 = vsub.f32 %v1328_v33, %v1337_v54  ;;  %v1412_v53 = vand.u32 2147483647, %v1410_v39  ;;  %v1413_v54 = vand.u32 2147483647, %v1411_v40 }
 0x17c   : > { %3085 = vset.pattern.permute.xlu1 %v3301_v2  ;;  %v1445_v59 = vrot.slane %v3904_v42, %v3593_v46  ;;  %v1459_v61 = vrot.slane %v3901_v41, %v3605_v55  ;;  %v1463_v33 = vrot.slane %v3904_v42, %v3605_v55 }
 0x17d   : > { %v1340_v6 = vand.u32 2147483647, %v1338_v62  ;;  %v1341_v8 = vand.u32 2147483647, %v1339_v63  ;;  %2029 = vperm.xlu1 %3085, %v3754_v24   ;;  %v1454_v62 = vpop.permute.xlu0 %1453 }
 0x17f   : > { %v1342_v9 = vadd.f32 %v1340_v6, %v1324_v4  ;;  %v1343_v10 = vadd.f32 %v1341_v8, %v1325_v5  ;;  %v1364_v18 = vpop.permute.xlu1 %1363  ;;  %v1464_v5 = vsub.f32 %v1454_v62, %v1459_v61  ;;  %v1465_v6 = vsub.f32 %v1454_v62, %v1463_v33 }
 0x180   : > { %v1374_v52 = vsub.f32 %v1364_v18, %v1369_v17  ;;  %v1375_v20 = vsub.f32 %v1364_v18, %v1373_v3  ;;  %v3305_v8 = vmov 100  }
 0x181   : > { %3087 = vset.pattern.permute.xlu1 %v3302_v32  ;;  %v1360_v27 = vadd.f32 %v1358_v14, %v1342_v9  ;;  %v1361_v28 = vadd.f32 %v1359_v15, %v1343_v10  ;;  %v1477_v9 = vrot.slane %v3901_v41, %v3616_v12  ;;  %v1481_v10 = vrot.slane %v3904_v42, %v3616_v12  ;;  %v3952_v32 = vld [vmem:[%s3498_s12 + $0x88] sm:$0xff] }
 0x182   : > { %2065 = vperm.xlu1 %3087, %v3754_v24   ;;  %v1376_v31 = vand.u32 2147483647, %v1374_v52  ;;  %v1377_v19 = vand.u32 2147483647, %v1375_v20  ;;  %v3949_v20 = vld [vmem:[%s3498_s12 + $0x80] sm:$0xff] }
 0x183   : > { %v1466_v21 = vand.u32 2147483647, %v1464_v5  ;;  %v1467_v25 = vand.u32 2147483647, %v1465_v6  ;;  %v1495_v42 = vrot.slane %v3949_v20, %v3556_v22 }
 0x184   : > { %v1382_v48 = vpop.permute.xlu1 %1381  ;;  %v1378_v45 = vadd.f32 %v1376_v31, %v1360_v27  ;;  %v1379_v47 = vadd.f32 %v1377_v19, %v1361_v28  ;;  %v3306_v28 = vmov 102   ;;  %v1499_v31 = vrot.slane %v3952_v32, %v3556_v22 }
 0x185   : > { %v1392_v36 = vsub.f32 %v1382_v48, %v1387_v13  ;;  %v1393_v38 = vsub.f32 %v1382_v48, %v1391_v35  ;;  %v1513_v19 = vrot.slane %v3949_v20, %v3574_v30  ;;  %v1517_v48 = vrot.slane %v3952_v32, %v3574_v30 }
 0x186   : > { %3088 = vset.pattern.permute.xlu1 %v3303_v49 }
 0x187   : > { %v1394_v50 = vand.u32 2147483647, %v1392_v36  ;;  %v1395_v11 = vand.u32 2147483647, %v1393_v38  ;;  %2083 = vperm.xlu1 %3088, %v3754_v24   ;;  %v1508_v36 = vpop.permute.xlu0 %1507 }
 0x189   : > { %v1396_v51 = vadd.f32 %v1394_v50, %v1378_v45  ;;  %v1397_v23 = vadd.f32 %v1395_v11, %v1379_v47  ;;  %v1418_v56 = vpop.permute.xlu1 %1417  ;;  %v1518_v47 = vsub.f32 %v1508_v36, %v1513_v19  ;;  %v1519_v50 = vsub.f32 %v1508_v36, %v1517_v48 }
 0x18a   : > { %v1428_v57 = vsub.f32 %v1418_v56, %v1423_v43  ;;  %v1429_v58 = vsub.f32 %v1418_v56, %v1427_v44  ;;  %v3307_v11 = vmov 103  }
 0x18b   : > { %3090 = vset.pattern.permute.xlu1 %v3304_v60  ;;  %v1414_v63 = vadd.f32 %v1412_v53, %v1396_v51  ;;  %v1415_v16 = vadd.f32 %v1413_v54, %v1397_v23  ;;  %v1531_v51 = vrot.slane %v3949_v20, %v3571_v29  ;;  %v1535_v23 = vrot.slane %v3952_v32, %v3571_v29 }
 0x18c   : > { %2119 = vperm.xlu1 %3090, %v3754_v24   ;;  %v1430_v0 = vand.u32 2147483647, %v1428_v57  ;;  %v1431_v2 = vand.u32 2147483647, %v1429_v58 }
 0x18e   : > { %v1436_v17 = vpop.permute.xlu1 %1435  ;;  %v1432_v14 = vadd.f32 %v1430_v0, %v1414_v63  ;;  %v1433_v15 = vadd.f32 %v1431_v2, %v1415_v16  ;;  %v3308_v63 = vmov 105   ;;  %v1549_v16 = vrot.slane %v3949_v20, %v3578_v34 }
 0x18f   : > { %v1446_v3 = vsub.f32 %v1436_v17, %v1441_v1  ;;  %v1447_v4 = vsub.f32 %v1436_v17, %v1445_v59  ;;  %v1520_v1 = vand.u32 2147483647, %v1518_v47  ;;  %v1521_v59 = vand.u32 2147483647, %v1519_v50 }
 0x190   : > { %3091 = vset.pattern.permute.xlu1 %v3305_v8  ;;  %v1553_v0 = vrot.slane %v3952_v32, %v3578_v34  ;;  %v1567_v2 = vrot.slane %v3949_v20, %v3581_v37  ;;  %v1571_v17 = vrot.slane %v3952_v32, %v3581_v37 }
 0x191   : > { %v1448_v18 = vand.u32 2147483647, %v1446_v3  ;;  %v1449_v52 = vand.u32 2147483647, %v1447_v4  ;;  %2137 = vperm.xlu1 %3091, %v3754_v24   ;;  %v1562_v3 = vpop.permute.xlu0 %1561 }
 0x193   : > { %v1450_v13 = vadd.f32 %v1448_v18, %v1432_v14  ;;  %v1451_v35 = vadd.f32 %v1449_v52, %v1433_v15  ;;  %v1472_v26 = vpop.permute.xlu1 %1471  ;;  %v1572_v15 = vsub.f32 %v1562_v3, %v1567_v2  ;;  %v1573_v18 = vsub.f32 %v1562_v3, %v1571_v17 }
 0x194   : > { %v1482_v27 = vsub.f32 %v1472_v26, %v1477_v9  ;;  %v1483_v41 = vsub.f32 %v1472_v26, %v1481_v10  ;;  %v3309_v52 = vmov 106  }
 0x195   : > { %3093 = vset.pattern.permute.xlu1 %v3306_v28  ;;  %v1468_v38 = vadd.f32 %v1466_v21, %v1450_v13  ;;  %v1469_v39 = vadd.f32 %v1467_v25, %v1451_v35  ;;  %v1585_v13 = vrot.slane %v3949_v20, %v3593_v46  ;;  %v1589_v35 = vrot.slane %v3952_v32, %v3593_v46 }
 0x196   : > { %2173 = vperm.xlu1 %3093, %v3754_v24   ;;  %v1484_v40 = vand.u32 2147483647, %v1482_v27  ;;  %v1485_v49 = vand.u32 2147483647, %v1483_v41 }
 0x198   : > { %v1490_v43 = vpop.permute.xlu1 %1489  ;;  %v1486_v53 = vadd.f32 %v1484_v40, %v1468_v38  ;;  %v1487_v54 = vadd.f32 %v1485_v49, %v1469_v39  ;;  %v3310_v38 = vmov 108   ;;  %v1603_v39 = vrot.slane %v3949_v20, %v3605_v55 }
 0x199   : > { %v1500_v44 = vsub.f32 %v1490_v43, %v1495_v42  ;;  %v1501_v45 = vsub.f32 %v1490_v43, %v1499_v31  ;;  %v1574_v42 = vand.u32 2147483647, %v1572_v15  ;;  %v1575_v31 = vand.u32 2147483647, %v1573_v18 }
 0x19a   : > { %3094 = vset.pattern.permute.xlu1 %v3307_v11  ;;  %v1607_v40 = vrot.slane %v3952_v32, %v3605_v55  ;;  %v1621_v49 = vrot.slane %v3949_v20, %v3616_v12  ;;  %v1625_v43 = vrot.slane %v3952_v32, %v3616_v12  ;;  %v3311_v20 = vmov 109  }
 0x19b   : > { %v1502_v56 = vand.u32 2147483647, %v1500_v44  ;;  %v1503_v57 = vand.u32 2147483647, %v1501_v45  ;;  %2191 = vperm.xlu1 %3094, %v3754_v24   ;;  %v1616_v44 = vpop.permute.xlu0 %1615 }
 0x19d   : > { %v1504_v58 = vadd.f32 %v1502_v56, %v1486_v53  ;;  %v1505_v60 = vadd.f32 %v1503_v57, %v1487_v54  ;;  %v1526_v61 = vpop.permute.xlu1 %1525  ;;  %v1626_v57 = vsub.f32 %v1616_v44, %v1621_v49 }
 0x19e   : > { %v1536_v33 = vsub.f32 %v1526_v61, %v1531_v51  ;;  %v1537_v62 = vsub.f32 %v1526_v61, %v1535_v23  ;;  %v3992_v51 = vld [vmem:[%s3498_s12 + $0x90] sm:$0xff]  ;;  %v3995_v23 = vld [vmem:[%s3498_s12 + $0x98] sm:$0xff] }
 0x19f   : > { %3096 = vset.pattern.permute.xlu1 %v3308_v63  ;;  %v1522_v4 = vadd.f32 %v1520_v1, %v1504_v58  ;;  %v1523_v5 = vadd.f32 %v1521_v59, %v1505_v60  ;;  %v1627_v58 = vsub.f32 %v1616_v44, %v1625_v43  ;;  %v1639_v32 = vrot.slane %v3992_v51, %v3556_v22 }
 0x1a0   : > { %2227 = vperm.xlu1 %3096, %v3754_v24   ;;  %v1538_v6 = vand.u32 2147483647, %v1536_v33  ;;  %v1539_v8 = vand.u32 2147483647, %v1537_v62  ;;  %v1643_v60 = vrot.slane %v3995_v23, %v3556_v22 }
 0x1a2   : > { %v1544_v9 = vpop.permute.xlu1 %1543  ;;  %v1540_v21 = vadd.f32 %v1538_v6, %v1522_v4  ;;  %v1541_v25 = vadd.f32 %v1539_v8, %v1523_v5  ;;  %v3312_v4 = vmov 111   ;;  %v1657_v5 = vrot.slane %v3992_v51, %v3574_v30 }
 0x1a3   : > { %v1554_v10 = vsub.f32 %v1544_v9, %v1549_v16  ;;  %v1555_v14 = vsub.f32 %v1544_v9, %v1553_v0  ;;  %v1628_v16 = vand.u32 2147483647, %v1626_v57  ;;  %v1629_v0 = vand.u32 2147483647, %v1627_v58  ;;  %v4011_v9 = vld [vmem:[%s3491_s30] sm:$0xff] }
 0x1a4   : > { %3097 = vset.pattern.permute.xlu1 %v3309_v52  ;;  %v1661_v6 = vrot.slane %v3995_v23, %v3574_v30  ;;  %v1675_v8 = vrot.slane %v3992_v51, %v3571_v29 }
 0x1a5   : > { %v1556_v26 = vand.u32 2147483647, %v1554_v10  ;;  %v1557_v27 = vand.u32 2147483647, %v1555_v14  ;;  %2245 = vperm.xlu1 %3097, %v3754_v24   ;;  %v1670_v10 = vpop.permute.xlu0 %1669 }
 0x1a7   : > { %v1558_v41 = vadd.f32 %v1556_v26, %v1540_v21  ;;  %v1559_v28 = vadd.f32 %v1557_v27, %v1541_v25  ;;  %v1580_v19 = vpop.permute.xlu1 %1579  ;;  %v1680_v25 = vsub.f32 %v1670_v10, %v1675_v8  ;;  %v3313_v27 = vmov 112  }
 0x1a8   : > { %v1590_v48 = vsub.f32 %v1580_v19, %v1585_v13  ;;  %v1591_v36 = vsub.f32 %v1580_v19, %v1589_v35 }
 0x1a9   : > { %3099 = vset.pattern.permute.xlu1 %v3310_v38  ;;  %v1576_v45 = vadd.f32 %v1574_v42, %v1558_v41  ;;  %v1577_v47 = vadd.f32 %v1575_v31, %v1559_v28  ;;  %v1693_v41 = vrot.slane %v3992_v51, %v3578_v34  ;;  %v1697_v28 = vrot.slane %v3995_v23, %v3578_v34 }
 0x1aa   : > { %2281 = vperm.xlu1 %3099, %v3754_v24   ;;  %v1592_v50 = vand.u32 2147483647, %v1590_v48  ;;  %v1593_v11 = vand.u32 2147483647, %v1591_v36 }
 0x1ac   : > { %v1598_v53 = vpop.permute.xlu1 %1597  ;;  %v1594_v1 = vadd.f32 %v1592_v50, %v1576_v45  ;;  %v1595_v59 = vadd.f32 %v1593_v11, %v1577_v47  ;;  %v3314_v45 = vmov 114   ;;  %v1711_v47 = vrot.slane %v3992_v51, %v3581_v37 }
 0x1ad   : > { %v1608_v54 = vsub.f32 %v1598_v53, %v1603_v39  ;;  %v1609_v56 = vsub.f32 %v1598_v53, %v1607_v40  ;;  %v1682_v39 = vand.u32 2147483647, %v1680_v25  ;;  %v1715_v50 = vrot.slane %v3995_v23, %v3581_v37 }
 0x1ae   : > { %3100 = vset.pattern.permute.xlu1 %v3311_v20  ;;  %v1729_v11 = vrot.slane %v3992_v51, %v3593_v46  ;;  %v1733_v53 = vrot.slane %v3995_v23, %v3593_v46 }
 0x1af   : > { %v1610_v61 = vand.u32 2147483647, %v1608_v54  ;;  %v1611_v33 = vand.u32 2147483647, %v1609_v56  ;;  %2299 = vperm.xlu1 %3100, %v3754_v24   ;;  %v1679_v24 = vrot.slane %v3995_v23, %v3571_v29  ;;  %v1724_v54 = vpop.permute.xlu0 %1723 }
 0x1b1   : > { %v1612_v62 = vadd.f32 %v1610_v61, %v1594_v1  ;;  %v1613_v63 = vadd.f32 %v1611_v33, %v1595_v59  ;;  %v1634_v2 = vpop.permute.xlu1 %1633  ;;  %v1681_v26 = vsub.f32 %v1670_v10, %v1679_v24  ;;  %v1734_v59 = vsub.f32 %v1724_v54, %v1729_v11 }
 0x1b2   : > { %v1644_v17 = vsub.f32 %v1634_v2, %v1639_v32  ;;  %v1645_v3 = vsub.f32 %v1634_v2, %v1643_v60  ;;  %v1735_v61 = vsub.f32 %v1724_v54, %v1733_v53  ;;  %v3315_v33 = vmov 115  }
 0x1b3   : > { %3102 = vset.pattern.permute.xlu1 %v3312_v4  ;;  %v1630_v14 = vadd.f32 %v1628_v16, %v1612_v62  ;;  %v1631_v15 = vadd.f32 %v1629_v0, %v1613_v63  ;;  %v1683_v40 = vand.u32 2147483647, %v1681_v26  ;;  %v1747_v62 = vrot.slane %v3992_v51, %v3605_v55  ;;  %v4037_v4 = vld [vmem:[%s3498_s12 + $0xa8] sm:$0xff]  ;;  %v1778_v25 = vpop.permute.xlu0 %1777 }
 0x1b4   : > { %2335 = vperm.xlu1 %3102, %v4011_v9   ;;  %v1646_v18 = vand.u32 2147483647, %v1644_v17  ;;  %v1647_v52 = vand.u32 2147483647, %v1645_v3  ;;  %v1751_v63 = vrot.slane %v3995_v23, %v3605_v55  ;;  %v4034_v3 = vld [vmem:[%s3498_s12 + $0xa0] sm:$0xff] }
 0x1b5   : > { %v1736_v8 = vand.u32 2147483647, %v1734_v59  ;;  %v1737_v24 = vand.u32 2147483647, %v1735_v61 }
 0x1b6   : > { %v1652_v13 = vpop.permute.xlu1 %1651  ;;  %v1648_v42 = vadd.f32 %v1646_v18, %v1630_v14  ;;  %v1649_v31 = vadd.f32 %v1647_v52, %v1631_v15  ;;  %v3316_v18 = vmov 117   ;;  %v1765_v52 = vrot.slane %v3992_v51, %v3616_v12 }
 0x1b7   : > { %v1662_v35 = vsub.f32 %v1652_v13, %v1657_v5  ;;  %v1663_v21 = vsub.f32 %v1652_v13, %v1661_v6  ;;  %v1769_v13 = vrot.slane %v3995_v23, %v3616_v12  ;;  %v1801_v23 = vrot.slane %v4034_v3, %v3574_v30 }
 0x1b8   : > { %3103 = vset.pattern.permute.xlu1 %v3313_v27 }
 0x1b9   : > { %v1664_v19 = vand.u32 2147483647, %v1662_v35  ;;  %v1665_v48 = vand.u32 2147483647, %v1663_v21  ;;  %2353 = vperm.xlu1 %3103, %v4011_v9   ;;  %v1783_v35 = vrot.slane %v4034_v3, %v3556_v22  ;;  %v1787_v21 = vrot.slane %v4037_v4, %v3556_v22 }
 0x1bb   : > { %v1666_v36 = vadd.f32 %v1664_v19, %v1648_v42  ;;  %v1667_v38 = vadd.f32 %v1665_v48, %v1649_v31  ;;  %v1688_v49 = vpop.permute.xlu1 %1687  ;;  %v1788_v51 = vsub.f32 %v1778_v25, %v1783_v35  ;;  %v1789_v48 = vsub.f32 %v1778_v25, %v1787_v21 }
 0x1bc   : > { %v1698_v43 = vsub.f32 %v1688_v49, %v1693_v41  ;;  %v1699_v44 = vsub.f32 %v1688_v49, %v1697_v28 }
 0x1bd   : > { %3105 = vset.pattern.permute.xlu1 %v3314_v45  ;;  %v1684_v56 = vadd.f32 %v1682_v39, %v1666_v36  ;;  %v1685_v57 = vadd.f32 %v1683_v40, %v1667_v38  ;;  %v3317_v36 = vmov 118   ;;  %v1805_v38 = vrot.slane %v4037_v4, %v3574_v30 }
 0x1be   : > { %2389 = vperm.xlu1 %3105, %v4011_v9   ;;  %v1700_v58 = vand.u32 2147483647, %v1698_v43  ;;  %v1701_v20 = vand.u32 2147483647, %v1699_v44 }
 0x1c0   : > { %v1706_v32 = vpop.permute.xlu1 %1705  ;;  %v1702_v16 = vadd.f32 %v1700_v58, %v1684_v56  ;;  %v1703_v0 = vadd.f32 %v1701_v20, %v1685_v57  ;;  %v3318_v56 = vmov 120   ;;  %v1819_v57 = vrot.slane %v4034_v3, %v3571_v29 }
 0x1c1   : > { %v1716_v60 = vsub.f32 %v1706_v32, %v1711_v47  ;;  %v1717_v1 = vsub.f32 %v1706_v32, %v1715_v50  ;;  %v1790_v47 = vand.u32 2147483647, %v1788_v51  ;;  %v1791_v50 = vand.u32 2147483647, %v1789_v48 }
 0x1c2   : > { %3106 = vset.pattern.permute.xlu1 %v3315_v33  ;;  %v1823_v58 = vrot.slane %v4037_v4, %v3571_v29  ;;  %v1837_v20 = vrot.slane %v4034_v3, %v3578_v34  ;;  %v1841_v32 = vrot.slane %v4037_v4, %v3578_v34 }
 0x1c3   : > { %v1718_v2 = vand.u32 2147483647, %v1716_v60  ;;  %v1719_v17 = vand.u32 2147483647, %v1717_v1  ;;  %2407 = vperm.xlu1 %3106, %v4011_v9   ;;  %v1832_v60 = vpop.permute.xlu0 %1831 }
 0x1c5   : > { %v1720_v5 = vadd.f32 %v1718_v2, %v1702_v16  ;;  %v1721_v6 = vadd.f32 %v1719_v17, %v1703_v0  ;;  %v1742_v10 = vpop.permute.xlu1 %1741  ;;  %v1842_v0 = vsub.f32 %v1832_v60, %v1837_v20  ;;  %v1843_v2 = vsub.f32 %v1832_v60, %v1841_v32 }
 0x1c6   : > { %v1752_v14 = vsub.f32 %v1742_v10, %v1747_v62  ;;  %v1753_v15 = vsub.f32 %v1742_v10, %v1751_v63  ;;  %v3319_v17 = vmov 121  }
 0x1c7   : > { %3108 = vset.pattern.permute.xlu1 %v3316_v18  ;;  %v1738_v26 = vadd.f32 %v1736_v8, %v1720_v5  ;;  %v1739_v27 = vadd.f32 %v1737_v24, %v1721_v6  ;;  %v1855_v5 = vrot.slane %v4034_v3, %v3581_v37  ;;  %v1859_v6 = vrot.slane %v4037_v4, %v3581_v37 }
 0x1c8   : > { %2443 = vperm.xlu1 %3108, %v4011_v9   ;;  %v1754_v41 = vand.u32 2147483647, %v1752_v14  ;;  %v1755_v28 = vand.u32 2147483647, %v1753_v15 }
 0x1ca   : > { %v1760_v42 = vpop.permute.xlu1 %1759  ;;  %v1756_v39 = vadd.f32 %v1754_v41, %v1738_v26  ;;  %v1757_v40 = vadd.f32 %v1755_v28, %v1739_v27  ;;  %v3320_v26 = vmov 123   ;;  %v1873_v27 = vrot.slane %v4034_v3, %v3593_v46 }
 0x1cb   : > { %v1770_v31 = vsub.f32 %v1760_v42, %v1765_v52  ;;  %v1771_v19 = vsub.f32 %v1760_v42, %v1769_v13  ;;  %v1844_v52 = vand.u32 2147483647, %v1842_v0  ;;  %v1845_v13 = vand.u32 2147483647, %v1843_v2 }
 0x1cc   : > { %3109 = vset.pattern.permute.xlu1 %v3317_v36  ;;  %v1877_v41 = vrot.slane %v4037_v4, %v3593_v46  ;;  %v1891_v28 = vrot.slane %v4034_v3, %v3605_v55  ;;  %v1895_v42 = vrot.slane %v4037_v4, %v3605_v55 }
 0x1cd   : > { %v1772_v49 = vand.u32 2147483647, %v1770_v31  ;;  %v1773_v43 = vand.u32 2147483647, %v1771_v19  ;;  %2461 = vperm.xlu1 %3109, %v4011_v9   ;;  %v1886_v31 = vpop.permute.xlu0 %1885 }
 0x1cf   : > { %v1774_v44 = vadd.f32 %v1772_v49, %v1756_v39  ;;  %v1775_v45 = vadd.f32 %v1773_v43, %v1757_v40  ;;  %v1796_v11 = vpop.permute.xlu1 %1795  ;;  %v1896_v40 = vsub.f32 %v1886_v31, %v1891_v28  ;;  %v1897_v49 = vsub.f32 %v1886_v31, %v1895_v42 }
 0x1d0   : > { %v1806_v53 = vsub.f32 %v1796_v11, %v1801_v23  ;;  %v1807_v54 = vsub.f32 %v1796_v11, %v1805_v38  ;;  %v3321_v43 = vmov 124  }
 0x1d1   : > { %3111 = vset.pattern.permute.xlu1 %v3318_v56  ;;  %v1792_v1 = vadd.f32 %v1790_v47, %v1774_v44  ;;  %v1793_v59 = vadd.f32 %v1791_v50, %v1775_v45  ;;  %v1909_v44 = vrot.slane %v4034_v3, %v3616_v12  ;;  %v1913_v45 = vrot.slane %v4037_v4, %v3616_v12  ;;  %v4085_v56 = vld [vmem:[%s3498_s12 + $0xb8] sm:$0xff] }
 0x1d2   : > { %2497 = vperm.xlu1 %3111, %v4011_v9   ;;  %v1808_v61 = vand.u32 2147483647, %v1806_v53  ;;  %v1809_v33 = vand.u32 2147483647, %v1807_v54  ;;  %v4082_v54 = vld [vmem:[%s3498_s12 + $0xb0] sm:$0xff]  ;;  %v1985_v31 = vrot.slane %v4085_v56, %v3578_v34 }
 0x1d3   : > { %v1898_v20 = vand.u32 2147483647, %v1896_v40  ;;  %v1899_v32 = vand.u32 2147483647, %v1897_v49  ;;  %v1927_v4 = vrot.slane %v4082_v54, %v3556_v22 }
 0x1d4   : > { %v1814_v62 = vpop.permute.xlu1 %1813  ;;  %v1810_v8 = vadd.f32 %v1808_v61, %v1792_v1  ;;  %v1811_v24 = vadd.f32 %v1809_v33, %v1793_v59  ;;  %v3322_v59 = vmov 126   ;;  %v1931_v61 = vrot.slane %v4085_v56, %v3556_v22 }
 0x1d5   : > { %v1824_v63 = vsub.f32 %v1814_v62, %v1819_v57  ;;  %v1825_v16 = vsub.f32 %v1814_v62, %v1823_v58  ;;  %v1945_v33 = vrot.slane %v4082_v54, %v3574_v30  ;;  %v1949_v62 = vrot.slane %v4085_v56, %v3574_v30 }
 0x1d6   : > { %3112 = vset.pattern.permute.xlu1 %v3319_v17 }
 0x1d7   : > { %v1826_v10 = vand.u32 2147483647, %v1824_v63  ;;  %v1827_v14 = vand.u32 2147483647, %v1825_v16  ;;  %2515 = vperm.xlu1 %3112, %v4011_v9   ;;  %v1940_v63 = vpop.permute.xlu0 %1939 }
 0x1d9   : > { %v1828_v15 = vadd.f32 %v1826_v10, %v1810_v8  ;;  %v1829_v18 = vadd.f32 %v1827_v14, %v1811_v24  ;;  %v1850_v35 = vpop.permute.xlu1 %1849  ;;  %v1950_v24 = vsub.f32 %v1940_v63, %v1945_v33  ;;  %v1951_v10 = vsub.f32 %v1940_v63, %v1949_v62 }
 0x1da   : > { %v1860_v21 = vsub.f32 %v1850_v35, %v1855_v5  ;;  %v1861_v25 = vsub.f32 %v1850_v35, %v1859_v6  ;;  %v1963_v14 = vrot.slane %v4082_v54, %v3571_v29  ;;  %v2053_v33 = vrot.slane %v4082_v54, %v3616_v12 }
 0x1db   : > { %3114 = vset.pattern.permute.xlu1 %v3320_v26  ;;  %v1846_v19 = vadd.f32 %v1844_v52, %v1828_v15  ;;  %v1847_v51 = vadd.f32 %v1845_v13, %v1829_v18  ;;  %v1967_v15 = vrot.slane %v4085_v56, %v3571_v29  ;;  %v1952_v26 = vand.u32 2147483647, %v1950_v24 }
 0x1dc   : > { %2551 = vperm.xlu1 %3114, %v4011_v9   ;;  %v1862_v48 = vand.u32 2147483647, %v1860_v21  ;;  %v1863_v36 = vand.u32 2147483647, %v1861_v25  ;;  %v2057_v62 = vrot.slane %v4085_v56, %v3616_v12 }
 0x1de   : > { %v1868_v23 = vpop.permute.xlu1 %1867  ;;  %v1864_v47 = vadd.f32 %v1862_v48, %v1846_v19  ;;  %v1865_v50 = vadd.f32 %v1863_v36, %v1847_v51  ;;  %v1999_v19 = vrot.slane %v4082_v54, %v3581_v37  ;;  %v2003_v51 = vrot.slane %v4085_v56, %v3581_v37 }
 0x1df   : > { %v1878_v38 = vsub.f32 %v1868_v23, %v1873_v27  ;;  %v1879_v39 = vsub.f32 %v1868_v23, %v1877_v41  ;;  %v1953_v27 = vand.u32 2147483647, %v1951_v10 }
 0x1e0   : > { %3115 = vset.pattern.permute.xlu1 %v3321_v43 }
 0x1e1   : > { %v1880_v11 = vand.u32 2147483647, %v1878_v38  ;;  %v1881_v53 = vand.u32 2147483647, %v1879_v39  ;;  %2569 = vperm.xlu1 %3115, %v4011_v9  }
 0x1e3   : > { %v1882_v57 = vadd.f32 %v1880_v11, %v1864_v47  ;;  %v1883_v58 = vadd.f32 %v1881_v53, %v1865_v50  ;;  %v1904_v60 = vpop.permute.xlu1 %1903  ;;  %v2021_v47 = vrot.slane %v4085_v56, %v3593_v46 }
 0x1e4   : > { %v1914_v1 = vsub.f32 %v1904_v60, %v1909_v44  ;;  %v1915_v3 = vsub.f32 %v1904_v60, %v1913_v45  ;;  %v2017_v45 = vrot.slane %v4082_v54, %v3593_v46 }
 0x1e5   : > { %3117 = vset.pattern.permute.xlu1 %v3322_v59  ;;  %v1900_v16 = vadd.f32 %v1898_v20, %v1882_v57  ;;  %v1901_v0 = vadd.f32 %v1899_v32, %v1883_v58 }
 0x1e6   : > { %2605 = vperm.xlu1 %3117, %v4011_v9   ;;  %v1916_v2 = vand.u32 2147483647, %v1914_v1  ;;  %v1917_v17 = vand.u32 2147483647, %v1915_v3 }
 0x1e8   : > { %v1922_v5 = vpop.permute.xlu1 %1921  ;;  %v1918_v18 = vadd.f32 %v1916_v2, %v1900_v16  ;;  %v1919_v52 = vadd.f32 %v1917_v17, %v1901_v0 }
 0x1e9   : > { %v1932_v6 = vsub.f32 %v1922_v5, %v1927_v4  ;;  %v1933_v8 = vsub.f32 %v1922_v5, %v1931_v61  ;;  %v2035_v4 = vrot.slane %v4082_v54, %v3605_v55  ;;  %v2039_v61 = vrot.slane %v4085_v56, %v3605_v55  ;;  %v4123_v5 = vld [vmem:[%s3498_s12 + $0xc0] sm:$0xff] }
 0x1ea   : > { %3118 = vset.pattern.permute.xlu1 %v3297_v7  ;;  %v1981_v7 = vrot.slane %v4082_v54, %v3578_v34  ;;  %v2071_v54 = vrot.slane %v4123_v5, %v3556_v22 }
 0x1eb   : > { %v1934_v13 = vand.u32 2147483647, %v1932_v6  ;;  %v1935_v35 = vand.u32 2147483647, %v1933_v8  ;;  %2623 = vperm.xlu1 %3118, %v4011_v9   ;;  %v1994_v9 = vpop.permute.xlu0 %1993  ;;  %v4126_v6 = vld [vmem:[%s3498_s12 + $0xc8] sm:$0xff] }
 0x1ec   : > { %v2004_v43 = vsub.f32 %v1994_v9, %v1999_v19  ;;  %v2005_v44 = vsub.f32 %v1994_v9, %v2003_v51  ;;  %v2075_v56 = vrot.slane %v4126_v6, %v3556_v22  ;;  %v2107_v19 = vrot.slane %v4123_v5, %v3571_v29 }
 0x1ed   : > { %v1936_v21 = vadd.f32 %v1934_v13, %v1918_v18  ;;  %v1937_v25 = vadd.f32 %v1935_v35, %v1919_v52  ;;  %v1958_v41 = vpop.permute.xlu1 %1957  ;;  %v2111_v51 = vrot.slane %v4126_v6, %v3571_v29 }
 0x1ee   : > { %v1968_v28 = vsub.f32 %v1958_v41, %v1963_v14  ;;  %v1969_v42 = vsub.f32 %v1958_v41, %v1967_v15  ;;  %v2006_v32 = vand.u32 2147483647, %v2004_v43  ;;  %v2007_v60 = vand.u32 2147483647, %v2005_v44 }
 0x1ef   : > { %v1954_v48 = vadd.f32 %v1952_v26, %v1936_v21  ;;  %v1955_v36 = vadd.f32 %v1953_v27, %v1937_v25  ;;  %v2048_v63 = vpop.permute.xlu0 %2047 }
 0x1f0   : > { %v1970_v23 = vand.u32 2147483647, %v1968_v28  ;;  %v1971_v38 = vand.u32 2147483647, %v1969_v42  ;;  %v2058_v14 = vsub.f32 %v2048_v63, %v2053_v33  ;;  %v2059_v15 = vsub.f32 %v2048_v63, %v2057_v62 }
 0x1f1   : > { %v2161_v33 = vrot.slane %v4123_v5, %v3593_v46  ;;  %v2165_v62 = vrot.slane %v4126_v6, %v3593_v46 }
 0x1f2   : > { %v1976_v39 = vpop.permute.xlu1 %1975  ;;  %v1972_v50 = vadd.f32 %v1970_v23, %v1954_v48  ;;  %v1973_v11 = vadd.f32 %v1971_v38, %v1955_v36  ;;  %v2060_v26 = vand.u32 2147483647, %v2058_v14  ;;  %v2061_v27 = vand.u32 2147483647, %v2059_v15 }
 0x1f3   : > { %v1986_v40 = vsub.f32 %v1976_v39, %v1981_v7  ;;  %v1987_v49 = vsub.f32 %v1976_v39, %v1985_v31  ;;  %v2089_v7 = vrot.slane %v4123_v5, %v3574_v30  ;;  %v2093_v31 = vrot.slane %v4126_v6, %v3574_v30  ;;  %v2102_v9 = vpop.permute.xlu0 %2101 }
 0x1f4   : > { %v2112_v43 = vsub.f32 %v2102_v9, %v2107_v19  ;;  %v2113_v44 = vsub.f32 %v2102_v9, %v2111_v51  ;;  %v2197_v19 = vrot.slane %v4123_v5, %v3616_v12  ;;  %v2201_v51 = vrot.slane %v4126_v6, %v3616_v12 }
 0x1f5   : > { %v1988_v53 = vand.u32 2147483647, %v1986_v40  ;;  %v1989_v57 = vand.u32 2147483647, %v1987_v49 }
 0x1f7   : > { %v1990_v58 = vadd.f32 %v1988_v53, %v1972_v50  ;;  %v1991_v20 = vadd.f32 %v1989_v57, %v1973_v11  ;;  %v2012_v1 = vpop.permute.xlu1 %2011  ;;  %v2156_v63 = vpop.permute.xlu0 %2155 }
 0x1f8   : > { %v2022_v3 = vsub.f32 %v2012_v1, %v2017_v45  ;;  %v2023_v59 = vsub.f32 %v2012_v1, %v2021_v47  ;;  %v2125_v45 = vrot.slane %v4123_v5, %v3578_v34  ;;  %v2129_v47 = vrot.slane %v4126_v6, %v3578_v34 }
 0x1f9   : > { %v2008_v16 = vadd.f32 %v2006_v32, %v1990_v58  ;;  %v2009_v0 = vadd.f32 %v2007_v60, %v1991_v20  ;;  %v2114_v32 = vand.u32 2147483647, %v2112_v43  ;;  %v2115_v60 = vand.u32 2147483647, %v2113_v44 }
 0x1fa   : > { %v2024_v2 = vand.u32 2147483647, %v2022_v3  ;;  %v2025_v17 = vand.u32 2147483647, %v2023_v59  ;;  %v2166_v14 = vsub.f32 %v2156_v63, %v2161_v33  ;;  %v2167_v15 = vsub.f32 %v2156_v63, %v2165_v62 }
 0x1fc   : > { %v2030_v8 = vpop.permute.xlu1 %2029  ;;  %v2026_v18 = vadd.f32 %v2024_v2, %v2008_v16  ;;  %v2027_v52 = vadd.f32 %v2025_v17, %v2009_v0 }
 0x1fd   : > { %v2040_v24 = vsub.f32 %v2030_v8, %v2035_v4  ;;  %v2041_v10 = vsub.f32 %v2030_v8, %v2039_v61  ;;  %v2143_v4 = vrot.slane %v4123_v5, %v3581_v37  ;;  %v2147_v61 = vrot.slane %v4126_v6, %v3581_v37 }
 0x1ff   : > { %v2042_v13 = vand.u32 2147483647, %v2040_v24  ;;  %v2043_v35 = vand.u32 2147483647, %v2041_v10 }
 0x201   : > { %v2044_v21 = vadd.f32 %v2042_v13, %v2026_v18  ;;  %v2045_v25 = vadd.f32 %v2043_v35, %v2027_v52  ;;  %v2066_v41 = vpop.permute.xlu1 %2065 }
 0x202   : > { %v2076_v28 = vsub.f32 %v2066_v41, %v2071_v54  ;;  %v2077_v42 = vsub.f32 %v2066_v41, %v2075_v56  ;;  %v2179_v54 = vrot.slane %v4123_v5, %v3605_v55  ;;  %v2183_v56 = vrot.slane %v4126_v6, %v3605_v55 }
 0x203   : > { %v2062_v48 = vadd.f32 %v2060_v26, %v2044_v21  ;;  %v2063_v36 = vadd.f32 %v2061_v27, %v2045_v25  ;;  %v4157_v21 = vld [vmem:[%s3498_s12 + $0xd0] sm:$0xff]  ;;  %v4160_v25 = vld [vmem:[%s3498_s12 + $0xd8] sm:$0xff]  ;;  %v2168_v41 = vand.u32 2147483647, %v2166_v14 }
 0x204   : > { %v2078_v23 = vand.u32 2147483647, %v2076_v28  ;;  %v2079_v38 = vand.u32 2147483647, %v2077_v42  ;;  %v2169_v28 = vand.u32 2147483647, %v2167_v15  ;;  %v2215_v9 = vrot.slane %v4157_v21, %v3556_v22 }
 0x205   : > { %v2233_v5 = vrot.slane %v4157_v21, %v3574_v30  ;;  %v2237_v6 = vrot.slane %v4160_v25, %v3574_v30  ;;  %v2269_v33 = vrot.slane %v4157_v21, %v3578_v34  ;;  %v2273_v62 = vrot.slane %v4160_v25, %v3578_v34 }
 0x206   : > { %v2084_v39 = vpop.permute.xlu1 %2083  ;;  %v2080_v50 = vadd.f32 %v2078_v23, %v2062_v48  ;;  %v2081_v11 = vadd.f32 %v2079_v38, %v2063_v36  ;;  %v2219_v48 = vrot.slane %v4160_v25, %v3556_v22  ;;  %v2210_v36 = vpop.permute.xlu0 %2209 }
 0x207   : > { %v2094_v40 = vsub.f32 %v2084_v39, %v2089_v7  ;;  %v2095_v49 = vsub.f32 %v2084_v39, %v2093_v31 }
 0x209   : > { %v2096_v53 = vand.u32 2147483647, %v2094_v40  ;;  %v2097_v57 = vand.u32 2147483647, %v2095_v49 }
 0x20a   : > { %v2264_v63 = vpop.permute.xlu0 %2263 }
 0x20b   : > { %v2098_v58 = vadd.f32 %v2096_v53, %v2080_v50  ;;  %v2099_v20 = vadd.f32 %v2097_v57, %v2081_v11  ;;  %v2120_v1 = vpop.permute.xlu1 %2119  ;;  %v2274_v14 = vsub.f32 %v2264_v63, %v2269_v33  ;;  %v2275_v15 = vsub.f32 %v2264_v63, %v2273_v62 }
 0x20c   : > { %v2130_v3 = vsub.f32 %v2120_v1, %v2125_v45  ;;  %v2131_v59 = vsub.f32 %v2120_v1, %v2129_v47  ;;  %v2220_v45 = vsub.f32 %v2210_v36, %v2215_v9  ;;  %v2221_v47 = vsub.f32 %v2210_v36, %v2219_v48 }
 0x20d   : > { %v2116_v16 = vadd.f32 %v2114_v32, %v2098_v58  ;;  %v2117_v0 = vadd.f32 %v2115_v60, %v2099_v20  ;;  %v2323_v9 = vrot.slane %v4157_v21, %v3605_v55  ;;  %v2327_v48 = vrot.slane %v4160_v25, %v3605_v55 }
 0x20e   : > { %v2132_v2 = vand.u32 2147483647, %v2130_v3  ;;  %v2133_v17 = vand.u32 2147483647, %v2131_v59  ;;  %v2222_v32 = vand.u32 2147483647, %v2220_v45  ;;  %v2318_v36 = vpop.permute.xlu0 %2317 }
 0x20f   : > { %v2223_v60 = vand.u32 2147483647, %v2221_v47  ;;  %v2328_v45 = vsub.f32 %v2318_v36, %v2323_v9  ;;  %v2329_v47 = vsub.f32 %v2318_v36, %v2327_v48 }
 0x210   : > { %v2138_v8 = vpop.permute.xlu1 %2137  ;;  %v2134_v18 = vadd.f32 %v2132_v2, %v2116_v16  ;;  %v2135_v52 = vadd.f32 %v2133_v17, %v2117_v0 }
 0x211   : > { %v2148_v24 = vsub.f32 %v2138_v8, %v2143_v4  ;;  %v2149_v10 = vsub.f32 %v2138_v8, %v2147_v61  ;;  %v2251_v4 = vrot.slane %v4157_v21, %v3571_v29  ;;  %v2255_v61 = vrot.slane %v4160_v25, %v3571_v29 }
 0x212   : > { %v2372_v63 = vpop.permute.xlu0 %2371 }
 0x213   : > { %v2150_v13 = vand.u32 2147483647, %v2148_v24  ;;  %v2151_v35 = vand.u32 2147483647, %v2149_v10 }
 0x215   : > { %v2152_v26 = vadd.f32 %v2150_v13, %v2134_v18  ;;  %v2153_v27 = vadd.f32 %v2151_v35, %v2135_v52  ;;  %v2174_v42 = vpop.permute.xlu1 %2173 }
 0x216   : > { %v2184_v7 = vsub.f32 %v2174_v42, %v2179_v54  ;;  %v2185_v31 = vsub.f32 %v2174_v42, %v2183_v56  ;;  %v2287_v54 = vrot.slane %v4157_v21, %v3581_v37  ;;  %v2291_v56 = vrot.slane %v4160_v25, %v3581_v37  ;;  %v2426_v36 = vpop.permute.xlu0 %2425 }
 0x217   : > { %v2170_v23 = vadd.f32 %v2168_v41, %v2152_v26  ;;  %v2171_v38 = vadd.f32 %v2169_v28, %v2153_v27  ;;  %v2276_v41 = vand.u32 2147483647, %v2274_v14  ;;  %v2277_v28 = vand.u32 2147483647, %v2275_v15 }
 0x218   : > { %v2186_v39 = vand.u32 2147483647, %v2184_v7  ;;  %v2187_v40 = vand.u32 2147483647, %v2185_v31 }
 0x21a   : > { %v2192_v49 = vpop.permute.xlu1 %2191  ;;  %v2188_v50 = vadd.f32 %v2186_v39, %v2170_v23  ;;  %v2189_v11 = vadd.f32 %v2187_v40, %v2171_v38 }
 0x21b   : > { %v2202_v43 = vsub.f32 %v2192_v49, %v2197_v19  ;;  %v2203_v44 = vsub.f32 %v2192_v49, %v2201_v51  ;;  %v2305_v19 = vrot.slane %v4157_v21, %v3593_v46  ;;  %v2309_v51 = vrot.slane %v4160_v25, %v3593_v46 }
 0x21d   : > { %v2204_v53 = vand.u32 2147483647, %v2202_v43  ;;  %v2205_v57 = vand.u32 2147483647, %v2203_v44 }
 0x21f   : > { %v2206_v58 = vadd.f32 %v2204_v53, %v2188_v50  ;;  %v2207_v20 = vadd.f32 %v2205_v57, %v2189_v11  ;;  %v2228_v1 = vpop.permute.xlu1 %2227 }
 0x220   : > { %v2238_v3 = vsub.f32 %v2228_v1, %v2233_v5  ;;  %v2239_v59 = vsub.f32 %v2228_v1, %v2237_v6  ;;  %v2341_v5 = vrot.slane %v4157_v21, %v3616_v12  ;;  %v2345_v6 = vrot.slane %v4160_v25, %v3616_v12 }
 0x221   : > { %v2224_v16 = vadd.f32 %v2222_v32, %v2206_v58  ;;  %v2225_v0 = vadd.f32 %v2223_v60, %v2207_v20  ;;  %v4199_v58 = vld [vmem:[%s3498_s12 + $0xe0] sm:$0xff]  ;;  %v4202_v20 = vld [vmem:[%s3498_s12 + $0xe8] sm:$0xff]  ;;  %v2330_v1 = vand.u32 2147483647, %v2328_v45 }
 0x222   : > { %v2240_v2 = vand.u32 2147483647, %v2238_v3  ;;  %v2241_v17 = vand.u32 2147483647, %v2239_v59  ;;  %v2331_v3 = vand.u32 2147483647, %v2329_v47  ;;  %v2359_v21 = vrot.slane %v4199_v58, %v3556_v22 }
 0x223   : > { %v2363_v25 = vrot.slane %v4202_v20, %v3556_v22  ;;  %v2377_v33 = vrot.slane %v4199_v58, %v3574_v30  ;;  %v2381_v62 = vrot.slane %v4202_v20, %v3574_v30  ;;  %v2431_v9 = vrot.slane %v4199_v58, %v3581_v37 }
 0x224   : > { %v2246_v8 = vpop.permute.xlu1 %2245  ;;  %v2242_v18 = vadd.f32 %v2240_v2, %v2224_v16  ;;  %v2243_v52 = vadd.f32 %v2241_v17, %v2225_v0  ;;  %v2435_v48 = vrot.slane %v4202_v20, %v3581_v37 }
 0x225   : > { %v2256_v24 = vsub.f32 %v2246_v8, %v2251_v4  ;;  %v2257_v10 = vsub.f32 %v2246_v8, %v2255_v61  ;;  %v2382_v14 = vsub.f32 %v2372_v63, %v2377_v33  ;;  %v2383_v15 = vsub.f32 %v2372_v63, %v2381_v62  ;;  %v2480_v63 = vpop.permute.xlu0 %2479 }
 0x226   : > { %v2436_v45 = vsub.f32 %v2426_v36, %v2431_v9  ;;  %v2437_v47 = vsub.f32 %v2426_v36, %v2435_v48  ;;  %v2485_v33 = vrot.slane %v4199_v58, %v3616_v12  ;;  %v2489_v62 = vrot.slane %v4202_v20, %v3616_v12 }
 0x227   : > { %v2258_v13 = vand.u32 2147483647, %v2256_v24  ;;  %v2259_v35 = vand.u32 2147483647, %v2257_v10 }
 0x229   : > { %v2260_v26 = vadd.f32 %v2258_v13, %v2242_v18  ;;  %v2261_v27 = vadd.f32 %v2259_v35, %v2243_v52  ;;  %v2282_v42 = vpop.permute.xlu1 %2281  ;;  %v2534_v48 = vpop.permute.xlu0 %2533 }
 0x22a   : > { %v2292_v7 = vsub.f32 %v2282_v42, %v2287_v54  ;;  %v2293_v31 = vsub.f32 %v2282_v42, %v2291_v56  ;;  %v2395_v54 = vrot.slane %v4199_v58, %v3571_v29  ;;  %v2399_v56 = vrot.slane %v4202_v20, %v3571_v29 }
 0x22b   : > { %v2278_v23 = vadd.f32 %v2276_v41, %v2260_v26  ;;  %v2279_v38 = vadd.f32 %v2277_v28, %v2261_v27  ;;  %v2384_v41 = vand.u32 2147483647, %v2382_v14  ;;  %v2385_v28 = vand.u32 2147483647, %v2383_v15 }
 0x22c   : > { %v2294_v39 = vand.u32 2147483647, %v2292_v7  ;;  %v2295_v40 = vand.u32 2147483647, %v2293_v31 }
 0x22e   : > { %v2300_v49 = vpop.permute.xlu1 %2299  ;;  %v2296_v50 = vadd.f32 %v2294_v39, %v2278_v23  ;;  %v2297_v11 = vadd.f32 %v2295_v40, %v2279_v38 }
 0x22f   : > { %v2310_v43 = vsub.f32 %v2300_v49, %v2305_v19  ;;  %v2311_v44 = vsub.f32 %v2300_v49, %v2309_v51  ;;  %v2413_v19 = vrot.slane %v4199_v58, %v3578_v34  ;;  %v2417_v51 = vrot.slane %v4202_v20, %v3578_v34 }
 0x231   : > { %v2312_v53 = vand.u32 2147483647, %v2310_v43  ;;  %v2313_v57 = vand.u32 2147483647, %v2311_v44 }
 0x233   : > { %v2314_v32 = vadd.f32 %v2312_v53, %v2296_v50  ;;  %v2315_v60 = vadd.f32 %v2313_v57, %v2297_v11  ;;  %v2336_v59 = vpop.permute.xlu1 %2335 }
 0x234   : > { %v2346_v4 = vsub.f32 %v2336_v59, %v2341_v5  ;;  %v2347_v61 = vsub.f32 %v2336_v59, %v2345_v6  ;;  %v2449_v5 = vrot.slane %v4199_v58, %v3593_v46  ;;  %v2453_v6 = vrot.slane %v4202_v20, %v3593_v46 }
 0x235   : > { %v2332_v16 = vadd.f32 %v2330_v1, %v2314_v32  ;;  %v2333_v0 = vadd.f32 %v2331_v3, %v2315_v60  ;;  %v2438_v1 = vand.u32 2147483647, %v2436_v45  ;;  %v2439_v3 = vand.u32 2147483647, %v2437_v47 }
 0x236   : > { %v2348_v2 = vand.u32 2147483647, %v2346_v4  ;;  %v2349_v17 = vand.u32 2147483647, %v2347_v61 }
 0x238   : > { %v2354_v8 = vpop.permute.xlu1 %2353  ;;  %v2350_v18 = vadd.f32 %v2348_v2, %v2332_v16  ;;  %v2351_v52 = vadd.f32 %v2349_v17, %v2333_v0 }
 0x239   : > { %v2364_v24 = vsub.f32 %v2354_v8, %v2359_v21  ;;  %v2365_v10 = vsub.f32 %v2354_v8, %v2363_v25  ;;  %v2467_v21 = vrot.slane %v4199_v58, %v3605_v55  ;;  %v2471_v25 = vrot.slane %v4202_v20, %v3605_v55  ;;  %v4237_v8 = vld [vmem:[%s3498_s12 + $0xf0] sm:$0xff] }
 0x23a   : > { %v2503_v58 = vrot.slane %v4237_v8, %v3556_v22  ;;  %v2557_v47 = vrot.slane %v4237_v8, %v3578_v34 }
 0x23b   : > { %v2366_v13 = vand.u32 2147483647, %v2364_v24  ;;  %v2367_v35 = vand.u32 2147483647, %v2365_v10  ;;  %v4240_v24 = vld [vmem:[%s3498_s12 + $0xf8] sm:$0xff] }
 0x23c   : > { %v2507_v20 = vrot.slane %v4240_v24, %v3556_v22  ;;  %v2539_v22 = vrot.slane %v4237_v8, %v3571_v29  ;;  %v2543_v9 = vrot.slane %v4240_v24, %v3571_v29 }
 0x23d   : > { %v2368_v26 = vadd.f32 %v2366_v13, %v2350_v18  ;;  %v2369_v27 = vadd.f32 %v2367_v35, %v2351_v52  ;;  %v2390_v42 = vpop.permute.xlu1 %2389 }
 0x23e   : > { %v2400_v7 = vsub.f32 %v2390_v42, %v2395_v54  ;;  %v2401_v31 = vsub.f32 %v2390_v42, %v2399_v56  ;;  %v2490_v54 = vsub.f32 %v2480_v63, %v2485_v33  ;;  %v2491_v56 = vsub.f32 %v2480_v63, %v2489_v62 }
 0x23f   : > { %v2386_v23 = vadd.f32 %v2384_v41, %v2368_v26  ;;  %v2387_v38 = vadd.f32 %v2385_v28, %v2369_v27  ;;  %v2545_v45 = vsub.f32 %v2534_v48, %v2543_v9 }
 0x240   : > { %v2402_v39 = vand.u32 2147483647, %v2400_v7  ;;  %v2403_v40 = vand.u32 2147483647, %v2401_v31  ;;  %v2492_v41 = vand.u32 2147483647, %v2490_v54 }
 0x241   : > { %v2493_v28 = vand.u32 2147483647, %v2491_v56 }
 0x242   : > { %v2408_v49 = vpop.permute.xlu1 %2407  ;;  %v2404_v50 = vadd.f32 %v2402_v39, %v2386_v23  ;;  %v2405_v11 = vadd.f32 %v2403_v40, %v2387_v38 }
 0x243   : > { %v2418_v43 = vsub.f32 %v2408_v49, %v2413_v19  ;;  %v2419_v44 = vsub.f32 %v2408_v49, %v2417_v51  ;;  %v2521_v19 = vrot.slane %v4237_v8, %v3574_v30  ;;  %v2525_v51 = vrot.slane %v4240_v24, %v3574_v30 }
 0x244   : > { %v2561_v30 = vrot.slane %v4240_v24, %v3578_v34  ;;  %v2593_v34 = vrot.slane %v4237_v8, %v3593_v46 }
 0x245   : > { %v2420_v53 = vand.u32 2147483647, %v2418_v43  ;;  %v2421_v57 = vand.u32 2147483647, %v2419_v44  ;;  %v2544_v44 = vsub.f32 %v2534_v48, %v2539_v22 }
 0x247   : > { %v2422_v32 = vadd.f32 %v2420_v53, %v2404_v50  ;;  %v2423_v60 = vadd.f32 %v2421_v57, %v2405_v11  ;;  %v2444_v59 = vpop.permute.xlu1 %2443  ;;  %v2546_v57 = vand.u32 2147483647, %v2544_v44 }
 0x248   : > { %v2454_v4 = vsub.f32 %v2444_v59, %v2449_v5  ;;  %v2455_v61 = vsub.f32 %v2444_v59, %v2453_v6  ;;  %v2575_v59 = vrot.slane %v4237_v8, %v3581_v37 }
 0x249   : > { %v2440_v16 = vadd.f32 %v2438_v1, %v2422_v32  ;;  %v2441_v0 = vadd.f32 %v2439_v3, %v2423_v60  ;;  %v2547_v32 = vand.u32 2147483647, %v2545_v45 }
 0x24a   : > { %v2456_v2 = vand.u32 2147483647, %v2454_v4  ;;  %v2457_v17 = vand.u32 2147483647, %v2455_v61  ;;  %v2579_v4 = vrot.slane %v4240_v24, %v3581_v37  ;;  %v2597_v61 = vrot.slane %v4240_v24, %v3593_v46 }
 0x24b   : > { %v2615_v37 = vrot.slane %v4240_v24, %v3605_v55 }
 0x24c   : > { %v2462_v10 = vpop.permute.xlu1 %2461  ;;  %v2458_v18 = vadd.f32 %v2456_v2, %v2440_v16  ;;  %v2459_v52 = vadd.f32 %v2457_v17, %v2441_v0 }
 0x24d   : > { %v2472_v14 = vsub.f32 %v2462_v10, %v2467_v21  ;;  %v2473_v15 = vsub.f32 %v2462_v10, %v2471_v25  ;;  %v2588_v21 = vpop.permute.xlu0 %2587 }
 0x24e   : > { %v2598_v17 = vsub.f32 %v2588_v21, %v2593_v34  ;;  %v2599_v10 = vsub.f32 %v2588_v21, %v2597_v61 }
 0x24f   : > { %v2474_v13 = vand.u32 2147483647, %v2472_v14  ;;  %v2475_v35 = vand.u32 2147483647, %v2473_v15  ;;  %v2611_v14 = vrot.slane %v4237_v8, %v3605_v55 }
 0x251   : > { %v2476_v26 = vadd.f32 %v2474_v13, %v2458_v18  ;;  %v2477_v27 = vadd.f32 %v2475_v35, %v2459_v52  ;;  %v2498_v42 = vpop.permute.xlu1 %2497  ;;  %v2600_v18 = vand.u32 2147483647, %v2598_v17  ;;  %v2601_v52 = vand.u32 2147483647, %v2599_v10 }
 0x252   : > { %v2508_v7 = vsub.f32 %v2498_v42, %v2503_v58  ;;  %v2509_v31 = vsub.f32 %v2498_v42, %v2507_v20 }
 0x253   : > { %v2494_v36 = vadd.f32 %v2492_v41, %v2476_v26  ;;  %v2495_v23 = vadd.f32 %v2493_v28, %v2477_v27  ;;  %v2629_v27 = vrot.slane %v4237_v8, %v3616_v12  ;;  %v2633_v41 = vrot.slane %v4240_v24, %v3616_v12 }
 0x254   : > { %v2510_v38 = vand.u32 2147483647, %v2508_v7  ;;  %v2511_v39 = vand.u32 2147483647, %v2509_v31 }
 0x256   : > { %v2516_v40 = vpop.permute.xlu1 %2515  ;;  %v2512_v5 = vadd.f32 %v2510_v38, %v2494_v36  ;;  %v2513_v6 = vadd.f32 %v2511_v39, %v2495_v23 }
 0x257   : > { %v2526_v49 = vsub.f32 %v2516_v40, %v2521_v19  ;;  %v2527_v43 = vsub.f32 %v2516_v40, %v2525_v51 }
 0x259   : > { %v2528_v50 = vand.u32 2147483647, %v2526_v49  ;;  %v2529_v29 = vand.u32 2147483647, %v2527_v43 }
 0x25b   : > { %v2530_v11 = vadd.f32 %v2528_v50, %v2512_v5  ;;  %v2531_v53 = vadd.f32 %v2529_v29, %v2513_v6  ;;  %v2552_v60 = vpop.permute.xlu1 %2551 }
 0x25c   : > { %v2562_v1 = vsub.f32 %v2552_v60, %v2557_v47  ;;  %v2563_v3 = vsub.f32 %v2552_v60, %v2561_v30 }
 0x25d   : > { %v2548_v25 = vadd.f32 %v2546_v57, %v2530_v11  ;;  %v2549_v33 = vadd.f32 %v2547_v32, %v2531_v53 }
 0x25e   : > { %v2564_v62 = vand.u32 2147483647, %v2562_v1  ;;  %v2565_v63 = vand.u32 2147483647, %v2563_v3 }
 0x260   : > { %v2570_v16 = vpop.permute.xlu1 %2569  ;;  %v2566_v15 = vadd.f32 %v2564_v62, %v2548_v25  ;;  %v2567_v54 = vadd.f32 %v2565_v63, %v2549_v33 }
 0x261   : > { %v2580_v0 = vsub.f32 %v2570_v16, %v2575_v59  ;;  %v2581_v2 = vsub.f32 %v2570_v16, %v2579_v4 }
 0x263   : > { %v2582_v56 = vand.u32 2147483647, %v2580_v0  ;;  %v2583_v46 = vand.u32 2147483647, %v2581_v2 }
 0x265   : > { %v2584_v58 = vadd.f32 %v2582_v56, %v2566_v15  ;;  %v2585_v20 = vadd.f32 %v2583_v46, %v2567_v54  ;;  %v2606_v13 = vpop.permute.xlu1 %2605 }
 0x266   : > { %v2616_v35 = vsub.f32 %v2606_v13, %v2611_v14  ;;  %v2617_v26 = vsub.f32 %v2606_v13, %v2615_v37 }
 0x267   : > { %v2602_v28 = vadd.f32 %v2600_v18, %v2584_v58  ;;  %v2603_v42 = vadd.f32 %v2601_v52, %v2585_v20 }
 0x268   : > { %v2618_v55 = vand.u32 2147483647, %v2616_v35  ;;  %v2619_v7 = vand.u32 2147483647, %v2617_v26 }
 0x26a   : > { %v2624_v31 = vpop.permute.xlu1 %2623  ;;  %v2620_v22 = vadd.f32 %v2618_v55, %v2602_v28  ;;  %v2621_v9 = vadd.f32 %v2619_v7, %v2603_v42 }
 0x26b   : > { %v2634_v19 = vsub.f32 %v2624_v31, %v2629_v27  ;;  %v2635_v51 = vsub.f32 %v2624_v31, %v2633_v41  ;;  %2645 = sbr.rel (%p2786_p1) target bundleno = 636 (0x27c), region = 59 }
 0x26d   : > { %v2636_v48 = vand.u32 2147483647, %v2634_v19  ;;  %v2637_v36 = vand.u32 2147483647, %v2635_v51 }
 0x26f   : > { %v2638_v23 = vadd.f32 %v2636_v48, %v2620_v22  ;;  %v2639_v38 = vadd.f32 %v2637_v36, %v2621_v9 }
 0x271   : > { %2640 = vst [vmem:[#allocation2] sm:$0xff] %v2638_v23  ;;  %2641 = vst [vmem:[#allocation2 + $0x8] sm:$0xff] %v2639_v38 }
 0x278   : > { %v2646_v8 = vld [vmem:[#allocation2] sm:$0xff]  ;;  %v2647_v12 = vld [vmem:[#allocation2 + $0x8] sm:$0xff] }
 0x279   : > { %v2648_v24 = vsub.f32 0.0, %v2646_v8  ;;  %v2649_v39 = vsub.f32 0.0, %v2647_v12 }
 0x27b   : > { %2650 = vst [vmem:[%s3496_s7] sm:$0xff] %v2648_v24  ;;  %2651 = vst [vmem:[%s3496_s7 + $0x8] sm:$0xff] %v2649_v39 }
 0x27c PF: > { %s12_s17 = sadd.s32 1, %s3192_s17   ;;  %s4307_s9 = smov %s3164_s10 }
 0x27d   : > { %p9_p2 = scmp.ge.s32.totalorder %s12_s17, 10   ;;  %s4308_s10 = smov %s3403_s25 }
 0x27e   : > { %s4309_s11 = smov %s3180_s14  ;;  %s4310_s12 = smov %s3184_s15 }
 0x27f   : > { %s4311_s13 = smov %s3188_s16  ;;  %s4312_s14 = smov %s4316_s18 }
 0x280   : > { %s4313_s15 = smov %s4320_s19  ;;  %s4314_s16 = smov %s4324_s20 }
 0x281   :  { %11 = sbr.rel (!%p9_p2) target bundleno = 5 (0x5), region = 97 }

</bundles_post_ra>
